<compile_context>
chip_gen: v7x
topology: tpu7x:2x2x1
jax: 0.10.0
libtpu: 0.0.40
codegen_flags: <defaults>
</compile_context>

<pallas_src>
import jax
import jax.numpy as jnp
from jax.experimental import pallas as pl
from jax.experimental.pallas import tpu as pltpu

LANE_OUT = 128                      # pad the scalar output to a full lane group
HP = jax.lax.Precision.HIGHEST      # reference only


def _round_up(x, m):
    return ((x + m - 1) // m) * m


def attnet_kernel(x01_ref, xbw_ref, wa_ref, wst_ref, wfc1_ref,
                  bfc1_ref, wfc2_ref, bfc2_ref, o_ref):
    # x01_ref : (H, TB, 2C+1)   bf16  [sa[b,:,h,0], sa[b,:,h,1], 1]      (branch-A LHS)
    # xbw_ref : (W, TB, H*C+1)  bf16  [sa[b,:,:,w] flat (h*C+c), 1]      (branch-B LHS)
    # wa_ref  : (2C+1, 2*OC)    bf16  fused conv1|conv2 weights + biases
    # wst_ref : (H*C+1, OC)     bf16  conv_s weights + bias
    # wfc1_ref: (H+1, OC, OC)   bf16  fc1 weight regrouped per feature block (h, then branch B)
    # o_ref   : (TB, LANE_OUT)  f32   lane 0 holds the real output
    H = x01_ref.shape[0]
    W = xbw_ref.shape[0]
    OC = wst_ref.shape[1]

    # ---- branch B: conv_s (15x1) + MaxPool2d((1,4)) + relu -------------------------------
    sb = jnp.dot(xbw_ref[0], wst_ref[...], preferred_element_type=jnp.float32)   # (TB, OC)
    for w in range(1, W):                                                        # static
        sb = jnp.maximum(sb, jnp.dot(xbw_ref[w], wst_ref[...],
                                     preferred_element_type=jnp.float32))
    xs = jnp.maximum(sb, 0.0)                                                    # (TB, OC)

    # fc1 accumulation starts with the branch-B block of the (regrouped) fc1 weight.
    acc = jnp.dot(xs.astype(jnp.bfloat16), wfc1_ref[H],
                  preferred_element_type=jnp.float32)                            # (TB, OC) f32

    # ---- branch A: conv1/conv2 (stride (1,4)) + MaxPool2d((1,2)) + relu, fused with the
    #      per-h slice of fc1 (no feature slab, no masked scatter, no reload) --------------
    for h in range(H):                                                           # static unroll
        t = jnp.dot(x01_ref[h], wa_ref[...],
                    preferred_element_type=jnp.float32)                          # (TB, 2*OC)
        xa = jnp.maximum(jnp.maximum(t[:, :OC], t[:, OC:]), 0.0)                 # relu(maxpool)
        acc = acc + jnp.dot(xa.astype(jnp.bfloat16), wfc1_ref[h],
                            preferred_element_type=jnp.float32)

    # ---- fc1 bias + relu, fc2 (Dropout(0.5) is identity in eval-mode forward) ------------
    # TODO(synk): training-mode dropout (mask + 1/0.5 scaling) not implemented.
    h1 = jnp.maximum(acc + bfc1_ref[...], 0.0)                                   # (TB, OC)
    o_ref[...] = (jnp.dot(h1.astype(jnp.bfloat16), wfc2_ref[...],
                          preferred_element_type=jnp.float32) + bfc2_ref[...])   # (TB, LANE_OUT)


def attnet_forward(state, actions, params):
    """state: (B,6,15,4) or (6,15,4); actions: (B,15,4)  ->  (B, 1)."""
    conv1_w = jnp.asarray(params["conv1_w"], jnp.float32); conv1_b = jnp.asarray(params["conv1_b"], jnp.float32)
    conv2_w = jnp.asarray(params["conv2_w"], jnp.float32); conv2_b = jnp.asarray(params["conv2_b"], jnp.float32)
    convs_w = jnp.asarray(params["convs_w"], jnp.float32); convs_b = jnp.asarray(params["convs_b"], jnp.float32)
    fc1_w = jnp.asarray(params["fc1_w"], jnp.float32); fc1_b = jnp.asarray(params["fc1_b"], jnp.float32)
    fc2_w = jnp.asarray(params["fc2_w"], jnp.float32); fc2_b = jnp.asarray(params["fc2_b"], jnp.float32)

    B = actions.shape[0]
    if state.ndim == 3:                                   # state.unsqueeze(0).repeat(...)
        state = jnp.broadcast_to(state[None], (B,) + state.shape)
    sa = jnp.concatenate([state, actions[:, None]], axis=1).astype(jnp.float32)   # (B,7,15,4)
    _, C, H, W = sa.shape                                 # (B, 7, 15, 4)
    OC = conv1_w.shape[0]

    # ---- batch tiling: TB rows per grid step (mult of 16 for bf16 sublane tiling, <=256,
    #      and sized so B>=2*TB gives >=2 "parallel" blocks for the two v7x TensorCores) ----
    TB = max(16, min(256, _round_up(pl.cdiv(B, 2), 16)))
    NB = pl.cdiv(B, TB)
    B_pad = NB * TB
    if B_pad != B:
        sa = jnp.pad(sa, ((0, B_pad - B), (0, 0), (0, 0), (0, 0)))

    K1 = 2 * C + 1                                        # branch-A contraction (w0 ch, w1 ch, 1)
    KB = H * C + 1                                        # branch-B contraction (h*C+c, 1)

    # --------- host-side layout plumbing (pure transposes / reshapes, no compute) ---------
    # Branch A LHS: x01[h, b, :] = [sa[b,:,h,0], sa[b,:,h,1], 1]
    x01 = jnp.transpose(sa[:, :, :, :2], (2, 0, 3, 1)).reshape(H, B_pad, 2 * C)
    x01 = jnp.concatenate([x01, jnp.ones((H, B_pad, 1), sa.dtype)], axis=-1).astype(jnp.bfloat16)
    # Branch B LHS: xbw[w, b, :] = [sa[b,:,:,w] flattened as h*C+c, 1]
    xbw = jnp.transpose(sa, (3, 0, 2, 1)).reshape(W, B_pad, H * C)
    xbw = jnp.concatenate([xbw, jnp.ones((W, B_pad, 1), sa.dtype)], axis=-1).astype(jnp.bfloat16)

    # Fused branch-A weights: rows [w=0 channels | w=1 channels | bias] x cols [conv1 | conv2]
    w1t = conv1_w[:, :, 0, 0].T                           # (C, OC)
    w2t0 = conv2_w[:, :, 0, 0].T                          # (C, OC)
    w2t1 = conv2_w[:, :, 0, 1].T                          # (C, OC)
    wAcat = jnp.concatenate([
        jnp.concatenate([w1t, w2t0], axis=1),
        jnp.concatenate([jnp.zeros((C, OC), jnp.float32), w2t1], axis=1),
        jnp.concatenate([conv1_b, conv2_b])[None, :],
    ], axis=0).astype(jnp.bfloat16)                       # (2C+1, 2*OC)

    # conv_s weights (+ bias row) with row index h*C + c, matching xbw's lane layout
    wst = jnp.transpose(convs_w[:, :, :, 0], (2, 1, 0)).reshape(H * C, OC)
    wst_aug = jnp.concatenate([wst, convs_b[None, :]], axis=0).astype(jnp.bfloat16)   # (KB, OC)

    # fc1 weight regrouped per feature block: PyTorch flatten order is o*H + h, so
    # wfc1_r[h][o, j] = fc1_w[j, o*H + h]; wfc1_r[H][o, j] = fc1_w[j, OC*H + o]
    wA = jnp.transpose(fc1_w[:, :OC * H].reshape(OC, OC, H), (2, 1, 0))   # (H, OC, OC)
    wB = fc1_w[:, OC * H:].T[None]                                        # (1, OC, OC)
    wfc1_r = jnp.concatenate([wA, wB], axis=0).astype(jnp.bfloat16)       # (H+1, OC, OC)

    bfc1 = fc1_b[None, :].astype(jnp.float32)                             # (1, OC)
    wfc2_p = jnp.zeros((OC, LANE_OUT), jnp.float32).at[:, 0].set(fc2_w[0]).astype(jnp.bfloat16)
    bfc2_p = jnp.full((1, LANE_OUT), fc2_b[0], jnp.float32)

    out_pad = pl.pallas_call(
        attnet_kernel,
        out_shape=jax.ShapeDtypeStruct((B_pad, LANE_OUT), jnp.float32),
        grid_spec=pltpu.PrefetchScalarGridSpec(
            num_scalar_prefetch=0,
            grid=(NB,),
            in_specs=[
                pl.BlockSpec((H, TB, K1), lambda i: (0, i, 0)),        # x01 (batched)
                pl.BlockSpec((W, TB, KB), lambda i: (0, i, 0)),        # xbw (batched)
                pl.BlockSpec((K1, 2 * OC), lambda i: (0, 0)),          # wAcat
                pl.BlockSpec((KB, OC), lambda i: (0, 0)),              # wst_aug
                pl.BlockSpec((H + 1, OC, OC), lambda i: (0, 0, 0)),    # wfc1 (regrouped)
                pl.BlockSpec((1, OC), lambda i: (0, 0)),               # bfc1
                pl.BlockSpec((OC, LANE_OUT), lambda i: (0, 0)),        # wfc2 (lane-padded)
                pl.BlockSpec((1, LANE_OUT), lambda i: (0, 0)),         # bfc2 (lane-padded)
            ],
            out_specs=pl.BlockSpec((TB, LANE_OUT), lambda i: (i, 0)),
        ),
        compiler_params=pltpu.CompilerParams(
            dimension_semantics=("parallel",),
        ),
    )(x01, xbw, wAcat, wst_aug, wfc1_r, bfc1, wfc2_p, bfc2_p)

    return out_pad[:B, :1]                                # (B, 1)


def attnet_reference(state, actions, p):
    """Pure-JAX reference mirroring the PyTorch forward (eval mode), HIGHEST precision."""
    B = actions.shape[0]
    if state.ndim == 3:
        state = jnp.broadcast_to(state[None], (B,) + state.shape)
    sa = jnp.concatenate([state, actions[:, None]], axis=1)
    dn = ("NCHW", "OIHW", "NCHW")
    c1 = jax.lax.conv_general_dilated(sa, p["conv1_w"], (1, 4), "VALID",
                                      dimension_numbers=dn, precision=HP)
    c1 = c1 + p["conv1_b"][None, :, None, None]
    c2 = jax.lax.conv_general_dilated(sa, p["conv2_w"], (1, 4), "VALID",
                                      dimension_numbers=dn, precision=HP)
    c2 = c2 + p["conv2_b"][None, :, None, None]
    x = jnp.concatenate([c1, c2], axis=-1)                 # (B, OC, 15, 2)
    x = jnp.max(x, axis=-1, keepdims=True)                 # MaxPool2d((1,2))
    x = jax.nn.relu(x).reshape(B, -1)                      # (B, OC*15)
    xs = jax.lax.conv_general_dilated(sa, p["convs_w"], (1, 1), "VALID",
                                      dimension_numbers=dn, precision=HP)
    xs = xs + p["convs_b"][None, :, None, None]            # (B, OC, 1, 4)
    xs = jnp.max(xs, axis=-1, keepdims=True)               # MaxPool2d((1,4))
    xs = jax.nn.relu(xs).reshape(B, -1)                    # (B, OC)
    x = jnp.concatenate([x, xs], axis=-1)                  # (B, OC*16); dropout = identity
    x = jax.nn.relu(jnp.dot(x, p["fc1_w"].T, precision=HP) + p["fc1_b"])
    return jnp.dot(x, p["fc2_w"].T, precision=HP) + p["fc2_b"]


if __name__ == "__main__":
    key = jax.random.PRNGKey(0)
    ks = jax.random.split(key, 12)

    OC = 256                  # module default out_chanel
    B, H, W = 2, 15, 4        # shapes implied by fc1 = Linear(OC*(15+1), OC)
    state = jax.random.normal(ks[0], (6, H, W), jnp.float32)       # 3-D: exercises the repeat path
    actions = jax.random.normal(ks[1], (B, H, W), jnp.float32)

    params = {
        "conv1_w": 0.05 * jax.random.normal(ks[2], (OC, 7, 1, 1), jnp.float32),
        "conv1_b": 0.05 * jax.random.normal(ks[3], (OC,), jnp.float32),
        "conv2_w": 0.05 * jax.random.normal(ks[4], (OC, 7, 1, 2), jnp.float32),
        "conv2_b": 0.05 * jax.random.normal(ks[5], (OC,), jnp.float32),
        "convs_w": 0.05 * jax.random.normal(ks[6], (OC, 7, 15, 1), jnp.float32),
        "convs_b": 0.05 * jax.random.normal(ks[7], (OC,), jnp.float32),
        "fc1_w": 0.02 * jax.random.normal(ks[8], (OC, OC * 16), jnp.float32),
        "fc1_b": 0.02 * jax.random.normal(ks[9], (OC,), jnp.float32),
        "fc2_w": 0.05 * jax.random.normal(ks[10], (1, OC), jnp.float32),
        "fc2_b": 0.05 * jax.random.normal(ks[11], (1,), jnp.float32),
    }

    out = attnet_forward(state, actions, params)
    out = jax.block_until_ready(out)

    ref = attnet_reference(state, actions, params)
    assert out.shape == (B, 1), out.shape
    err = float(jnp.max(jnp.abs(out - ref)))
    assert jnp.allclose(out, ref, atol=2e-3, rtol=2e-3), err

    print("KERNEL_OK")
</pallas_src>

<mosaic_0001>
module attributes {stable_mosaic.version = 11 : i64} {
  func.func @attnet_kernel(%arg0: i32, %arg1: memref<15x16x15xbf16, #tpu.memory_space<vmem>>, %arg2: memref<4x16x106xbf16, #tpu.memory_space<vmem>>, %arg3: memref<15x512xbf16, #tpu.memory_space<vmem>>, %arg4: memref<106x256xbf16, #tpu.memory_space<vmem>>, %arg5: memref<16x256x256xbf16, #tpu.memory_space<vmem>>, %arg6: memref<1x256xf32, #tpu.memory_space<vmem>>, %arg7: memref<256x128xbf16, #tpu.memory_space<vmem>>, %arg8: memref<1x128xf32, #tpu.memory_space<vmem>>, %arg9: memref<16x128xf32, #tpu.memory_space<vmem>>) attributes {dimension_semantics = [#tpu.dimension_semantics<parallel>], iteration_bounds = array<i64: 1>, scalar_prefetch = 0 : i64, scratch_operands = 0 : i64, tpu.core_type = #tpu.core_type<tc>, window_params = [{transform_indices = @transform_0, window_bounds = array<i64: 15, 16, 15>}, {transform_indices = @transform_1, window_bounds = array<i64: 4, 16, 106>}, {pipeline_mode = #tpu.pipeline_mode<synchronous>, transform_indices = @transform_2, window_bounds = array<i64: 15, 512>}, {pipeline_mode = #tpu.pipeline_mode<synchronous>, transform_indices = @transform_3, window_bounds = array<i64: 106, 256>}, {pipeline_mode = #tpu.pipeline_mode<synchronous>, transform_indices = @transform_4, window_bounds = array<i64: 16, 256, 256>}, {pipeline_mode = #tpu.pipeline_mode<synchronous>, transform_indices = @transform_5, window_bounds = array<i64: 1, 256>}, {pipeline_mode = #tpu.pipeline_mode<synchronous>, transform_indices = @transform_6, window_bounds = array<i64: 256, 128>}, {pipeline_mode = #tpu.pipeline_mode<synchronous>, transform_indices = @transform_7, window_bounds = array<i64: 1, 128>}, {transform_indices = @transform_8, window_bounds = array<i64: 16, 128>}]} {
    %c0 = arith.constant 0 : index
    %c0_0 = arith.constant 0 : index
    %c0_1 = arith.constant 0 : index
    %0 = vector.load %arg2[%c0, %c0_0, %c0_1] : memref<4x16x106xbf16, #tpu.memory_space<vmem>>, vector<1x16x106xbf16>
    %1 = vector.shape_cast %0 : vector<1x16x106xbf16> to vector<16x106xbf16>
    %c0_2 = arith.constant 0 : index
    %c0_3 = arith.constant 0 : index
    %2 = vector.load %arg4[%c0_2, %c0_3] : memref<106x256xbf16, #tpu.memory_space<vmem>>, vector<106x256xbf16>
    %cst = arith.constant dense<0.000000e+00> : vector<16x256xf32>
    %3 = tpu.matmul %1, %2, %cst {dimension_numbers = #tpu.dot_dimension_numbers<[1], [0], [0], [1], [0, 0, 1, 1], [], []>} : vector<16x106xbf16>, vector<106x256xbf16>, vector<16x256xf32> -> vector<16x256xf32>
    %c1 = arith.constant 1 : index
    %c0_4 = arith.constant 0 : index
    %c0_5 = arith.constant 0 : index
    %4 = vector.load %arg2[%c1, %c0_4, %c0_5] : memref<4x16x106xbf16, #tpu.memory_space<vmem>>, vector<1x16x106xbf16>
    %5 = vector.shape_cast %4 : vector<1x16x106xbf16> to vector<16x106xbf16>
    %c0_6 = arith.constant 0 : index
    %c0_7 = arith.constant 0 : index
    %6 = vector.load %arg4[%c0_6, %c0_7] : memref<106x256xbf16, #tpu.memory_space<vmem>>, vector<106x256xbf16>
    %cst_8 = arith.constant dense<0.000000e+00> : vector<16x256xf32>
    %7 = tpu.matmul %5, %6, %cst_8 {dimension_numbers = #tpu.dot_dimension_numbers<[1], [0], [0], [1], [0, 0, 1, 1], [], []>} : vector<16x106xbf16>, vector<106x256xbf16>, vector<16x256xf32> -> vector<16x256xf32>
    %8 = arith.maximumf %3, %7 : vector<16x256xf32>
    %c2 = arith.constant 2 : index
    %c0_9 = arith.constant 0 : index
    %c0_10 = arith.constant 0 : index
    %9 = vector.load %arg2[%c2, %c0_9, %c0_10] : memref<4x16x106xbf16, #tpu.memory_space<vmem>>, vector<1x16x106xbf16>
    %10 = vector.shape_cast %9 : vector<1x16x106xbf16> to vector<16x106xbf16>
    %c0_11 = arith.constant 0 : index
    %c0_12 = arith.constant 0 : index
    %11 = vector.load %arg4[%c0_11, %c0_12] : memref<106x256xbf16, #tpu.memory_space<vmem>>, vector<106x256xbf16>
    %cst_13 = arith.constant dense<0.000000e+00> : vector<16x256xf32>
    %12 = tpu.matmul %10, %11, %cst_13 {dimension_numbers = #tpu.dot_dimension_numbers<[1], [0], [0], [1], [0, 0, 1, 1], [], []>} : vector<16x106xbf16>, vector<106x256xbf16>, vector<16x256xf32> -> vector<16x256xf32>
    %13 = arith.maximumf %8, %12 : vector<16x256xf32>
    %c3 = arith.constant 3 : index
    %c0_14 = arith.constant 0 : index
    %c0_15 = arith.constant 0 : index
    %14 = vector.load %arg2[%c3, %c0_14, %c0_15] : memref<4x16x106xbf16, #tpu.memory_space<vmem>>, vector<1x16x106xbf16>
    %15 = vector.shape_cast %14 : vector<1x16x106xbf16> to vector<16x106xbf16>
    %c0_16 = arith.constant 0 : index
    %c0_17 = arith.constant 0 : index
    %16 = vector.load %arg4[%c0_16, %c0_17] : memref<106x256xbf16, #tpu.memory_space<vmem>>, vector<106x256xbf16>
    %cst_18 = arith.constant dense<0.000000e+00> : vector<16x256xf32>
    %17 = tpu.matmul %15, %16, %cst_18 {dimension_numbers = #tpu.dot_dimension_numbers<[1], [0], [0], [1], [0, 0, 1, 1], [], []>} : vector<16x106xbf16>, vector<106x256xbf16>, vector<16x256xf32> -> vector<16x256xf32>
    %18 = arith.maximumf %13, %17 : vector<16x256xf32>
    %cst_19 = arith.constant 0.000000e+00 : f32
    %19 = vector.broadcast %cst_19 : f32 to vector<16x256xf32>
    %20 = arith.maximumf %18, %19 : vector<16x256xf32>
    %21 = arith.truncf %20 : vector<16x256xf32> to vector<16x256xbf16>
    %c15 = arith.constant 15 : index
    %c0_20 = arith.constant 0 : index
    %c0_21 = arith.constant 0 : index
    %22 = vector.load %arg5[%c15, %c0_20, %c0_21] : memref<16x256x256xbf16, #tpu.memory_space<vmem>>, vector<1x256x256xbf16>
    %23 = vector.shape_cast %22 : vector<1x256x256xbf16> to vector<256x256xbf16>
    %cst_22 = arith.constant dense<0.000000e+00> : vector<16x256xf32>
    %24 = tpu.matmul %21, %23, %cst_22 {dimension_numbers = #tpu.dot_dimension_numbers<[1], [0], [0], [1], [0, 0, 1, 1], [], []>} : vector<16x256xbf16>, vector<256x256xbf16>, vector<16x256xf32> -> vector<16x256xf32>
    %c0_23 = arith.constant 0 : index
    %c0_24 = arith.constant 0 : index
    %c0_25 = arith.constant 0 : index
    %25 = vector.load %arg1[%c0_23, %c0_24, %c0_25] : memref<15x16x15xbf16, #tpu.memory_space<vmem>>, vector<1x16x15xbf16>
    %26 = vector.shape_cast %25 : vector<1x16x15xbf16> to vector<16x15xbf16>
    %c0_26 = arith.constant 0 : index
    %c0_27 = arith.constant 0 : index
    %27 = vector.load %arg3[%c0_26, %c0_27] : memref<15x512xbf16, #tpu.memory_space<vmem>>, vector<15x512xbf16>
    %cst_28 = arith.constant dense<0.000000e+00> : vector<16x512xf32>
    %28 = tpu.matmul %26, %27, %cst_28 {dimension_numbers = #tpu.dot_dimension_numbers<[1], [0], [0], [1], [0, 0, 1, 1], [], []>} : vector<16x15xbf16>, vector<15x512xbf16>, vector<16x512xf32> -> vector<16x512xf32>
    %29 = vector.extract_strided_slice %28 {offsets = [0, 0], sizes = [16, 256], strides = [1, 1]} : vector<16x512xf32> to vector<16x256xf32>
    %30 = vector.extract_strided_slice %28 {offsets = [0, 256], sizes = [16, 256], strides = [1, 1]} : vector<16x512xf32> to vector<16x256xf32>
    %31 = arith.maximumf %29, %30 : vector<16x256xf32>
    %cst_29 = arith.constant 0.000000e+00 : f32
    %32 = vector.broadcast %cst_29 : f32 to vector<16x256xf32>
    %33 = arith.maximumf %31, %32 : vector<16x256xf32>
    %34 = arith.truncf %33 : vector<16x256xf32> to vector<16x256xbf16>
    %c0_30 = arith.constant 0 : index
    %c0_31 = arith.constant 0 : index
    %c0_32 = arith.constant 0 : index
    %35 = vector.load %arg5[%c0_30, %c0_31, %c0_32] : memref<16x256x256xbf16, #tpu.memory_space<vmem>>, vector<1x256x256xbf16>
    %36 = vector.shape_cast %35 : vector<1x256x256xbf16> to vector<256x256xbf16>
    %cst_33 = arith.constant dense<0.000000e+00> : vector<16x256xf32>
    %37 = tpu.matmul %34, %36, %cst_33 {dimension_numbers = #tpu.dot_dimension_numbers<[1], [0], [0], [1], [0, 0, 1, 1], [], []>} : vector<16x256xbf16>, vector<256x256xbf16>, vector<16x256xf32> -> vector<16x256xf32>
    %38 = arith.addf %24, %37 : vector<16x256xf32>
    %c1_34 = arith.constant 1 : index
    %c0_35 = arith.constant 0 : index
    %c0_36 = arith.constant 0 : index
    %39 = vector.load %arg1[%c1_34, %c0_35, %c0_36] : memref<15x16x15xbf16, #tpu.memory_space<vmem>>, vector<1x16x15xbf16>
    %40 = vector.shape_cast %39 : vector<1x16x15xbf16> to vector<16x15xbf16>
    %c0_37 = arith.constant 0 : index
    %c0_38 = arith.constant 0 : index
    %41 = vector.load %arg3[%c0_37, %c0_38] : memref<15x512xbf16, #tpu.memory_space<vmem>>, vector<15x512xbf16>
    %cst_39 = arith.constant dense<0.000000e+00> : vector<16x512xf32>
    %42 = tpu.matmul %40, %41, %cst_39 {dimension_numbers = #tpu.dot_dimension_numbers<[1], [0], [0], [1], [0, 0, 1, 1], [], []>} : vector<16x15xbf16>, vector<15x512xbf16>, vector<16x512xf32> -> vector<16x512xf32>
    %43 = vector.extract_strided_slice %42 {offsets = [0, 0], sizes = [16, 256], strides = [1, 1]} : vector<16x512xf32> to vector<16x256xf32>
    %44 = vector.extract_strided_slice %42 {offsets = [0, 256], sizes = [16, 256], strides = [1, 1]} : vector<16x512xf32> to vector<16x256xf32>
    %45 = arith.maximumf %43, %44 : vector<16x256xf32>
    %cst_40 = arith.constant 0.000000e+00 : f32
    %46 = vector.broadcast %cst_40 : f32 to vector<16x256xf32>
    %47 = arith.maximumf %45, %46 : vector<16x256xf32>
    %48 = arith.truncf %47 : vector<16x256xf32> to vector<16x256xbf16>
    %c1_41 = arith.constant 1 : index
    %c0_42 = arith.constant 0 : index
    %c0_43 = arith.constant 0 : index
    %49 = vector.load %arg5[%c1_41, %c0_42, %c0_43] : memref<16x256x256xbf16, #tpu.memory_space<vmem>>, vector<1x256x256xbf16>
    %50 = vector.shape_cast %49 : vector<1x256x256xbf16> to vector<256x256xbf16>
    %cst_44 = arith.constant dense<0.000000e+00> : vector<16x256xf32>
    %51 = tpu.matmul %48, %50, %cst_44 {dimension_numbers = #tpu.dot_dimension_numbers<[1], [0], [0], [1], [0, 0, 1, 1], [], []>} : vector<16x256xbf16>, vector<256x256xbf16>, vector<16x256xf32> -> vector<16x256xf32>
    %52 = arith.addf %38, %51 : vector<16x256xf32>
    %c2_45 = arith.constant 2 : index
    %c0_46 = arith.constant 0 : index
    %c0_47 = arith.constant 0 : index
    %53 = vector.load %arg1[%c2_45, %c0_46, %c0_47] : memref<15x16x15xbf16, #tpu.memory_space<vmem>>, vector<1x16x15xbf16>
    %54 = vector.shape_cast %53 : vector<1x16x15xbf16> to vector<16x15xbf16>
    %c0_48 = arith.constant 0 : index
    %c0_49 = arith.constant 0 : index
    %55 = vector.load %arg3[%c0_48, %c0_49] : memref<15x512xbf16, #tpu.memory_space<vmem>>, vector<15x512xbf16>
    %cst_50 = arith.constant dense<0.000000e+00> : vector<16x512xf32>
    %56 = tpu.matmul %54, %55, %cst_50 {dimension_numbers = #tpu.dot_dimension_numbers<[1], [0], [0], [1], [0, 0, 1, 1], [], []>} : vector<16x15xbf16>, vector<15x512xbf16>, vector<16x512xf32> -> vector<16x512xf32>
    %57 = vector.extract_strided_slice %56 {offsets = [0, 0], sizes = [16, 256], strides = [1, 1]} : vector<16x512xf32> to vector<16x256xf32>
    %58 = vector.extract_strided_slice %56 {offsets = [0, 256], sizes = [16, 256], strides = [1, 1]} : vector<16x512xf32> to vector<16x256xf32>
    %59 = arith.maximumf %57, %58 : vector<16x256xf32>
    %cst_51 = arith.constant 0.000000e+00 : f32
    %60 = vector.broadcast %cst_51 : f32 to vector<16x256xf32>
    %61 = arith.maximumf %59, %60 : vector<16x256xf32>
    %62 = arith.truncf %61 : vector<16x256xf32> to vector<16x256xbf16>
    %c2_52 = arith.constant 2 : index
    %c0_53 = arith.constant 0 : index
    %c0_54 = arith.constant 0 : index
    %63 = vector.load %arg5[%c2_52, %c0_53, %c0_54] : memref<16x256x256xbf16, #tpu.memory_space<vmem>>, vector<1x256x256xbf16>
    %64 = vector.shape_cast %63 : vector<1x256x256xbf16> to vector<256x256xbf16>
    %cst_55 = arith.constant dense<0.000000e+00> : vector<16x256xf32>
    %65 = tpu.matmul %62, %64, %cst_55 {dimension_numbers = #tpu.dot_dimension_numbers<[1], [0], [0], [1], [0, 0, 1, 1], [], []>} : vector<16x256xbf16>, vector<256x256xbf16>, vector<16x256xf32> -> vector<16x256xf32>
    %66 = arith.addf %52, %65 : vector<16x256xf32>
    %c3_56 = arith.constant 3 : index
    %c0_57 = arith.constant 0 : index
    %c0_58 = arith.constant 0 : index
    %67 = vector.load %arg1[%c3_56, %c0_57, %c0_58] : memref<15x16x15xbf16, #tpu.memory_space<vmem>>, vector<1x16x15xbf16>
    %68 = vector.shape_cast %67 : vector<1x16x15xbf16> to vector<16x15xbf16>
    %c0_59 = arith.constant 0 : index
    %c0_60 = arith.constant 0 : index
    %69 = vector.load %arg3[%c0_59, %c0_60] : memref<15x512xbf16, #tpu.memory_space<vmem>>, vector<15x512xbf16>
    %cst_61 = arith.constant dense<0.000000e+00> : vector<16x512xf32>
    %70 = tpu.matmul %68, %69, %cst_61 {dimension_numbers = #tpu.dot_dimension_numbers<[1], [0], [0], [1], [0, 0, 1, 1], [], []>} : vector<16x15xbf16>, vector<15x512xbf16>, vector<16x512xf32> -> vector<16x512xf32>
    %71 = vector.extract_strided_slice %70 {offsets = [0, 0], sizes = [16, 256], strides = [1, 1]} : vector<16x512xf32> to vector<16x256xf32>
    %72 = vector.extract_strided_slice %70 {offsets = [0, 256], sizes = [16, 256], strides = [1, 1]} : vector<16x512xf32> to vector<16x256xf32>
    %73 = arith.maximumf %71, %72 : vector<16x256xf32>
    %cst_62 = arith.constant 0.000000e+00 : f32
    %74 = vector.broadcast %cst_62 : f32 to vector<16x256xf32>
    %75 = arith.maximumf %73, %74 : vector<16x256xf32>
    %76 = arith.truncf %75 : vector<16x256xf32> to vector<16x256xbf16>
    %c3_63 = arith.constant 3 : index
    %c0_64 = arith.constant 0 : index
    %c0_65 = arith.constant 0 : index
    %77 = vector.load %arg5[%c3_63, %c0_64, %c0_65] : memref<16x256x256xbf16, #tpu.memory_space<vmem>>, vector<1x256x256xbf16>
    %78 = vector.shape_cast %77 : vector<1x256x256xbf16> to vector<256x256xbf16>
    %cst_66 = arith.constant dense<0.000000e+00> : vector<16x256xf32>
    %79 = tpu.matmul %76, %78, %cst_66 {dimension_numbers = #tpu.dot_dimension_numbers<[1], [0], [0], [1], [0, 0, 1, 1], [], []>} : vector<16x256xbf16>, vector<256x256xbf16>, vector<16x256xf32> -> vector<16x256xf32>
    %80 = arith.addf %66, %79 : vector<16x256xf32>
    %c4 = arith.constant 4 : index
    %c0_67 = arith.constant 0 : index
    %c0_68 = arith.constant 0 : index
    %81 = vector.load %arg1[%c4, %c0_67, %c0_68] : memref<15x16x15xbf16, #tpu.memory_space<vmem>>, vector<1x16x15xbf16>
    %82 = vector.shape_cast %81 : vector<1x16x15xbf16> to vector<16x15xbf16>
    %c0_69 = arith.constant 0 : index
    %c0_70 = arith.constant 0 : index
    %83 = vector.load %arg3[%c0_69, %c0_70] : memref<15x512xbf16, #tpu.memory_space<vmem>>, vector<15x512xbf16>
    %cst_71 = arith.constant dense<0.000000e+00> : vector<16x512xf32>
    %84 = tpu.matmul %82, %83, %cst_71 {dimension_numbers = #tpu.dot_dimension_numbers<[1], [0], [0], [1], [0, 0, 1, 1], [], []>} : vector<16x15xbf16>, vector<15x512xbf16>, vector<16x512xf32> -> vector<16x512xf32>
    %85 = vector.extract_strided_slice %84 {offsets = [0, 0], sizes = [16, 256], strides = [1, 1]} : vector<16x512xf32> to vector<16x256xf32>
    %86 = vector.extract_strided_slice %84 {offsets = [0, 256], sizes = [16, 256], strides = [1, 1]} : vector<16x512xf32> to vector<16x256xf32>
    %87 = arith.maximumf %85, %86 : vector<16x256xf32>
    %cst_72 = arith.constant 0.000000e+00 : f32
    %88 = vector.broadcast %cst_72 : f32 to vector<16x256xf32>
    %89 = arith.maximumf %87, %88 : vector<16x256xf32>
    %90 = arith.truncf %89 : vector<16x256xf32> to vector<16x256xbf16>
    %c4_73 = arith.constant 4 : index
    %c0_74 = arith.constant 0 : index
    %c0_75 = arith.constant 0 : index
    %91 = vector.load %arg5[%c4_73, %c0_74, %c0_75] : memref<16x256x256xbf16, #tpu.memory_space<vmem>>, vector<1x256x256xbf16>
    %92 = vector.shape_cast %91 : vector<1x256x256xbf16> to vector<256x256xbf16>
    %cst_76 = arith.constant dense<0.000000e+00> : vector<16x256xf32>
    %93 = tpu.matmul %90, %92, %cst_76 {dimension_numbers = #tpu.dot_dimension_numbers<[1], [0], [0], [1], [0, 0, 1, 1], [], []>} : vector<16x256xbf16>, vector<256x256xbf16>, vector<16x256xf32> -> vector<16x256xf32>
    %94 = arith.addf %80, %93 : vector<16x256xf32>
    %c5 = arith.constant 5 : index
    %c0_77 = arith.constant 0 : index
    %c0_78 = arith.constant 0 : index
    %95 = vector.load %arg1[%c5, %c0_77, %c0_78] : memref<15x16x15xbf16, #tpu.memory_space<vmem>>, vector<1x16x15xbf16>
    %96 = vector.shape_cast %95 : vector<1x16x15xbf16> to vector<16x15xbf16>
    %c0_79 = arith.constant 0 : index
    %c0_80 = arith.constant 0 : index
    %97 = vector.load %arg3[%c0_79, %c0_80] : memref<15x512xbf16, #tpu.memory_space<vmem>>, vector<15x512xbf16>
    %cst_81 = arith.constant dense<0.000000e+00> : vector<16x512xf32>
    %98 = tpu.matmul %96, %97, %cst_81 {dimension_numbers = #tpu.dot_dimension_numbers<[1], [0], [0], [1], [0, 0, 1, 1], [], []>} : vector<16x15xbf16>, vector<15x512xbf16>, vector<16x512xf32> -> vector<16x512xf32>
    %99 = vector.extract_strided_slice %98 {offsets = [0, 0], sizes = [16, 256], strides = [1, 1]} : vector<16x512xf32> to vector<16x256xf32>
    %100 = vector.extract_strided_slice %98 {offsets = [0, 256], sizes = [16, 256], strides = [1, 1]} : vector<16x512xf32> to vector<16x256xf32>
    %101 = arith.maximumf %99, %100 : vector<16x256xf32>
    %cst_82 = arith.constant 0.000000e+00 : f32
    %102 = vector.broadcast %cst_82 : f32 to vector<16x256xf32>
    %103 = arith.maximumf %101, %102 : vector<16x256xf32>
    %104 = arith.truncf %103 : vector<16x256xf32> to vector<16x256xbf16>
    %c5_83 = arith.constant 5 : index
    %c0_84 = arith.constant 0 : index
    %c0_85 = arith.constant 0 : index
    %105 = vector.load %arg5[%c5_83, %c0_84, %c0_85] : memref<16x256x256xbf16, #tpu.memory_space<vmem>>, vector<1x256x256xbf16>
    %106 = vector.shape_cast %105 : vector<1x256x256xbf16> to vector<256x256xbf16>
    %cst_86 = arith.constant dense<0.000000e+00> : vector<16x256xf32>
    %107 = tpu.matmul %104, %106, %cst_86 {dimension_numbers = #tpu.dot_dimension_numbers<[1], [0], [0], [1], [0, 0, 1, 1], [], []>} : vector<16x256xbf16>, vector<256x256xbf16>, vector<16x256xf32> -> vector<16x256xf32>
    %108 = arith.addf %94, %107 : vector<16x256xf32>
    %c6 = arith.constant 6 : index
    %c0_87 = arith.constant 0 : index
    %c0_88 = arith.constant 0 : index
    %109 = vector.load %arg1[%c6, %c0_87, %c0_88] : memref<15x16x15xbf16, #tpu.memory_space<vmem>>, vector<1x16x15xbf16>
    %110 = vector.shape_cast %109 : vector<1x16x15xbf16> to vector<16x15xbf16>
    %c0_89 = arith.constant 0 : index
    %c0_90 = arith.constant 0 : index
    %111 = vector.load %arg3[%c0_89, %c0_90] : memref<15x512xbf16, #tpu.memory_space<vmem>>, vector<15x512xbf16>
    %cst_91 = arith.constant dense<0.000000e+00> : vector<16x512xf32>
    %112 = tpu.matmul %110, %111, %cst_91 {dimension_numbers = #tpu.dot_dimension_numbers<[1], [0], [0], [1], [0, 0, 1, 1], [], []>} : vector<16x15xbf16>, vector<15x512xbf16>, vector<16x512xf32> -> vector<16x512xf32>
    %113 = vector.extract_strided_slice %112 {offsets = [0, 0], sizes = [16, 256], strides = [1, 1]} : vector<16x512xf32> to vector<16x256xf32>
    %114 = vector.extract_strided_slice %112 {offsets = [0, 256], sizes = [16, 256], strides = [1, 1]} : vector<16x512xf32> to vector<16x256xf32>
    %115 = arith.maximumf %113, %114 : vector<16x256xf32>
    %cst_92 = arith.constant 0.000000e+00 : f32
    %116 = vector.broadcast %cst_92 : f32 to vector<16x256xf32>
    %117 = arith.maximumf %115, %116 : vector<16x256xf32>
    %118 = arith.truncf %117 : vector<16x256xf32> to vector<16x256xbf16>
    %c6_93 = arith.constant 6 : index
    %c0_94 = arith.constant 0 : index
    %c0_95 = arith.constant 0 : index
    %119 = vector.load %arg5[%c6_93, %c0_94, %c0_95] : memref<16x256x256xbf16, #tpu.memory_space<vmem>>, vector<1x256x256xbf16>
    %120 = vector.shape_cast %119 : vector<1x256x256xbf16> to vector<256x256xbf16>
    %cst_96 = arith.constant dense<0.000000e+00> : vector<16x256xf32>
    %121 = tpu.matmul %118, %120, %cst_96 {dimension_numbers = #tpu.dot_dimension_numbers<[1], [0], [0], [1], [0, 0, 1, 1], [], []>} : vector<16x256xbf16>, vector<256x256xbf16>, vector<16x256xf32> -> vector<16x256xf32>
    %122 = arith.addf %108, %121 : vector<16x256xf32>
    %c7 = arith.constant 7 : index
    %c0_97 = arith.constant 0 : index
    %c0_98 = arith.constant 0 : index
    %123 = vector.load %arg1[%c7, %c0_97, %c0_98] : memref<15x16x15xbf16, #tpu.memory_space<vmem>>, vector<1x16x15xbf16>
    %124 = vector.shape_cast %123 : vector<1x16x15xbf16> to vector<16x15xbf16>
    %c0_99 = arith.constant 0 : index
    %c0_100 = arith.constant 0 : index
    %125 = vector.load %arg3[%c0_99, %c0_100] : memref<15x512xbf16, #tpu.memory_space<vmem>>, vector<15x512xbf16>
    %cst_101 = arith.constant dense<0.000000e+00> : vector<16x512xf32>
    %126 = tpu.matmul %124, %125, %cst_101 {dimension_numbers = #tpu.dot_dimension_numbers<[1], [0], [0], [1], [0, 0, 1, 1], [], []>} : vector<16x15xbf16>, vector<15x512xbf16>, vector<16x512xf32> -> vector<16x512xf32>
    %127 = vector.extract_strided_slice %126 {offsets = [0, 0], sizes = [16, 256], strides = [1, 1]} : vector<16x512xf32> to vector<16x256xf32>
    %128 = vector.extract_strided_slice %126 {offsets = [0, 256], sizes = [16, 256], strides = [1, 1]} : vector<16x512xf32> to vector<16x256xf32>
    %129 = arith.maximumf %127, %128 : vector<16x256xf32>
    %cst_102 = arith.constant 0.000000e+00 : f32
    %130 = vector.broadcast %cst_102 : f32 to vector<16x256xf32>
    %131 = arith.maximumf %129, %130 : vector<16x256xf32>
    %132 = arith.truncf %131 : vector<16x256xf32> to vector<16x256xbf16>
    %c7_103 = arith.constant 7 : index
    %c0_104 = arith.constant 0 : index
    %c0_105 = arith.constant 0 : index
    %133 = vector.load %arg5[%c7_103, %c0_104, %c0_105] : memref<16x256x256xbf16, #tpu.memory_space<vmem>>, vector<1x256x256xbf16>
    %134 = vector.shape_cast %133 : vector<1x256x256xbf16> to vector<256x256xbf16>
    %cst_106 = arith.constant dense<0.000000e+00> : vector<16x256xf32>
    %135 = tpu.matmul %132, %134, %cst_106 {dimension_numbers = #tpu.dot_dimension_numbers<[1], [0], [0], [1], [0, 0, 1, 1], [], []>} : vector<16x256xbf16>, vector<256x256xbf16>, vector<16x256xf32> -> vector<16x256xf32>
    %136 = arith.addf %122, %135 : vector<16x256xf32>
    %c8 = arith.constant 8 : index
    %c0_107 = arith.constant 0 : index
    %c0_108 = arith.constant 0 : index
    %137 = vector.load %arg1[%c8, %c0_107, %c0_108] : memref<15x16x15xbf16, #tpu.memory_space<vmem>>, vector<1x16x15xbf16>
    %138 = vector.shape_cast %137 : vector<1x16x15xbf16> to vector<16x15xbf16>
    %c0_109 = arith.constant 0 : index
    %c0_110 = arith.constant 0 : index
    %139 = vector.load %arg3[%c0_109, %c0_110] : memref<15x512xbf16, #tpu.memory_space<vmem>>, vector<15x512xbf16>
    %cst_111 = arith.constant dense<0.000000e+00> : vector<16x512xf32>
    %140 = tpu.matmul %138, %139, %cst_111 {dimension_numbers = #tpu.dot_dimension_numbers<[1], [0], [0], [1], [0, 0, 1, 1], [], []>} : vector<16x15xbf16>, vector<15x512xbf16>, vector<16x512xf32> -> vector<16x512xf32>
    %141 = vector.extract_strided_slice %140 {offsets = [0, 0], sizes = [16, 256], strides = [1, 1]} : vector<16x512xf32> to vector<16x256xf32>
    %142 = vector.extract_strided_slice %140 {offsets = [0, 256], sizes = [16, 256], strides = [1, 1]} : vector<16x512xf32> to vector<16x256xf32>
    %143 = arith.maximumf %141, %142 : vector<16x256xf32>
    %cst_112 = arith.constant 0.000000e+00 : f32
    %144 = vector.broadcast %cst_112 : f32 to vector<16x256xf32>
    %145 = arith.maximumf %143, %144 : vector<16x256xf32>
    %146 = arith.truncf %145 : vector<16x256xf32> to vector<16x256xbf16>
    %c8_113 = arith.constant 8 : index
    %c0_114 = arith.constant 0 : index
    %c0_115 = arith.constant 0 : index
    %147 = vector.load %arg5[%c8_113, %c0_114, %c0_115] : memref<16x256x256xbf16, #tpu.memory_space<vmem>>, vector<1x256x256xbf16>
    %148 = vector.shape_cast %147 : vector<1x256x256xbf16> to vector<256x256xbf16>
    %cst_116 = arith.constant dense<0.000000e+00> : vector<16x256xf32>
    %149 = tpu.matmul %146, %148, %cst_116 {dimension_numbers = #tpu.dot_dimension_numbers<[1], [0], [0], [1], [0, 0, 1, 1], [], []>} : vector<16x256xbf16>, vector<256x256xbf16>, vector<16x256xf32> -> vector<16x256xf32>
    %150 = arith.addf %136, %149 : vector<16x256xf32>
    %c9 = arith.constant 9 : index
    %c0_117 = arith.constant 0 : index
    %c0_118 = arith.constant 0 : index
    %151 = vector.load %arg1[%c9, %c0_117, %c0_118] : memref<15x16x15xbf16, #tpu.memory_space<vmem>>, vector<1x16x15xbf16>
    %152 = vector.shape_cast %151 : vector<1x16x15xbf16> to vector<16x15xbf16>
    %c0_119 = arith.constant 0 : index
    %c0_120 = arith.constant 0 : index
    %153 = vector.load %arg3[%c0_119, %c0_120] : memref<15x512xbf16, #tpu.memory_space<vmem>>, vector<15x512xbf16>
    %cst_121 = arith.constant dense<0.000000e+00> : vector<16x512xf32>
    %154 = tpu.matmul %152, %153, %cst_121 {dimension_numbers = #tpu.dot_dimension_numbers<[1], [0], [0], [1], [0, 0, 1, 1], [], []>} : vector<16x15xbf16>, vector<15x512xbf16>, vector<16x512xf32> -> vector<16x512xf32>
    %155 = vector.extract_strided_slice %154 {offsets = [0, 0], sizes = [16, 256], strides = [1, 1]} : vector<16x512xf32> to vector<16x256xf32>
    %156 = vector.extract_strided_slice %154 {offsets = [0, 256], sizes = [16, 256], strides = [1, 1]} : vector<16x512xf32> to vector<16x256xf32>
    %157 = arith.maximumf %155, %156 : vector<16x256xf32>
    %cst_122 = arith.constant 0.000000e+00 : f32
    %158 = vector.broadcast %cst_122 : f32 to vector<16x256xf32>
    %159 = arith.maximumf %157, %158 : vector<16x256xf32>
    %160 = arith.truncf %159 : vector<16x256xf32> to vector<16x256xbf16>
    %c9_123 = arith.constant 9 : index
    %c0_124 = arith.constant 0 : index
    %c0_125 = arith.constant 0 : index
    %161 = vector.load %arg5[%c9_123, %c0_124, %c0_125] : memref<16x256x256xbf16, #tpu.memory_space<vmem>>, vector<1x256x256xbf16>
    %162 = vector.shape_cast %161 : vector<1x256x256xbf16> to vector<256x256xbf16>
    %cst_126 = arith.constant dense<0.000000e+00> : vector<16x256xf32>
    %163 = tpu.matmul %160, %162, %cst_126 {dimension_numbers = #tpu.dot_dimension_numbers<[1], [0], [0], [1], [0, 0, 1, 1], [], []>} : vector<16x256xbf16>, vector<256x256xbf16>, vector<16x256xf32> -> vector<16x256xf32>
    %164 = arith.addf %150, %163 : vector<16x256xf32>
    %c10 = arith.constant 10 : index
    %c0_127 = arith.constant 0 : index
    %c0_128 = arith.constant 0 : index
    %165 = vector.load %arg1[%c10, %c0_127, %c0_128] : memref<15x16x15xbf16, #tpu.memory_space<vmem>>, vector<1x16x15xbf16>
    %166 = vector.shape_cast %165 : vector<1x16x15xbf16> to vector<16x15xbf16>
    %c0_129 = arith.constant 0 : index
    %c0_130 = arith.constant 0 : index
    %167 = vector.load %arg3[%c0_129, %c0_130] : memref<15x512xbf16, #tpu.memory_space<vmem>>, vector<15x512xbf16>
    %cst_131 = arith.constant dense<0.000000e+00> : vector<16x512xf32>
    %168 = tpu.matmul %166, %167, %cst_131 {dimension_numbers = #tpu.dot_dimension_numbers<[1], [0], [0], [1], [0, 0, 1, 1], [], []>} : vector<16x15xbf16>, vector<15x512xbf16>, vector<16x512xf32> -> vector<16x512xf32>
    %169 = vector.extract_strided_slice %168 {offsets = [0, 0], sizes = [16, 256], strides = [1, 1]} : vector<16x512xf32> to vector<16x256xf32>
    %170 = vector.extract_strided_slice %168 {offsets = [0, 256], sizes = [16, 256], strides = [1, 1]} : vector<16x512xf32> to vector<16x256xf32>
    %171 = arith.maximumf %169, %170 : vector<16x256xf32>
    %cst_132 = arith.constant 0.000000e+00 : f32
    %172 = vector.broadcast %cst_132 : f32 to vector<16x256xf32>
    %173 = arith.maximumf %171, %172 : vector<16x256xf32>
    %174 = arith.truncf %173 : vector<16x256xf32> to vector<16x256xbf16>
    %c10_133 = arith.constant 10 : index
    %c0_134 = arith.constant 0 : index
    %c0_135 = arith.constant 0 : index
    %175 = vector.load %arg5[%c10_133, %c0_134, %c0_135] : memref<16x256x256xbf16, #tpu.memory_space<vmem>>, vector<1x256x256xbf16>
    %176 = vector.shape_cast %175 : vector<1x256x256xbf16> to vector<256x256xbf16>
    %cst_136 = arith.constant dense<0.000000e+00> : vector<16x256xf32>
    %177 = tpu.matmul %174, %176, %cst_136 {dimension_numbers = #tpu.dot_dimension_numbers<[1], [0], [0], [1], [0, 0, 1, 1], [], []>} : vector<16x256xbf16>, vector<256x256xbf16>, vector<16x256xf32> -> vector<16x256xf32>
    %178 = arith.addf %164, %177 : vector<16x256xf32>
    %c11 = arith.constant 11 : index
    %c0_137 = arith.constant 0 : index
    %c0_138 = arith.constant 0 : index
    %179 = vector.load %arg1[%c11, %c0_137, %c0_138] : memref<15x16x15xbf16, #tpu.memory_space<vmem>>, vector<1x16x15xbf16>
    %180 = vector.shape_cast %179 : vector<1x16x15xbf16> to vector<16x15xbf16>
    %c0_139 = arith.constant 0 : index
    %c0_140 = arith.constant 0 : index
    %181 = vector.load %arg3[%c0_139, %c0_140] : memref<15x512xbf16, #tpu.memory_space<vmem>>, vector<15x512xbf16>
    %cst_141 = arith.constant dense<0.000000e+00> : vector<16x512xf32>
    %182 = tpu.matmul %180, %181, %cst_141 {dimension_numbers = #tpu.dot_dimension_numbers<[1], [0], [0], [1], [0, 0, 1, 1], [], []>} : vector<16x15xbf16>, vector<15x512xbf16>, vector<16x512xf32> -> vector<16x512xf32>
    %183 = vector.extract_strided_slice %182 {offsets = [0, 0], sizes = [16, 256], strides = [1, 1]} : vector<16x512xf32> to vector<16x256xf32>
    %184 = vector.extract_strided_slice %182 {offsets = [0, 256], sizes = [16, 256], strides = [1, 1]} : vector<16x512xf32> to vector<16x256xf32>
    %185 = arith.maximumf %183, %184 : vector<16x256xf32>
    %cst_142 = arith.constant 0.000000e+00 : f32
    %186 = vector.broadcast %cst_142 : f32 to vector<16x256xf32>
    %187 = arith.maximumf %185, %186 : vector<16x256xf32>
    %188 = arith.truncf %187 : vector<16x256xf32> to vector<16x256xbf16>
    %c11_143 = arith.constant 11 : index
    %c0_144 = arith.constant 0 : index
    %c0_145 = arith.constant 0 : index
    %189 = vector.load %arg5[%c11_143, %c0_144, %c0_145] : memref<16x256x256xbf16, #tpu.memory_space<vmem>>, vector<1x256x256xbf16>
    %190 = vector.shape_cast %189 : vector<1x256x256xbf16> to vector<256x256xbf16>
    %cst_146 = arith.constant dense<0.000000e+00> : vector<16x256xf32>
    %191 = tpu.matmul %188, %190, %cst_146 {dimension_numbers = #tpu.dot_dimension_numbers<[1], [0], [0], [1], [0, 0, 1, 1], [], []>} : vector<16x256xbf16>, vector<256x256xbf16>, vector<16x256xf32> -> vector<16x256xf32>
    %192 = arith.addf %178, %191 : vector<16x256xf32>
    %c12 = arith.constant 12 : index
    %c0_147 = arith.constant 0 : index
    %c0_148 = arith.constant 0 : index
    %193 = vector.load %arg1[%c12, %c0_147, %c0_148] : memref<15x16x15xbf16, #tpu.memory_space<vmem>>, vector<1x16x15xbf16>
    %194 = vector.shape_cast %193 : vector<1x16x15xbf16> to vector<16x15xbf16>
    %c0_149 = arith.constant 0 : index
    %c0_150 = arith.constant 0 : index
    %195 = vector.load %arg3[%c0_149, %c0_150] : memref<15x512xbf16, #tpu.memory_space<vmem>>, vector<15x512xbf16>
    %cst_151 = arith.constant dense<0.000000e+00> : vector<16x512xf32>
    %196 = tpu.matmul %194, %195, %cst_151 {dimension_numbers = #tpu.dot_dimension_numbers<[1], [0], [0], [1], [0, 0, 1, 1], [], []>} : vector<16x15xbf16>, vector<15x512xbf16>, vector<16x512xf32> -> vector<16x512xf32>
    %197 = vector.extract_strided_slice %196 {offsets = [0, 0], sizes = [16, 256], strides = [1, 1]} : vector<16x512xf32> to vector<16x256xf32>
    %198 = vector.extract_strided_slice %196 {offsets = [0, 256], sizes = [16, 256], strides = [1, 1]} : vector<16x512xf32> to vector<16x256xf32>
    %199 = arith.maximumf %197, %198 : vector<16x256xf32>
    %cst_152 = arith.constant 0.000000e+00 : f32
    %200 = vector.broadcast %cst_152 : f32 to vector<16x256xf32>
    %201 = arith.maximumf %199, %200 : vector<16x256xf32>
    %202 = arith.truncf %201 : vector<16x256xf32> to vector<16x256xbf16>
    %c12_153 = arith.constant 12 : index
    %c0_154 = arith.constant 0 : index
    %c0_155 = arith.constant 0 : index
    %203 = vector.load %arg5[%c12_153, %c0_154, %c0_155] : memref<16x256x256xbf16, #tpu.memory_space<vmem>>, vector<1x256x256xbf16>
    %204 = vector.shape_cast %203 : vector<1x256x256xbf16> to vector<256x256xbf16>
    %cst_156 = arith.constant dense<0.000000e+00> : vector<16x256xf32>
    %205 = tpu.matmul %202, %204, %cst_156 {dimension_numbers = #tpu.dot_dimension_numbers<[1], [0], [0], [1], [0, 0, 1, 1], [], []>} : vector<16x256xbf16>, vector<256x256xbf16>, vector<16x256xf32> -> vector<16x256xf32>
    %206 = arith.addf %192, %205 : vector<16x256xf32>
    %c13 = arith.constant 13 : index
    %c0_157 = arith.constant 0 : index
    %c0_158 = arith.constant 0 : index
    %207 = vector.load %arg1[%c13, %c0_157, %c0_158] : memref<15x16x15xbf16, #tpu.memory_space<vmem>>, vector<1x16x15xbf16>
    %208 = vector.shape_cast %207 : vector<1x16x15xbf16> to vector<16x15xbf16>
    %c0_159 = arith.constant 0 : index
    %c0_160 = arith.constant 0 : index
    %209 = vector.load %arg3[%c0_159, %c0_160] : memref<15x512xbf16, #tpu.memory_space<vmem>>, vector<15x512xbf16>
    %cst_161 = arith.constant dense<0.000000e+00> : vector<16x512xf32>
    %210 = tpu.matmul %208, %209, %cst_161 {dimension_numbers = #tpu.dot_dimension_numbers<[1], [0], [0], [1], [0, 0, 1, 1], [], []>} : vector<16x15xbf16>, vector<15x512xbf16>, vector<16x512xf32> -> vector<16x512xf32>
    %211 = vector.extract_strided_slice %210 {offsets = [0, 0], sizes = [16, 256], strides = [1, 1]} : vector<16x512xf32> to vector<16x256xf32>
    %212 = vector.extract_strided_slice %210 {offsets = [0, 256], sizes = [16, 256], strides = [1, 1]} : vector<16x512xf32> to vector<16x256xf32>
    %213 = arith.maximumf %211, %212 : vector<16x256xf32>
    %cst_162 = arith.constant 0.000000e+00 : f32
    %214 = vector.broadcast %cst_162 : f32 to vector<16x256xf32>
    %215 = arith.maximumf %213, %214 : vector<16x256xf32>
    %216 = arith.truncf %215 : vector<16x256xf32> to vector<16x256xbf16>
    %c13_163 = arith.constant 13 : index
    %c0_164 = arith.constant 0 : index
    %c0_165 = arith.constant 0 : index
    %217 = vector.load %arg5[%c13_163, %c0_164, %c0_165] : memref<16x256x256xbf16, #tpu.memory_space<vmem>>, vector<1x256x256xbf16>
    %218 = vector.shape_cast %217 : vector<1x256x256xbf16> to vector<256x256xbf16>
    %cst_166 = arith.constant dense<0.000000e+00> : vector<16x256xf32>
    %219 = tpu.matmul %216, %218, %cst_166 {dimension_numbers = #tpu.dot_dimension_numbers<[1], [0], [0], [1], [0, 0, 1, 1], [], []>} : vector<16x256xbf16>, vector<256x256xbf16>, vector<16x256xf32> -> vector<16x256xf32>
    %220 = arith.addf %206, %219 : vector<16x256xf32>
    %c14 = arith.constant 14 : index
    %c0_167 = arith.constant 0 : index
    %c0_168 = arith.constant 0 : index
    %221 = vector.load %arg1[%c14, %c0_167, %c0_168] : memref<15x16x15xbf16, #tpu.memory_space<vmem>>, vector<1x16x15xbf16>
    %222 = vector.shape_cast %221 : vector<1x16x15xbf16> to vector<16x15xbf16>
    %c0_169 = arith.constant 0 : index
    %c0_170 = arith.constant 0 : index
    %223 = vector.load %arg3[%c0_169, %c0_170] : memref<15x512xbf16, #tpu.memory_space<vmem>>, vector<15x512xbf16>
    %cst_171 = arith.constant dense<0.000000e+00> : vector<16x512xf32>
    %224 = tpu.matmul %222, %223, %cst_171 {dimension_numbers = #tpu.dot_dimension_numbers<[1], [0], [0], [1], [0, 0, 1, 1], [], []>} : vector<16x15xbf16>, vector<15x512xbf16>, vector<16x512xf32> -> vector<16x512xf32>
    %225 = vector.extract_strided_slice %224 {offsets = [0, 0], sizes = [16, 256], strides = [1, 1]} : vector<16x512xf32> to vector<16x256xf32>
    %226 = vector.extract_strided_slice %224 {offsets = [0, 256], sizes = [16, 256], strides = [1, 1]} : vector<16x512xf32> to vector<16x256xf32>
    %227 = arith.maximumf %225, %226 : vector<16x256xf32>
    %cst_172 = arith.constant 0.000000e+00 : f32
    %228 = vector.broadcast %cst_172 : f32 to vector<16x256xf32>
    %229 = arith.maximumf %227, %228 : vector<16x256xf32>
    %230 = arith.truncf %229 : vector<16x256xf32> to vector<16x256xbf16>
    %c14_173 = arith.constant 14 : index
    %c0_174 = arith.constant 0 : index
    %c0_175 = arith.constant 0 : index
    %231 = vector.load %arg5[%c14_173, %c0_174, %c0_175] : memref<16x256x256xbf16, #tpu.memory_space<vmem>>, vector<1x256x256xbf16>
    %232 = vector.shape_cast %231 : vector<1x256x256xbf16> to vector<256x256xbf16>
    %cst_176 = arith.constant dense<0.000000e+00> : vector<16x256xf32>
    %233 = tpu.matmul %230, %232, %cst_176 {dimension_numbers = #tpu.dot_dimension_numbers<[1], [0], [0], [1], [0, 0, 1, 1], [], []>} : vector<16x256xbf16>, vector<256x256xbf16>, vector<16x256xf32> -> vector<16x256xf32>
    %234 = arith.addf %220, %233 : vector<16x256xf32>
    %c0_177 = arith.constant 0 : index
    %c0_178 = arith.constant 0 : index
    %235 = vector.load %arg6[%c0_177, %c0_178] : memref<1x256xf32, #tpu.memory_space<vmem>>, vector<1x256xf32>
    %236 = vector.broadcast %235 : vector<1x256xf32> to vector<16x256xf32>
    %237 = arith.addf %234, %236 : vector<16x256xf32>
    %cst_179 = arith.constant 0.000000e+00 : f32
    %238 = vector.broadcast %cst_179 : f32 to vector<16x256xf32>
    %239 = arith.maximumf %237, %238 : vector<16x256xf32>
    %240 = arith.truncf %239 : vector<16x256xf32> to vector<16x256xbf16>
    %c0_180 = arith.constant 0 : index
    %c0_181 = arith.constant 0 : index
    %241 = vector.load %arg7[%c0_180, %c0_181] : memref<256x128xbf16, #tpu.memory_space<vmem>>, vector<256x128xbf16>
    %cst_182 = arith.constant dense<0.000000e+00> : vector<16x128xf32>
    %242 = tpu.matmul %240, %241, %cst_182 {dimension_numbers = #tpu.dot_dimension_numbers<[1], [0], [0], [1], [0, 0, 1, 1], [], []>} : vector<16x256xbf16>, vector<256x128xbf16>, vector<16x128xf32> -> vector<16x128xf32>
    %c0_183 = arith.constant 0 : index
    %c0_184 = arith.constant 0 : index
    %243 = vector.load %arg8[%c0_183, %c0_184] : memref<1x128xf32, #tpu.memory_space<vmem>>, vector<1x128xf32>
    %244 = vector.broadcast %243 : vector<1x128xf32> to vector<16x128xf32>
    %245 = arith.addf %242, %244 : vector<16x128xf32>
    %c0_185 = arith.constant 0 : index
    %c0_186 = arith.constant 0 : index
    %246 = vector.load %arg9[%c0_185, %c0_186] : memref<16x128xf32, #tpu.memory_space<vmem>>, vector<16x128xf32>
    tpu.vector_store %arg9[%c0_185, %c0_186], %245 {strides = array<i32>} : memref<16x128xf32, #tpu.memory_space<vmem>>, vector<16x128xf32>,
    return
  }
  func.func @transform_0(%arg0: i32) -> (i32, i32, i32) {
    %c0_i32 = arith.constant 0 : i32
    %c0_i32_0 = arith.constant 0 : i32
    %c0_i32_1 = arith.constant 0 : i32
    return %c0_i32, %arg0, %c0_i32_0 : i32, i32, i32
  }
  func.func @transform_1(%arg0: i32) -> (i32, i32, i32) {
    %c0_i32 = arith.constant 0 : i32
    %c0_i32_0 = arith.constant 0 : i32
    %c0_i32_1 = arith.constant 0 : i32
    return %c0_i32, %arg0, %c0_i32_0 : i32, i32, i32
  }
  func.func @transform_2(%arg0: i32) -> (i32, i32) {
    %c0_i32 = arith.constant 0 : i32
    %c0_i32_0 = arith.constant 0 : i32
    %c0_i32_1 = arith.constant 0 : i32
    return %c0_i32, %c0_i32_0 : i32, i32
  }
  func.func @transform_3(%arg0: i32) -> (i32, i32) {
    %c0_i32 = arith.constant 0 : i32
    %c0_i32_0 = arith.constant 0 : i32
    %c0_i32_1 = arith.constant 0 : i32
    return %c0_i32, %c0_i32_0 : i32, i32
  }
  func.func @transform_4(%arg0: i32) -> (i32, i32, i32) {
    %c0_i32 = arith.constant 0 : i32
    %c0_i32_0 = arith.constant 0 : i32
    %c0_i32_1 = arith.constant 0 : i32
    %c0_i32_2 = arith.constant 0 : i32
    return %c0_i32, %c0_i32_0, %c0_i32_1 : i32, i32, i32
  }
  func.func @transform_5(%arg0: i32) -> (i32, i32) {
    %c0_i32 = arith.constant 0 : i32
    %c0_i32_0 = arith.constant 0 : i32
    %c0_i32_1 = arith.constant 0 : i32
    return %c0_i32, %c0_i32_0 : i32, i32
  }
  func.func @transform_6(%arg0: i32) -> (i32, i32) {
    %c0_i32 = arith.constant 0 : i32
    %c0_i32_0 = arith.constant 0 : i32
    %c0_i32_1 = arith.constant 0 : i32
    return %c0_i32, %c0_i32_0 : i32, i32
  }
  func.func @transform_7(%arg0: i32) -> (i32, i32) {
    %c0_i32 = arith.constant 0 : i32
    %c0_i32_0 = arith.constant 0 : i32
    %c0_i32_1 = arith.constant 0 : i32
    return %c0_i32, %c0_i32_0 : i32, i32
  }
  func.func @transform_8(%arg0: i32) -> (i32, i32) {
    %c0_i32 = arith.constant 0 : i32
    %c0_i32_0 = arith.constant 0 : i32
    return %arg0, %c0_i32 : i32, i32
  }
}

</mosaic_0001>

<bundles_post_ra>
// kernel: tpu_custom_call.1
= control target key start
LH: loop header
LB: loop body
LE: loop exit
PB: predicated region body
PF: predicated region fallthrough
CT: control target
= control target key end

     0   :  { %13 = vsyncpa [#allocation3], 0  ;;  %s8406_s0 = inlined_call_operand.hbm [shape: bf16[15,16,15], index: 0, kind: input, shape index: {}]   ;;  %s8407_s1 = inlined_call_operand.hbm [shape: bf16[4,16,106], index: 1, kind: input, shape index: {}]   ;;  %s8408_s2 = inlined_call_operand.hbm [shape: bf16[15,512], index: 2, kind: input, shape index: {}]   ;;  %s8409_s3 = inlined_call_operand.hbm [shape: bf16[106,256], index: 3, kind: input, shape index: {}]   ;;  %s8410_s4 = inlined_call_operand.hbm [shape: bf16[16,256,256], index: 4, kind: input, shape index: {}]   ;;  %s8411_s5 = inlined_call_operand.hbm [shape: f32[1,256], index: 5, kind: input, shape index: {}]   ;;  %s8412_s6 = inlined_call_operand.hbm [shape: bf16[256,128], index: 6, kind: input, shape index: {}]   ;;  %s8413_s7 = inlined_call_operand.hbm [shape: f32[1,128], index: 7, kind: input, shape index: {}]   ;;  %s8414_s8 = inlined_call_operand.hbm [shape: f32[16,128], index: 8, kind: output, shape index: {}]  }
   0x1   :  { %14 = vsyncpa [#allocation6], 0 }
   0x2   :  { %15 = vsyncpa [#allocation9], 0 }
   0x3   :  { %16 = vsyncpa [#allocation12], 0 }
   0x4   :  { %17 = vsyncpa [#allocation15], 0 }
   0x5   :  { %18 = vsyncpa [#allocation4], 0  ;;  %s7895_s27 = smov [#allocation5]   ;;  %s7896_s29 = smov [#allocation8]  }
   0x6   :  { %s36_s28 = sshll.u32 %s7895_s27, 4  ;;  %s60_s30 = sshll.u32 %s7896_s29, 4  ;;  %s37_s28 = int_to_ptr.vmem [resolvable:$true] %s36_s28  ;;  %s7957_s30 = int_to_ptr.vmem [resolvable:$true] %s60_s30 }
   0x7   :  { %s7685_s11 = scalar_lea.hbm %s8407_s1, 512 }
   0x8   :  { %p7686_p0 = scmp.ne.s32.totalorder %s8407_s1, %s7685_s11  ;;  %p7689_p1 = scmp.lt.u32.totalorder %s7685_s11, %s8407_s1 }
   0xa   :  { %p7691_p2 = pnand %p7689_p1, %p7686_p0 }
   0xc   :  { %7694 = shalt.err (!%p7691_p2)
}
   0xd   :  { %s7695_s16 = scalar_lea.vmem %s37_s28, 512  ;;  %p7700_p4 = scmp.lt.s32.totalorder %s37_s28, %s37_s28 }
   0xe   :  { %p7696_p3 = scmp.ne.s32.totalorder %s37_s28, %s7695_s16  ;;  %p7701_p5 = scmp.lt.s32.totalorder %s7695_s16, %s7695_s16 }
  0x10   :  { %p7702_p6 = por %p7701_p5, %p7700_p4 }
  0x12   :  { %p7703_p7 = pnand %p7702_p6, %p7696_p3 }
  0x14   :  { %7706 = shalt.err (!%p7703_p7)
}
  0x15   :  { %s7897_s17 = smov 64   ;;  %s7898_s18 = smov 4  }
  0x16   :  { %42 = dma.hbm_to_vmem [thread:$0]  %s8407_s1, 512, %s37_s28, [#allocation6], %s7897_s17, %s7897_s17, %s7898_s18  }
  0x17   :  { %s7707_s23 = scalar_lea.hbm %s8409_s3, 1792 }
  0x18   :  { %p7708_p8 = scmp.ne.s32.totalorder %s8409_s3, %s7707_s23  ;;  %p7711_p9 = scmp.lt.u32.totalorder %s7707_s23, %s8409_s3 }
  0x1a   :  { %p7713_p10 = pnand %p7711_p9, %p7708_p8 }
  0x1c   :  { %7716 = shalt.err (!%p7713_p10)
}
  0x1d   :  { %s7717_s29 = scalar_lea.vmem %s7957_s30, 1792  ;;  %p7722_p12 = scmp.lt.s32.totalorder %s7957_s30, %s7957_s30 }
  0x1e   :  { %p7718_p11 = scmp.ne.s32.totalorder %s7957_s30, %s7717_s29  ;;  %p7723_p13 = scmp.lt.s32.totalorder %s7717_s29, %s7717_s29 }
  0x20   :  { %p7724_p0 = por %p7723_p13, %p7722_p12 }
  0x22   :  { %p7725_p1 = pnand %p7724_p0, %p7718_p11 }
  0x24   :  { %7728 = shalt.err (!%p7725_p1)
}
  0x25   :  { %s7899_s1 = smov 128   ;;  %s7900_s28 = smov 8  }
  0x26   :  { %66 = dma.hbm_to_vmem [thread:$0]  %s8409_s3, 1792, %s7957_s30, [#allocation9], %s7899_s1, %s7899_s1, %s7900_s28  }
  0x27   :  { %s7901_s11 = smov [#allocation11]   ;;  %s7902_s13 = smov [#allocation2]  }
  0x28   :  { %s85_s12 = sshll.u32 %s7901_s11, 4  ;;  %s24_s14 = sshll.u32 %s7902_s13, 4  ;;  %s86_s12 = int_to_ptr.vmem [resolvable:$true] %s85_s12  ;;  %s7994_s14 = int_to_ptr.vmem [resolvable:$true] %s24_s14 }
  0x29   :  { %s7729_s19 = scalar_lea.hbm %s8411_s5, 32 }
  0x2a   :  { %p7730_p2 = scmp.ne.s32.totalorder %s8411_s5, %s7729_s19  ;;  %p7733_p3 = scmp.lt.u32.totalorder %s7729_s19, %s8411_s5 }
  0x2c   :  { %p7735_p4 = pnand %p7733_p3, %p7730_p2 }
  0x2e   :  { %7738 = shalt.err (!%p7735_p4)
}
  0x2f   :  { %s7739_s3 = scalar_lea.vmem %s86_s12, 32  ;;  %p7744_p6 = scmp.lt.s32.totalorder %s86_s12, %s86_s12 }
  0x30   :  { %p7740_p5 = scmp.ne.s32.totalorder %s86_s12, %s7739_s3  ;;  %p7745_p7 = scmp.lt.s32.totalorder %s7739_s3, %s7739_s3 }
  0x32   :  { %p7746_p8 = por %p7745_p7, %p7744_p6 }
  0x34   :  { %p7747_p9 = pnand %p7746_p8, %p7740_p5 }
  0x36   :  { %7750 = shalt.err (!%p7747_p9)
}
  0x37   :  { %88 = dma.hbm_to_vmem [thread:$0]  %s8411_s5, 32, %s86_s12, [#allocation12]  }
  0x38   :  { %s7751_s27 = scalar_lea.hbm %s8406_s0, 1920 }
  0x39   :  { %p7752_p10 = scmp.ne.s32.totalorder %s8406_s0, %s7751_s27  ;;  %p7755_p11 = scmp.lt.u32.totalorder %s7751_s27, %s8406_s0 }
  0x3b   :  { %p7757_p12 = pnand %p7755_p11, %p7752_p10 }
  0x3d   :  { %7760 = shalt.err (!%p7757_p12)
}
  0x3e   :  { %s7761_s13 = scalar_lea.vmem %s7994_s14, 1920  ;;  %p7766_p0 = scmp.lt.s32.totalorder %s7994_s14, %s7994_s14 }
  0x3f   :  { %p7762_p13 = scmp.ne.s32.totalorder %s7994_s14, %s7761_s13  ;;  %p7767_p1 = scmp.lt.s32.totalorder %s7761_s13, %s7761_s13 }
  0x41   :  { %p7768_p2 = por %p7767_p1, %p7766_p0 }
  0x43   :  { %p7769_p3 = pnand %p7768_p2, %p7762_p13 }
  0x45   :  { %7772 = shalt.err (!%p7769_p3)
}
  0x46   :  { %30 = dma.hbm_to_vmem [thread:$0]  %s8406_s0, 1920, %s7994_s14, [#allocation3], %s7897_s17, %s7897_s17, %s7898_s18  }
  0x47   :  { %s7903_s15 = smov [#allocation7]   ;;  %s7773_s21 = scalar_lea.hbm %s8408_s2, 512 }
  0x48   :  { %s48_s16 = sshll.u32 %s7903_s15, 4  ;;  %p7774_p4 = scmp.ne.s32.totalorder %s8408_s2, %s7773_s21  ;;  %s49_s16 = int_to_ptr.vmem [resolvable:$true] %s48_s16 }
  0x49   :  { %p7777_p5 = scmp.lt.u32.totalorder %s7773_s21, %s8408_s2 }
  0x4b   :  { %p7779_p6 = pnand %p7777_p5, %p7774_p4 }
  0x4d   :  { %7782 = shalt.err (!%p7779_p6)
}
  0x4e   :  { %s7783_s24 = scalar_lea.vmem %s49_s16, 512  ;;  %p7788_p8 = scmp.lt.s32.totalorder %s49_s16, %s49_s16 }
  0x4f   :  { %p7784_p7 = scmp.ne.s32.totalorder %s49_s16, %s7783_s24  ;;  %p7789_p9 = scmp.lt.s32.totalorder %s7783_s24, %s7783_s24 }
  0x51   :  { %p7790_p10 = por %p7789_p9, %p7788_p8 }
  0x53   :  { %p7791_p11 = pnand %p7790_p10, %p7784_p7 }
  0x55   :  { %7794 = shalt.err (!%p7791_p11)
}
  0x56   :  { %s7904_s0 = smov 256   ;;  %s7905_s14 = smov 16  }
  0x57   :  { %54 = dma.hbm_to_vmem [thread:$0]  %s8408_s2, 512, %s49_s16, [#allocation6], %s7904_s0, %s7904_s0, %s7905_s14  }
  0x58   :  { %s7906_s27 = smov [#allocation10]   ;;  %s7907_s9 = smov [#allocation13]  }
  0x59   :  { %s72_s29 = sshll.u32 %s7906_s27, 4  ;;  %s94_s10 = sshll.u32 %s7907_s9, 4  ;;  %s73_s29 = int_to_ptr.vmem [resolvable:$true] %s72_s29  ;;  %s95_s10 = int_to_ptr.vmem [resolvable:$true] %s94_s10 }
  0x5a   :  { %s7795_s5 = scalar_lea.hbm %s8410_s4, 65536 }
  0x5b   :  { %p7796_p12 = scmp.ne.s32.totalorder %s8410_s4, %s7795_s5  ;;  %p7799_p13 = scmp.lt.u32.totalorder %s7795_s5, %s8410_s4 }
  0x5d   :  { %p7801_p0 = pnand %p7799_p13, %p7796_p12 }
  0x5f   :  { %7804 = shalt.err (!%p7801_p0)
}
  0x60   :  { %s7805_s2 = scalar_lea.vmem %s73_s29, 65536  ;;  %p7810_p2 = scmp.lt.s32.totalorder %s73_s29, %s73_s29 }
  0x61   :  { %p7806_p1 = scmp.ne.s32.totalorder %s73_s29, %s7805_s2  ;;  %p7811_p3 = scmp.lt.s32.totalorder %s7805_s2, %s7805_s2 }
  0x63   :  { %p7812_p4 = por %p7811_p3, %p7810_p2 }
  0x65   :  { %p7813_p5 = pnand %p7812_p4, %p7806_p1 }
  0x67   :  { %7816 = shalt.err (!%p7813_p5)
}
  0x68   :  { %78 = dma.hbm_to_vmem [thread:$0]  %s8410_s4, 65536, %s73_s29, [#allocation9], %s7899_s1, %s7899_s1, %s7900_s28  }
  0x69   :  { %s7817_s3 = scalar_lea.hbm %s8412_s6, 2048 }
  0x6a   :  { %p7818_p6 = scmp.ne.s32.totalorder %s8412_s6, %s7817_s3  ;;  %p7821_p7 = scmp.lt.u32.totalorder %s7817_s3, %s8412_s6 }
  0x6c   :  { %p7823_p8 = pnand %p7821_p7, %p7818_p6 }
  0x6e   :  { %7826 = shalt.err (!%p7823_p8)
}
  0x6f   :  { %s7827_s25 = scalar_lea.vmem %s95_s10, 2048  ;;  %p7832_p10 = scmp.lt.s32.totalorder %s95_s10, %s95_s10 }
  0x70   :  { %p7828_p9 = scmp.ne.s32.totalorder %s95_s10, %s7827_s25  ;;  %p7833_p11 = scmp.lt.s32.totalorder %s7827_s25, %s7827_s25 }
  0x72   :  { %p7834_p12 = por %p7833_p11, %p7832_p10 }
  0x74   :  { %p7835_p13 = pnand %p7834_p12, %p7828_p9 }
  0x76   :  { %7838 = shalt.err (!%p7835_p13)
}
  0x77   :  { %100 = dma.hbm_to_vmem [thread:$0]  %s8412_s6, 2048, %s95_s10, [#allocation12], %s7897_s17, %s7897_s17, %s7898_s18  }
  0x78   :  { %s7908_s27 = smov [#allocation14]   ;;  %s7839_s13 = scalar_lea.hbm %s8413_s7, 16 }
  0x79   :  { %s107_s29 = sshll.u32 %s7908_s27, 4  ;;  %p7840_p0 = scmp.ne.s32.totalorder %s8413_s7, %s7839_s13  ;;  %s108_s29 = int_to_ptr.vmem [resolvable:$true] %s107_s29 }
  0x7a   :  { %p7843_p1 = scmp.lt.u32.totalorder %s7839_s13, %s8413_s7 }
  0x7c   :  { %p7845_p2 = pnand %p7843_p1, %p7840_p0 }
  0x7e   :  { %7848 = shalt.err (!%p7845_p2)
}
  0x7f   :  { %s7849_s20 = scalar_lea.vmem %s108_s29, 16  ;;  %s7853_s6 = scalar_lea.vmem %s108_s29, 32 }
  0x80   :  { %p7850_p3 = scmp.ne.s32.totalorder %s108_s29, %s7849_s20  ;;  %p7854_p4 = scmp.lt.s32.totalorder %s108_s29, %s108_s29 }
  0x81   :  { %p7855_p5 = scmp.lt.s32.totalorder %s7853_s6, %s7849_s20 }
  0x83   :  { %p7856_p6 = por %p7855_p5, %p7854_p4 }
  0x85   :  { %p7857_p7 = pnand %p7856_p6, %p7850_p3 }
  0x87   :  { %7860 = shalt.err (!%p7857_p7)
}
  0x88   :  { %110 = dma.hbm_to_vmem [thread:$0]  %s8413_s7, 16, %s108_s29, [#allocation15]  }
  0x89   :  { %7883 = dma.done.wait [#allocation3], 1920  }
  0x8a   :  { %7884 = vsyncadd [#allocation3], 4294965376 }
  0x8b   :  { %7885 = dma.done.wait [#allocation6], 1024  }
  0x8c   :  { %7886 = vsyncadd [#allocation6], 4294966272 }
  0x8d   :  { %7887 = dma.done.wait [#allocation9], 67328  }
  0x8e   :  { %7888 = vsyncadd [#allocation9], 4294899968 }
  0x8f   :  { %7889 = dma.done.wait [#allocation12], 2080  }
  0x90   :  { %7890 = vsyncadd [#allocation12], 4294965216 }
  0x91   :  { %7891 = dma.done.wait [#allocation15], 16  }
  0x92   :  { %7892 = vsyncadd [#allocation15], 4294967280  ;;  %v7909_v0 = vmov 0   ;;  %v6855_v1 = vld [vmem:[#allocation8 + $0x4] ss:$8 sps:$4 sm:$0xff]   ;;  %vm229_vm0 = vcmask 1044480  }
  0x93   :  { %268 = vmatprep.mubr.bf16.mxu0 %v7909_v0  ;;  %322 = vmatprep.mubr.bf16.mxu1 %v7909_v0  ;;  %v6857_v2 = vld [vmem:[#allocation8] ss:$8 sps:$4 sm:$0xff]   ;;  %v6858_v3 = vld [vmem:[#allocation8 + $0x14] ss:$8 sps:$4 sm:$0xff]   ;;  %v6860_v4 = vld [vmem:[#allocation8 + $0x10] ss:$8 sps:$4 sm:$0xff]  }
  0x94   :  { %236 = vmatprep.subr.bf16.mxu0 %v6855_v1  ;;  %290 = vmatprep.subr.bf16.mxu1 %v6855_v1  ;;  %v6861_v5 = vld [vmem:[#allocation8 + $0x24] ss:$8 sps:$4 sm:$0xff]   ;;  %v6863_v6 = vld [vmem:[#allocation8 + $0x20] ss:$8 sps:$4 sm:$0xff]   ;;  %v6864_v7 = vld [vmem:[#allocation8 + $0x34] ss:$8 sps:$4 sm:$0xff]  }
  0x95   :  { %237 = vmatpush1.bf16.msra.mxu0 %v6857_v2  ;;  %291 = vmatpush1.bf16.msra.mxu1 %v6857_v2  ;;  %v6866_v8 = vld [vmem:[#allocation8 + $0x30] ss:$8 sps:$4 sm:$0xff]   ;;  %v6867_v9 = vld [vmem:[#allocation8 + $0x44] ss:$8 sps:$4 sm:$0xff]   ;;  %v6869_v10 = vld [vmem:[#allocation8 + $0x40] ss:$8 sps:$4 sm:$0xff]  }
  0x96   :  { %238 = vmatprep.subr.bf16.mxu0 %v6858_v3  ;;  %292 = vmatprep.subr.bf16.mxu1 %v6858_v3  ;;  %v6870_v11 = vld [vmem:[#allocation8 + $0x54] ss:$8 sps:$4 sm:$0xff]   ;;  %v6872_v12 = vld [vmem:[#allocation8 + $0x50] ss:$8 sps:$4 sm:$0xff]   ;;  %v6876_v16 = vld [vmem:[#allocation5] sm:$0xff]   ;;  %vm225_vm1 = vcmask 867328  }
  0x97   :  { %v6873_v13 = vld [vmem:[#allocation8 + $0x64] ss:$8 sps:$4 sm:$0x1f]   ;;  %v6875_v14 = vld [vmem:[#allocation8 + $0x60] ss:$8 sps:$4 sm:$0x1f]  }
  0x98   :  { %v231_v15 = vsel %vm229_vm0, %v6875_v14, 0  ;;  %v6877_v17 = vld [vmem:[#allocation5 + $0x8] sm:$0xff]   ;;  %vm523_vm2 = vcmask 1046528   ;;  %v6880_v18 = vld [vmem:[#allocation7 + $0x4] ss:$16 sps:$4 sm:$0xff]   ;;  %vm524_vm3 = vcmask 1047552  }
  0x99   :  { %239 = vmatpush1.bf16.msra.mxu0 %v6860_v4  ;;  %293 = vmatpush1.bf16.msra.mxu1 %v6860_v4  ;;  %v7910_v19 = vmov 65535   ;;  %v6882_v21 = vld [vmem:[#allocation7 + $0xc] ss:$16 sps:$4 sm:$0xff]   ;;  %v6884_v23 = vld [vmem:[#allocation7] ss:$16 sps:$4 sm:$0xff]   ;;  %vm519_vm4 = vcmask 121856  }
  0x9a   :  { %240 = vmatprep.subr.bf16.mxu0 %v6861_v5  ;;  %294 = vmatprep.subr.bf16.mxu1 %v6861_v5  ;;  %v525_v20 = vsel %vm523_vm2, 4294967295, %v7910_v19  ;;  %v6885_v24 = vld [vmem:[#allocation7 + $0x8] ss:$16 sps:$4 sm:$0xff]   ;;  %v6878_v25 = vld [vmem:[#allocation5 + $0x10] sm:$0xff]   ;;  %v6892_v34 = vld [vmem:[#allocation10 + $0x14] ss:$8 sps:$4 sm:$0xff]  }
  0x9b   :  { %v526_v22 = vsel %vm524_vm3, %v525_v20, 0  ;;  %v6879_v26 = vld [vmem:[#allocation5 + $0x18] sm:$0xff]   ;;  %v6886_v32 = vld [vmem:[#allocation2] sm:$0xff]   ;;  %s7911_s7 = smov [#allocation16]  }
  0x9c   :  { %v8093_v27 = vand.u32 %v6880_v18, %v526_v22  ;;  %v8095_v28 = vand.u32 %v6882_v21, %v526_v22  ;;  %v8097_v29 = vand.u32 %v6884_v23, %v526_v22  ;;  %v8099_v30 = vand.u32 %v6885_v24, %v526_v22  ;;  %v6889_v31 = vld [vmem:[#allocation10 + $0x4] ss:$8 sps:$4 sm:$0xff]   ;;  %v6887_v33 = vld [vmem:[#allocation10] ss:$8 sps:$4 sm:$0xff]   ;;  %v6890_v35 = vld [vmem:[#allocation10 + $0x10] ss:$8 sps:$4 sm:$0xff]  }
  0x9d   :  { %241 = vmatpush1.bf16.msra.mxu0 %v6863_v6  ;;  %295 = vmatpush1.bf16.msra.mxu1 %v6863_v6  ;;  %v6895_v36 = vld [vmem:[#allocation10 + $0x24] ss:$8 sps:$4 sm:$0xff]   ;;  %v6893_v37 = vld [vmem:[#allocation10 + $0x20] ss:$8 sps:$4 sm:$0xff]   ;;  %v6898_v38 = vld [vmem:[#allocation10 + $0x34] ss:$8 sps:$4 sm:$0xff]  }
  0x9e   :  { %242 = vmatprep.subr.bf16.mxu0 %v6864_v7  ;;  %296 = vmatprep.subr.bf16.mxu1 %v6864_v7  ;;  %v6896_v39 = vld [vmem:[#allocation10 + $0x30] ss:$8 sps:$4 sm:$0xff]   ;;  %v6901_v40 = vld [vmem:[#allocation10 + $0x44] ss:$8 sps:$4 sm:$0xff]   ;;  %v6899_v41 = vld [vmem:[#allocation10 + $0x40] ss:$8 sps:$4 sm:$0xff]  }
  0x9f   :  { %v6904_v42 = vld [vmem:[#allocation10 + $0x54] ss:$8 sps:$4 sm:$0xff]   ;;  %v6902_v43 = vld [vmem:[#allocation10 + $0x50] ss:$8 sps:$4 sm:$0xff]   ;;  %v6905_v44 = vld [vmem:[#allocation10 + $0x60] ss:$8 sps:$4 sm:$0xff]  }
  0xa0   :  { %v6907_v45 = vld [vmem:[#allocation10 + $0x64] ss:$8 sps:$4 sm:$0xff]   ;;  %v6910_v46 = vld [vmem:[#allocation10 + $0x74] ss:$8 sps:$4 sm:$0xff]   ;;  %v6908_v47 = vld [vmem:[#allocation10 + $0x70] ss:$8 sps:$4 sm:$0xff]  }
  0xa1   :  { %243 = vmatpush1.bf16.msra.mxu0 %v6866_v8  ;;  %297 = vmatpush1.bf16.msra.mxu1 %v6866_v8  ;;  %v6913_v48 = vld [vmem:[#allocation10 + $0x84] ss:$8 sps:$4 sm:$0xff]   ;;  %v6911_v49 = vld [vmem:[#allocation10 + $0x80] ss:$8 sps:$4 sm:$0xff]   ;;  %v6916_v50 = vld [vmem:[#allocation10 + $0x94] ss:$8 sps:$4 sm:$0xff]  }
  0xa2   :  { %244 = vmatprep.subr.bf16.mxu0 %v6867_v9  ;;  %298 = vmatprep.subr.bf16.mxu1 %v6867_v9  ;;  %v6914_v51 = vld [vmem:[#allocation10 + $0x90] ss:$8 sps:$4 sm:$0xff]   ;;  %v6919_v52 = vld [vmem:[#allocation10 + $0xa4] ss:$8 sps:$4 sm:$0xff]   ;;  %v6917_v53 = vld [vmem:[#allocation10 + $0xa0] ss:$8 sps:$4 sm:$0xff]  }
  0xa3   :  { %v6922_v54 = vld [vmem:[#allocation10 + $0xb4] ss:$8 sps:$4 sm:$0xff]   ;;  %v6920_v55 = vld [vmem:[#allocation10 + $0xb0] ss:$8 sps:$4 sm:$0xff]   ;;  %v6925_v56 = vld [vmem:[#allocation10 + $0xc4] ss:$8 sps:$4 sm:$0xff]  }
  0xa4   :  { %v6923_v57 = vld [vmem:[#allocation10 + $0xc0] ss:$8 sps:$4 sm:$0xff]   ;;  %v6928_v58 = vld [vmem:[#allocation10 + $0xd4] ss:$8 sps:$4 sm:$0xff]   ;;  %v6926_v59 = vld [vmem:[#allocation10 + $0xd0] ss:$8 sps:$4 sm:$0xff]  }
  0xa5   :  { %245 = vmatpush1.bf16.msra.mxu0 %v6869_v10  ;;  %299 = vmatpush1.bf16.msra.mxu1 %v6869_v10  ;;  %v6931_v60 = vld [vmem:[#allocation10 + $0xe4] ss:$8 sps:$4 sm:$0xff]   ;;  %v6929_v61 = vld [vmem:[#allocation10 + $0xe0] ss:$8 sps:$4 sm:$0xff]   ;;  %v6934_v62 = vld [vmem:[#allocation10 + $0xf4] ss:$8 sps:$4 sm:$0xff]  }
  0xa6   :  { %246 = vmatprep.subr.bf16.mxu0 %v6870_v11  ;;  %300 = vmatprep.subr.bf16.mxu1 %v6870_v11  ;;  %v6932_v63 = vld [vmem:[#allocation10 + $0xf0] ss:$8 sps:$4 sm:$0xff]   ;;  %s6136_s10 = sshll.u32 %s7911_s7, 4  ;;  %s6137_s10 = int_to_ptr.vmem [resolvable:$true] %s6136_s10 }
  0xa7   :  { %s7861_s2 = scalar_lea.vmem %s6137_s10, 256  ;;  %p7866_p9 = scmp.lt.s32.totalorder %s6137_s10, %s6137_s10 }
  0xa8   :  { %p7862_p8 = scmp.ne.s32.totalorder %s6137_s10, %s7861_s2  ;;  %p7867_p10 = scmp.lt.s32.totalorder %s7861_s2, %s7861_s2 }
  0xa9   :  { %247 = vmatpush1.bf16.msra.mxu0 %v6872_v12  ;;  %301 = vmatpush1.bf16.msra.mxu1 %v6872_v12 }
  0xaa   :  { %6167 = vmatprep.subr.msk.bf16.mxu0 %vm229_vm0, %v6873_v13  ;;  %6170 = vmatprep.subr.msk.bf16.mxu1 %vm229_vm0, %v6873_v13  ;;  %p7868_p11 = por %p7867_p10, %p7866_p9 }
  0xac   :  { %p7869_p12 = pnand %p7868_p11, %p7862_p8 }
  0xad   :  { %249 = vmatpush1.bf16.msra.mxu0 %v231_v15  ;;  %303 = vmatpush1.bf16.msra.mxu1 %v231_v15 }
  0xae   :  { %348 = vmatprep.subr.bf16.mxu0 %v6855_v1  ;;  %406 = vmatprep.subr.bf16.mxu1 %v6855_v1  ;;  %v6937_v1 = vld [vmem:[#allocation10 + $0xf04] ss:$8 sps:$4 sm:$0xff]  }
  0xb0   :  { %6168 = vmatmul.mubr.msk.bf16.vlgmr.msra.gmra.mrb[0].mxu0 %vm225_vm1, %v6876_v16  ;;  %6171 = vmatmul.mubr.msk.bf16.vlgmr.msra.gmra.mrb[0].mxu1 %vm225_vm1, %v6877_v17 }
  0xb1   :  { %349 = vmatpush1.bf16.msra.mxu0 %v6857_v2  ;;  %407 = vmatpush1.bf16.msra.mxu1 %v6857_v2 }
  0xb2   :  { %350 = vmatprep.subr.bf16.mxu0 %v6858_v3  ;;  %408 = vmatprep.subr.bf16.mxu1 %v6858_v3 }
  0xb3   :  { %380 = vmatprep.mubr.bf16.mxu0 %v7909_v0  ;;  %438 = vmatprep.mubr.bf16.mxu1 %v7909_v0 }
  0xb5   :  { %351 = vmatpush1.bf16.msra.mxu0 %v6860_v4  ;;  %409 = vmatpush1.bf16.msra.mxu1 %v6860_v4 }
  0xb6   :  { %352 = vmatprep.subr.bf16.mxu0 %v6861_v5  ;;  %410 = vmatprep.subr.bf16.mxu1 %v6861_v5 }
  0xb9   :  { %353 = vmatpush1.bf16.msra.mxu0 %v6863_v6  ;;  %411 = vmatpush1.bf16.msra.mxu1 %v6863_v6 }
  0xba   :  { %354 = vmatprep.subr.bf16.mxu0 %v6864_v7  ;;  %412 = vmatprep.subr.bf16.mxu1 %v6864_v7 }
  0xbd   :  { %355 = vmatpush1.bf16.msra.mxu0 %v6866_v8  ;;  %413 = vmatpush1.bf16.msra.mxu1 %v6866_v8 }
  0xbe   :  { %356 = vmatprep.subr.bf16.mxu0 %v6867_v9  ;;  %414 = vmatprep.subr.bf16.mxu1 %v6867_v9 }
  0xc1   :  { %357 = vmatpush1.bf16.msra.mxu0 %v6869_v10  ;;  %415 = vmatpush1.bf16.msra.mxu1 %v6869_v10 }
  0xc2   :  { %358 = vmatprep.subr.bf16.mxu0 %v6870_v11  ;;  %416 = vmatprep.subr.bf16.mxu1 %v6870_v11 }
  0xc5   :  { %359 = vmatpush1.bf16.msra.mxu0 %v6872_v12  ;;  %417 = vmatpush1.bf16.msra.mxu1 %v6872_v12 }
  0xc6   :  { %6173 = vmatprep.subr.msk.bf16.mxu0 %vm229_vm0, %v6873_v13  ;;  %6176 = vmatprep.subr.msk.bf16.mxu1 %vm229_vm0, %v6873_v13 }
  0xc9   :  { %361 = vmatpush1.bf16.msra.mxu0 %v231_v15  ;;  %419 = vmatpush1.bf16.msra.mxu1 %v231_v15 }
  0xca   :  { %539 = vmatprep.subr.bf16.mxu0 %v8093_v27  ;;  %582 = vmatprep.subr.bf16.mxu1 %v8095_v28 }
  0xcc   :  { %6174 = vmatmul.mubr.msk.bf16.vlgmr.msra.gmra.mrb[4].mxu0 %vm225_vm1, %v6878_v25  ;;  %6177 = vmatmul.mubr.msk.bf16.vlgmr.msra.gmra.mrb[4].mxu1 %vm225_vm1, %v6879_v26 }
  0xcd   :  { %540 = vmatpush1.bf16.msra.mxu0 %v8097_v29  ;;  %583 = vmatpush1.bf16.msra.mxu1 %v8099_v30 }
  0xce   :  { %571 = vmatprep.mubr.bf16.mxu0 %v7909_v0  ;;  %614 = vmatprep.mubr.bf16.mxu1 %v7909_v0 }
  0xcf   :  { %827 = vmatprep.subr.bf16.mxu1 %v6889_v31 }
  0xd4   :  { %6183 = vmatmul.mubr.msk.bf16.vlgmr.msra.gmra.mrb[8].mxu0 %vm519_vm4, %v6886_v32  ;;  %6184 = vmatmul.mubr.msk.bf16.vlgmr.msra.gmra.mrb[8].mxu1 %vm519_vm4, %v6886_v32 }
  0xd5   :  { %828 = vmatpush1.bf16.msra.mxu1 %v6887_v33 }
  0xd6   :  { %829 = vmatprep.subr.bf16.mxu1 %v6892_v34 }
  0xd9   :  { %830 = vmatpush1.bf16.msra.mxu1 %v6890_v35 }
  0xda   :  { %831 = vmatprep.subr.bf16.mxu1 %v6895_v36 }
  0xdd   :  { %832 = vmatpush1.bf16.msra.mxu1 %v6893_v37 }
  0xde   :  { %833 = vmatprep.subr.bf16.mxu1 %v6898_v38 }
  0xe1   :  { %834 = vmatpush1.bf16.msra.mxu1 %v6896_v39 }
  0xe2   :  { %835 = vmatprep.subr.bf16.mxu1 %v6901_v40 }
  0xe5   :  { %836 = vmatpush1.bf16.msra.mxu1 %v6899_v41 }
  0xe6   :  { %837 = vmatprep.subr.bf16.mxu1 %v6904_v42 }
  0xe9   :  { %838 = vmatpush1.bf16.msra.mxu1 %v6902_v43 }
  0xea   :  { %839 = vmatprep.subr.bf16.mxu1 %v6907_v45 }
  0xed   :  { %840 = vmatpush1.bf16.msra.mxu1 %v6905_v44 }
  0xee   :  { %841 = vmatprep.subr.bf16.mxu1 %v6910_v46 }
  0xf1   :  { %842 = vmatpush1.bf16.msra.mxu1 %v6908_v47 }
  0xf2   :  { %843 = vmatprep.subr.bf16.mxu1 %v6913_v48 }
  0xf5   :  { %844 = vmatpush1.bf16.msra.mxu1 %v6911_v49 }
  0xf6   :  { %845 = vmatprep.subr.bf16.mxu1 %v6916_v50 }
  0xf9   :  { %846 = vmatpush1.bf16.msra.mxu1 %v6914_v51 }
  0xfa   :  { %847 = vmatprep.subr.bf16.mxu1 %v6919_v52 }
  0xfd   :  { %848 = vmatpush1.bf16.msra.mxu1 %v6917_v53 }
  0xfe   :  { %849 = vmatprep.subr.bf16.mxu1 %v6922_v54 }
 0x101   :  { %850 = vmatpush1.bf16.msra.mxu1 %v6920_v55 }
 0x102   :  { %851 = vmatprep.subr.bf16.mxu1 %v6925_v56 }
 0x105   :  { %852 = vmatpush1.bf16.msra.mxu1 %v6923_v57 }
 0x106   :  { %853 = vmatprep.subr.bf16.mxu1 %v6928_v58  ;;  %v6935_v58 = vld [vmem:[#allocation10 + $0xf00] ss:$8 sps:$4 sm:$0xff]  }
 0x109   :  { %854 = vmatpush1.bf16.msra.mxu1 %v6926_v59  ;;  %v6940_v59 = vld [vmem:[#allocation10 + $0xf14] ss:$8 sps:$4 sm:$0xff]  }
 0x10a   :  { %855 = vmatprep.subr.bf16.mxu1 %v6931_v60  ;;  %v6938_v60 = vld [vmem:[#allocation10 + $0xf10] ss:$8 sps:$4 sm:$0xff]  }
 0x10d   :  { %856 = vmatpush1.bf16.msra.mxu1 %v6929_v61  ;;  %v6943_v61 = vld [vmem:[#allocation10 + $0xf24] ss:$8 sps:$4 sm:$0xff]  }
 0x10e   :  { %857 = vmatprep.subr.bf16.mxu1 %v6934_v62  ;;  %v6941_v62 = vld [vmem:[#allocation10 + $0xf20] ss:$8 sps:$4 sm:$0xff]  }
 0x111   :  { %858 = vmatpush1.bf16.msra.mxu1 %v6932_v63  ;;  %v6946_v63 = vld [vmem:[#allocation10 + $0xf34] ss:$8 sps:$4 sm:$0xff]  }
 0x112   :  { %1030 = vmatprep.subr.bf16.mxu1 %v6937_v1  ;;  %v6944_v1 = vld [vmem:[#allocation10 + $0xf30] ss:$8 sps:$4 sm:$0xff]  }
 0x183   :  { %v270_v2 = vpop.f32.mrb[0].mxu0  ;;  %v324_v3 = vpop.f32.mrb[0].mxu1 }
 0x184   :  { %v333_v4 = vmax.f32 %v270_v2, %v324_v3  ;;  %v272_v5 = vpop.f32.mrb[1].mxu0  ;;  %v326_v6 = vpop.f32.mrb[1].mxu1  ;;  %v6949_v2 = vld [vmem:[#allocation10 + $0xf44] ss:$8 sps:$4 sm:$0xff]   ;;  %v6947_v3 = vld [vmem:[#allocation10 + $0xf40] ss:$8 sps:$4 sm:$0xff]  }
 0x185   :  { %v334_v7 = vmax.f32 %v272_v5, %v326_v6  ;;  %v274_v8 = vpop.f32.mrb[2].mxu0  ;;  %v328_v9 = vpop.f32.mrb[2].mxu1  ;;  %v6950_v5 = vld [vmem:[#allocation10 + $0xf50] ss:$8 sps:$4 sm:$0xff]   ;;  %v6955_v6 = vld [vmem:[#allocation10 + $0xf64] ss:$8 sps:$4 sm:$0xff]  }
 0x186   :  { %v335_v10 = vmax.f32 %v274_v8, %v328_v9  ;;  %v276_v11 = vpop.f32.mrb[3].mxu0  ;;  %v330_v12 = vpop.f32.mrb[3].mxu1  ;;  %v6958_v8 = vld [vmem:[#allocation10 + $0xf74] ss:$8 sps:$4 sm:$0xff]   ;;  %v6956_v9 = vld [vmem:[#allocation10 + $0xf70] ss:$8 sps:$4 sm:$0xff]  }
 0x187   :  { %v336_v13 = vmax.f32 %v276_v11, %v330_v12  ;;  %v6959_v11 = vld [vmem:[#allocation10 + $0xf80] ss:$8 sps:$4 sm:$0xff]   ;;  %v6964_v12 = vld [vmem:[#allocation10 + $0xf94] ss:$8 sps:$4 sm:$0xff]  }
 0x19f   :  { %v382_v14 = vpop.f32.mrb[4].mxu0  ;;  %v440_v15 = vpop.f32.mrb[4].mxu1 }
 0x1a0   :  { %v391_v16 = vmax.f32 %v333_v4, %v382_v14  ;;  %v384_v17 = vpop.f32.mrb[5].mxu0  ;;  %v442_v18 = vpop.f32.mrb[5].mxu1  ;;  %v6952_v4 = vld [vmem:[#allocation10 + $0xf54] ss:$8 sps:$4 sm:$0xff]   ;;  %v6967_v14 = vld [vmem:[#allocation10 + $0xfa4] ss:$8 sps:$4 sm:$0xff]  }
 0x1a1   :  { %v392_v19 = vmax.f32 %v334_v7, %v384_v17  ;;  %v386_v20 = vpop.f32.mrb[6].mxu0  ;;  %v444_v21 = vpop.f32.mrb[6].mxu1  ;;  %v6953_v7 = vld [vmem:[#allocation10 + $0xf60] ss:$8 sps:$4 sm:$0xff]   ;;  %v6968_v17 = vld [vmem:[#allocation10 + $0xfb0] ss:$8 sps:$4 sm:$0xff]  }
 0x1a2   :  { %v449_v22 = vmax.f32 %v391_v16, %v440_v15  ;;  %v393_v23 = vmax.f32 %v335_v10, %v386_v20  ;;  %v388_v24 = vpop.f32.mrb[7].mxu0  ;;  %v446_v25 = vpop.f32.mrb[7].mxu1  ;;  %v6961_v10 = vld [vmem:[#allocation10 + $0xf84] ss:$8 sps:$4 sm:$0xff]   ;;  %v6965_v15 = vld [vmem:[#allocation10 + $0xfa0] ss:$8 sps:$4 sm:$0xff]  }
 0x1a3   :  { %v450_v26 = vmax.f32 %v392_v19, %v442_v18  ;;  %v394_v31 = vmax.f32 %v336_v13, %v388_v24  ;;  %v6962_v13 = vld [vmem:[#allocation10 + $0xf90] ss:$8 sps:$4 sm:$0xff]   ;;  %v6970_v16 = vld [vmem:[#allocation10 + $0xfb4] ss:$8 sps:$4 sm:$0xff]   ;;  %v6973_v18 = vld [vmem:[#allocation10 + $0xfc4] ss:$8 sps:$4 sm:$0xff]  }
 0x1a4   :  { %v451_v32 = vmax.f32 %v393_v23, %v444_v21  ;;  %v8111_v34 = vmax.f32 %v449_v22, 0.0  ;;  %v6971_v19 = vld [vmem:[#allocation10 + $0xfc0] ss:$8 sps:$4 sm:$0xff]   ;;  %v6976_v20 = vld [vmem:[#allocation10 + $0xfd4] ss:$8 sps:$4 sm:$0xff]  }
 0x1a5   :  { %v452_v33 = vmax.f32 %v394_v31, %v446_v25  ;;  %v454_v36 = vmax.f32 %v450_v26, 0.0  ;;  %v6974_v21 = vld [vmem:[#allocation10 + $0xfd0] ss:$8 sps:$4 sm:$0xff]   ;;  %v6979_v22 = vld [vmem:[#allocation10 + $0xfe4] ss:$8 sps:$4 sm:$0xff]  }
 0x1a6   :  { %v8113_v35 = vmax.f32 %v451_v32, 0.0  ;;  %v6977_v23 = vld [vmem:[#allocation10 + $0xfe0] ss:$8 sps:$4 sm:$0xff]   ;;  %v6982_v24 = vld [vmem:[#allocation10 + $0xff4] ss:$8 sps:$4 sm:$0xff]  }
 0x1a7   :  { %v456_v37 = vmax.f32 %v452_v33, 0.0  ;;  %v573_v38 = vpop.f32.mrb[8].mxu0  ;;  %v616_v39 = vpop.f32.mrb[8].mxu1  ;;  %v6980_v25 = vld [vmem:[#allocation10 + $0xff0] ss:$8 sps:$4 sm:$0xff]   ;;  %v6983_v26 = vld [vmem:[#allocation2 + $0x8] sm:$0xff]  }
 0x1a8   :  { %v457_v40 = vpack.c.bf16 %v8113_v35, %v8111_v34  ;;  %v625_v41 = vmax.f32 %v573_v38, %v616_v39  ;;  %v575_v42 = vpop.f32.mrb[9].mxu0  ;;  %v618_v43 = vpop.f32.mrb[9].mxu1  ;;  %v6986_v31 = vld [vmem:[#allocation10 + $0x104] ss:$8 sps:$4 sm:$0xff]   ;;  %v6984_v32 = vld [vmem:[#allocation10 + $0x100] ss:$8 sps:$4 sm:$0xff]  }
 0x1a9   :  { %v458_v44 = vpack.c.bf16 %v456_v37, %v454_v36  ;;  %v626_v45 = vmax.f32 %v575_v42, %v618_v43  ;;  %v577_v46 = vpop.f32.mrb[10].mxu0  ;;  %v620_v47 = vpop.f32.mrb[10].mxu1  ;;  %v6989_v33 = vld [vmem:[#allocation10 + $0x114] ss:$8 sps:$4 sm:$0xff]   ;;  %v6987_v34 = vld [vmem:[#allocation10 + $0x110] ss:$8 sps:$4 sm:$0xff]  }
 0x1aa   :  { %v627_v48 = vmax.f32 %v577_v46, %v620_v47  ;;  %v579_v49 = vpop.f32.mrb[11].mxu0  ;;  %v622_v50 = vpop.f32.mrb[11].mxu1  ;;  %v629_v52 = vmax.f32 %v625_v41, 0.0  ;;  %v6992_v35 = vld [vmem:[#allocation10 + $0x124] ss:$8 sps:$4 sm:$0xff]  }
 0x1ab   :  { %v628_v51 = vmax.f32 %v579_v49, %v622_v50  ;;  %v630_v54 = vmax.f32 %v626_v45, 0.0  ;;  %v6990_v36 = vld [vmem:[#allocation10 + $0x120] ss:$8 sps:$4 sm:$0xff]   ;;  %v6995_v37 = vld [vmem:[#allocation10 + $0x134] ss:$8 sps:$4 sm:$0xff]  }
 0x1ac   :  { %v631_v53 = vmax.f32 %v627_v48, 0.0  ;;  %v6993_v38 = vld [vmem:[#allocation10 + $0x130] ss:$8 sps:$4 sm:$0xff]   ;;  %v6998_v39 = vld [vmem:[#allocation10 + $0x144] ss:$8 sps:$4 sm:$0xff]  }
 0x1ad   :  { %v632_v55 = vmax.f32 %v628_v51, 0.0  ;;  %v7001_v41 = vld [vmem:[#allocation10 + $0x154] ss:$8 sps:$4 sm:$0xff]   ;;  %v6999_v42 = vld [vmem:[#allocation10 + $0x150] ss:$8 sps:$4 sm:$0xff]  }
 0x1ae   :  { %v633_v56 = vpack.c.bf16 %v631_v53, %v629_v52  ;;  %v7004_v43 = vld [vmem:[#allocation10 + $0x164] ss:$8 sps:$4 sm:$0xff]   ;;  %v7007_v45 = vld [vmem:[#allocation10 + $0x174] ss:$8 sps:$4 sm:$0xff]   ;;  %v7005_v46 = vld [vmem:[#allocation10 + $0x170] ss:$8 sps:$4 sm:$0xff]  }
 0x1af   :  { %v634_v57 = vpack.c.bf16 %v632_v55, %v630_v54  ;;  %v7010_v47 = vld [vmem:[#allocation10 + $0x184] ss:$8 sps:$4 sm:$0xff]   ;;  %v7008_v48 = vld [vmem:[#allocation10 + $0x180] ss:$8 sps:$4 sm:$0xff]   ;;  %v7013_v49 = vld [vmem:[#allocation10 + $0x194] ss:$8 sps:$4 sm:$0xff]  }
 0x1b0   :  { %v7011_v50 = vld [vmem:[#allocation10 + $0x190] ss:$8 sps:$4 sm:$0xff]   ;;  %v7016_v51 = vld [vmem:[#allocation10 + $0x1a4] ss:$8 sps:$4 sm:$0xff]   ;;  %v7014_v52 = vld [vmem:[#allocation10 + $0x1a0] ss:$8 sps:$4 sm:$0xff]  }
 0x1b1   :  { %859 = vmatprep.mubr.bf16.mxu1 %v634_v57  ;;  %v7019_v53 = vld [vmem:[#allocation10 + $0x1b4] ss:$8 sps:$4 sm:$0xff]   ;;  %v7017_v54 = vld [vmem:[#allocation10 + $0x1b0] ss:$8 sps:$4 sm:$0xff]   ;;  %v7022_v55 = vld [vmem:[#allocation10 + $0x1c4] ss:$8 sps:$4 sm:$0xff]  }
 0x1b2   :  { %860 = vmatmul.mubr.bf16.vlgmr.msra.gmra.mrb[12].mxu1 %v633_v56  ;;  %v7020_v56 = vld [vmem:[#allocation10 + $0x1c0] ss:$8 sps:$4 sm:$0xff]   ;;  %v7025_v57 = vld [vmem:[#allocation10 + $0x1d4] ss:$8 sps:$4 sm:$0xff]  }
 0x1b3   :  { %1031 = vmatpush1.bf16.msra.mxu1 %v6935_v58  ;;  %1062 = vmatprep.mubr.bf16.mxu1 %v458_v44  ;;  %v7002_v44 = vld [vmem:[#allocation10 + $0x160] ss:$8 sps:$4 sm:$0xff]   ;;  %v7023_v58 = vld [vmem:[#allocation10 + $0x1d0] ss:$8 sps:$4 sm:$0xff]  }
 0x1b4   :  { %1032 = vmatprep.subr.bf16.mxu1 %v6940_v59  ;;  %v7028_v59 = vld [vmem:[#allocation10 + $0x1e4] ss:$8 sps:$4 sm:$0xff]  }
 0x1b7   :  { %1033 = vmatpush1.bf16.msra.mxu1 %v6938_v60  ;;  %v7026_v60 = vld [vmem:[#allocation10 + $0x1e0] ss:$8 sps:$4 sm:$0xff]  }
 0x1b8   :  { %1034 = vmatprep.subr.bf16.mxu1 %v6943_v61  ;;  %v7031_v61 = vld [vmem:[#allocation10 + $0x1f4] ss:$8 sps:$4 sm:$0xff]  }
 0x1bb   :  { %1035 = vmatpush1.bf16.msra.mxu1 %v6941_v62  ;;  %v7029_v62 = vld [vmem:[#allocation10 + $0x1f0] ss:$8 sps:$4 sm:$0xff]  }
 0x1bc   :  { %1036 = vmatprep.subr.bf16.mxu1 %v6946_v63 }
 0x1bf   :  { %1037 = vmatpush1.bf16.msra.mxu1 %v6944_v1 }
 0x1c0   :  { %1038 = vmatprep.subr.bf16.mxu1 %v6949_v2 }
 0x1c3   :  { %1039 = vmatpush1.bf16.msra.mxu1 %v6947_v3 }
 0x1c4   :  { %1040 = vmatprep.subr.bf16.mxu1 %v6952_v4 }
 0x1c7   :  { %1041 = vmatpush1.bf16.msra.mxu1 %v6950_v5 }
 0x1c8   :  { %1042 = vmatprep.subr.bf16.mxu1 %v6955_v6 }
 0x1cb   :  { %1043 = vmatpush1.bf16.msra.mxu1 %v6953_v7 }
 0x1cc   :  { %1044 = vmatprep.subr.bf16.mxu1 %v6958_v8 }
 0x1cf   :  { %1045 = vmatpush1.bf16.msra.mxu1 %v6956_v9 }
 0x1d0   :  { %1046 = vmatprep.subr.bf16.mxu1 %v6961_v10 }
 0x1d3   :  { %1047 = vmatpush1.bf16.msra.mxu1 %v6959_v11 }
 0x1d4   :  { %1048 = vmatprep.subr.bf16.mxu1 %v6964_v12 }
 0x1d7   :  { %1049 = vmatpush1.bf16.msra.mxu1 %v6962_v13 }
 0x1d8   :  { %1050 = vmatprep.subr.bf16.mxu1 %v6967_v14 }
 0x1db   :  { %1051 = vmatpush1.bf16.msra.mxu1 %v6965_v15 }
 0x1dc   :  { %1052 = vmatprep.subr.bf16.mxu1 %v6970_v16 }
 0x1df   :  { %1053 = vmatpush1.bf16.msra.mxu1 %v6968_v17 }
 0x1e0   :  { %1054 = vmatprep.subr.bf16.mxu1 %v6973_v18  ;;  %v7032_v18 = vld [vmem:[#allocation2 + $0x10] sm:$0xff]  }
 0x1e3   :  { %1055 = vmatpush1.bf16.msra.mxu1 %v6971_v19  ;;  %v7035_v19 = vld [vmem:[#allocation10 + $0x204] ss:$8 sps:$4 sm:$0xff]  }
 0x1e4   :  { %1056 = vmatprep.subr.bf16.mxu1 %v6976_v20  ;;  %v7033_v20 = vld [vmem:[#allocation10 + $0x200] ss:$8 sps:$4 sm:$0xff]  }
 0x1e7   :  { %1057 = vmatpush1.bf16.msra.mxu1 %v6974_v21  ;;  %v7038_v21 = vld [vmem:[#allocation10 + $0x214] ss:$8 sps:$4 sm:$0xff]  }
 0x1e8   :  { %1058 = vmatprep.subr.bf16.mxu1 %v6979_v22  ;;  %v7036_v22 = vld [vmem:[#allocation10 + $0x210] ss:$8 sps:$4 sm:$0xff]  }
 0x1eb   :  { %1059 = vmatpush1.bf16.msra.mxu1 %v6977_v23  ;;  %v7041_v23 = vld [vmem:[#allocation10 + $0x224] ss:$8 sps:$4 sm:$0xff]  }
 0x1ec   :  { %1060 = vmatprep.subr.bf16.mxu1 %v6982_v24  ;;  %v7039_v24 = vld [vmem:[#allocation10 + $0x220] ss:$8 sps:$4 sm:$0xff]  }
 0x1ef   :  { %1061 = vmatpush1.bf16.msra.mxu1 %v6980_v25  ;;  %v7044_v25 = vld [vmem:[#allocation10 + $0x234] ss:$8 sps:$4 sm:$0xff]  }
 0x1f0   :  { %1084 = vmatprep.subr.bf16.mxu1 %v8093_v27 }
 0x1f2   :  { %1063 = vmatmul.mubr.bf16.vlgmr.msra.gmra.mrb[12].mxu1 %v457_v40  ;;  %v6996_v40 = vld [vmem:[#allocation10 + $0x140] ss:$8 sps:$4 sm:$0xff]  }
 0x1f3   :  { %1085 = vmatpush1.bf16.msra.mxu1 %v8097_v29  ;;  %1116 = vmatprep.mubr.bf16.mxu1 %v7909_v0 }
 0x1f4   :  { %1127 = vmatprep.subr.bf16.mxu1 %v8095_v28 }
 0x1fa   :  { %6250 = vmatmul.mubr.msk.bf16.vlgmr.msra.gmra.mrb[16].mxu1 %vm519_vm4, %v6983_v26 }
 0x1fb   :  { %1128 = vmatpush1.bf16.msra.mxu1 %v8099_v30  ;;  %1159 = vmatprep.mubr.bf16.mxu1 %v7909_v0 }
 0x1fc   :  { %1373 = vmatprep.subr.bf16.mxu1 %v6986_v31  ;;  %v7047_v31 = vld [vmem:[#allocation10 + $0x244] ss:$8 sps:$4 sm:$0xff]  }
 0x202   :  { %6251 = vmatmul.mubr.msk.bf16.vlgmr.msra.gmra.mrb[20].mxu1 %vm519_vm4, %v6983_v26  ;;  %v7042_v26 = vld [vmem:[#allocation10 + $0x230] ss:$8 sps:$4 sm:$0xff]  }
 0x203   :  { %1374 = vmatpush1.bf16.msra.mxu1 %v6984_v32  ;;  %v7045_v32 = vld [vmem:[#allocation10 + $0x240] ss:$8 sps:$4 sm:$0xff]  }
 0x204   :  { %1375 = vmatprep.subr.bf16.mxu1 %v6989_v33  ;;  %v7050_v33 = vld [vmem:[#allocation10 + $0x254] ss:$8 sps:$4 sm:$0xff]  }
 0x207   :  { %1376 = vmatpush1.bf16.msra.mxu1 %v6987_v34  ;;  %v7048_v34 = vld [vmem:[#allocation10 + $0x250] ss:$8 sps:$4 sm:$0xff]  }
 0x208   :  { %1377 = vmatprep.subr.bf16.mxu1 %v6992_v35  ;;  %v7053_v35 = vld [vmem:[#allocation10 + $0x264] ss:$8 sps:$4 sm:$0xff]  }
 0x20b   :  { %1378 = vmatpush1.bf16.msra.mxu1 %v6990_v36  ;;  %v7051_v36 = vld [vmem:[#allocation10 + $0x260] ss:$8 sps:$4 sm:$0xff]  }
 0x20c   :  { %1379 = vmatprep.subr.bf16.mxu1 %v6995_v37  ;;  %v7056_v37 = vld [vmem:[#allocation10 + $0x274] ss:$8 sps:$4 sm:$0xff]  }
 0x20f   :  { %1380 = vmatpush1.bf16.msra.mxu1 %v6993_v38  ;;  %v7054_v38 = vld [vmem:[#allocation10 + $0x270] ss:$8 sps:$4 sm:$0xff]  }
 0x210   :  { %1381 = vmatprep.subr.bf16.mxu1 %v6998_v39  ;;  %v7059_v39 = vld [vmem:[#allocation10 + $0x284] ss:$8 sps:$4 sm:$0xff]  }
 0x213   :  { %1382 = vmatpush1.bf16.msra.mxu1 %v6996_v40  ;;  %v7057_v40 = vld [vmem:[#allocation10 + $0x280] ss:$8 sps:$4 sm:$0xff]  }
 0x214   :  { %1383 = vmatprep.subr.bf16.mxu1 %v7001_v41  ;;  %v7062_v41 = vld [vmem:[#allocation10 + $0x294] ss:$8 sps:$4 sm:$0xff]  }
 0x217   :  { %1384 = vmatpush1.bf16.msra.mxu1 %v6999_v42  ;;  %v7060_v42 = vld [vmem:[#allocation10 + $0x290] ss:$8 sps:$4 sm:$0xff]  }
 0x218   :  { %1385 = vmatprep.subr.bf16.mxu1 %v7004_v43  ;;  %v7065_v43 = vld [vmem:[#allocation10 + $0x2a4] ss:$8 sps:$4 sm:$0xff]  }
 0x21b   :  { %1386 = vmatpush1.bf16.msra.mxu1 %v7002_v44  ;;  %v7063_v44 = vld [vmem:[#allocation10 + $0x2a0] ss:$8 sps:$4 sm:$0xff]  }
 0x21c   :  { %1387 = vmatprep.subr.bf16.mxu1 %v7007_v45  ;;  %v7068_v45 = vld [vmem:[#allocation10 + $0x2b4] ss:$8 sps:$4 sm:$0xff]  }
 0x21f   :  { %1388 = vmatpush1.bf16.msra.mxu1 %v7005_v46  ;;  %v7066_v46 = vld [vmem:[#allocation10 + $0x2b0] ss:$8 sps:$4 sm:$0xff]  }
 0x220   :  { %1389 = vmatprep.subr.bf16.mxu1 %v7010_v47  ;;  %v7071_v47 = vld [vmem:[#allocation10 + $0x2c4] ss:$8 sps:$4 sm:$0xff]  }
 0x223   :  { %1390 = vmatpush1.bf16.msra.mxu1 %v7008_v48  ;;  %v7069_v48 = vld [vmem:[#allocation10 + $0x2c0] ss:$8 sps:$4 sm:$0xff]  }
 0x224   :  { %1391 = vmatprep.subr.bf16.mxu1 %v7013_v49  ;;  %v7074_v49 = vld [vmem:[#allocation10 + $0x2d4] ss:$8 sps:$4 sm:$0xff]  }
 0x227   :  { %1392 = vmatpush1.bf16.msra.mxu1 %v7011_v50  ;;  %v7072_v50 = vld [vmem:[#allocation10 + $0x2d0] ss:$8 sps:$4 sm:$0xff]  }
 0x228   :  { %1393 = vmatprep.subr.bf16.mxu1 %v7016_v51  ;;  %v7077_v51 = vld [vmem:[#allocation10 + $0x2e4] ss:$8 sps:$4 sm:$0xff]  }
 0x22b   :  { %1394 = vmatpush1.bf16.msra.mxu1 %v7014_v52  ;;  %v7075_v52 = vld [vmem:[#allocation10 + $0x2e0] ss:$8 sps:$4 sm:$0xff]  }
 0x22c   :  { %1395 = vmatprep.subr.bf16.mxu1 %v7019_v53  ;;  %v7080_v53 = vld [vmem:[#allocation10 + $0x2f4] ss:$8 sps:$4 sm:$0xff]  }
 0x22f   :  { %1396 = vmatpush1.bf16.msra.mxu1 %v7017_v54  ;;  %v7078_v54 = vld [vmem:[#allocation10 + $0x2f0] ss:$8 sps:$4 sm:$0xff]  }
 0x230   :  { %1397 = vmatprep.subr.bf16.mxu1 %v7022_v55 }
 0x233   :  { %1398 = vmatpush1.bf16.msra.mxu1 %v7020_v56 }
 0x234   :  { %1399 = vmatprep.subr.bf16.mxu1 %v7025_v57 }
 0x237   :  { %1400 = vmatpush1.bf16.msra.mxu1 %v7023_v58 }
 0x238   :  { %1401 = vmatprep.subr.bf16.mxu1 %v7028_v59 }
 0x23b   :  { %1402 = vmatpush1.bf16.msra.mxu1 %v7026_v60 }
 0x23c   :  { %1403 = vmatprep.subr.bf16.mxu1 %v7031_v61 }
 0x23f   :  { %1404 = vmatpush1.bf16.msra.mxu1 %v7029_v62 }
 0x240   :  { %1431 = vmatprep.subr.bf16.mxu1 %v8093_v27 }
 0x2cd   :  { %v1118_v63 = vpop.f32.mrb[16].mxu1 }
 0x2ce   :  { %v1120_v1 = vpop.f32.mrb[17].mxu1 }
 0x2cf   :  { %v1122_v2 = vpop.f32.mrb[18].mxu1 }
 0x2d0   :  { %v1124_v3 = vpop.f32.mrb[19].mxu1 }
 0x2d5   :  { %v1161_v4 = vpop.f32.mrb[20].mxu1 }
 0x2d6   :  { %v1170_v5 = vmax.f32 %v1118_v63, %v1161_v4  ;;  %v1163_v6 = vpop.f32.mrb[21].mxu1 }
 0x2d7   :  { %v1171_v7 = vmax.f32 %v1120_v1, %v1163_v6  ;;  %v1165_v8 = vpop.f32.mrb[22].mxu1 }
 0x2d8   :  { %v1172_v9 = vmax.f32 %v1122_v2, %v1165_v8  ;;  %v1167_v10 = vpop.f32.mrb[23].mxu1  ;;  %v1174_v12 = vmax.f32 %v1170_v5, 0.0 }
 0x2d9   :  { %v1173_v11 = vmax.f32 %v1124_v3, %v1167_v10  ;;  %v1175_v14 = vmax.f32 %v1171_v7, 0.0  ;;  %v7081_v10 = vld [vmem:[#allocation2 + $0x18] sm:$0xff]  }
 0x2da   :  { %v1176_v13 = vmax.f32 %v1172_v9, 0.0 }
 0x2db   :  { %v1177_v15 = vmax.f32 %v1173_v11, 0.0  ;;  %v7084_v11 = vld [vmem:[#allocation10 + $0x304] ss:$8 sps:$4 sm:$0xff]  }
 0x2dc   :  { %v1178_v16 = vpack.c.bf16 %v1176_v13, %v1174_v12  ;;  %v7082_v12 = vld [vmem:[#allocation10 + $0x300] ss:$8 sps:$4 sm:$0xff]   ;;  %v7087_v13 = vld [vmem:[#allocation10 + $0x314] ss:$8 sps:$4 sm:$0xff]  }
 0x2dd   :  { %v1179_v17 = vpack.c.bf16 %v1177_v15, %v1175_v14  ;;  %v7085_v14 = vld [vmem:[#allocation10 + $0x310] ss:$8 sps:$4 sm:$0xff]   ;;  %v7090_v15 = vld [vmem:[#allocation10 + $0x324] ss:$8 sps:$4 sm:$0xff]  }
 0x2df   :  { %1405 = vmatprep.mubr.bf16.mxu1 %v1179_v17  ;;  %v7093_v17 = vld [vmem:[#allocation10 + $0x334] ss:$8 sps:$4 sm:$0xff]  }
 0x2e0   :  { %1406 = vmatmul.mubr.bf16.vlgmr.msra.gmra.mrb[12].mxu1 %v1178_v16  ;;  %v7088_v16 = vld [vmem:[#allocation10 + $0x320] ss:$8 sps:$4 sm:$0xff]  }
 0x2e1   :  { %1432 = vmatpush1.bf16.msra.mxu1 %v8097_v29  ;;  %1463 = vmatprep.mubr.bf16.mxu1 %v7909_v0 }
 0x2e2   :  { %1474 = vmatprep.subr.bf16.mxu1 %v8095_v28 }
 0x2e8   :  { %6285 = vmatmul.mubr.msk.bf16.vlgmr.msra.gmra.mrb[24].mxu1 %vm519_vm4, %v7032_v18 }
 0x2e9   :  { %1475 = vmatpush1.bf16.msra.mxu1 %v8099_v30  ;;  %1506 = vmatprep.mubr.bf16.mxu1 %v7909_v0 }
 0x2ea   :  { %1720 = vmatprep.subr.bf16.mxu1 %v7035_v19  ;;  %v7096_v19 = vld [vmem:[#allocation10 + $0x344] ss:$8 sps:$4 sm:$0xff]  }
 0x2f0   :  { %6286 = vmatmul.mubr.msk.bf16.vlgmr.msra.gmra.mrb[28].mxu1 %vm519_vm4, %v7032_v18  ;;  %v7091_v18 = vld [vmem:[#allocation10 + $0x330] ss:$8 sps:$4 sm:$0xff]  }
 0x2f1   :  { %1721 = vmatpush1.bf16.msra.mxu1 %v7033_v20  ;;  %v7094_v20 = vld [vmem:[#allocation10 + $0x340] ss:$8 sps:$4 sm:$0xff]  }
 0x2f2   :  { %1722 = vmatprep.subr.bf16.mxu1 %v7038_v21  ;;  %v7099_v21 = vld [vmem:[#allocation10 + $0x354] ss:$8 sps:$4 sm:$0xff]  }
 0x2f5   :  { %1723 = vmatpush1.bf16.msra.mxu1 %v7036_v22  ;;  %v7097_v22 = vld [vmem:[#allocation10 + $0x350] ss:$8 sps:$4 sm:$0xff]  }
 0x2f6   :  { %1724 = vmatprep.subr.bf16.mxu1 %v7041_v23  ;;  %v7102_v23 = vld [vmem:[#allocation10 + $0x364] ss:$8 sps:$4 sm:$0xff]  }
 0x2f9   :  { %1725 = vmatpush1.bf16.msra.mxu1 %v7039_v24  ;;  %v7100_v24 = vld [vmem:[#allocation10 + $0x360] ss:$8 sps:$4 sm:$0xff]  }
 0x2fa   :  { %1726 = vmatprep.subr.bf16.mxu1 %v7044_v25  ;;  %v7105_v25 = vld [vmem:[#allocation10 + $0x374] ss:$8 sps:$4 sm:$0xff]  }
 0x2fd   :  { %1727 = vmatpush1.bf16.msra.mxu1 %v7042_v26  ;;  %v7103_v26 = vld [vmem:[#allocation10 + $0x370] ss:$8 sps:$4 sm:$0xff]  }
 0x2fe   :  { %1728 = vmatprep.subr.bf16.mxu1 %v7047_v31  ;;  %v7108_v31 = vld [vmem:[#allocation10 + $0x384] ss:$8 sps:$4 sm:$0xff]  }
 0x301   :  { %1729 = vmatpush1.bf16.msra.mxu1 %v7045_v32  ;;  %v7106_v32 = vld [vmem:[#allocation10 + $0x380] ss:$8 sps:$4 sm:$0xff]  }
 0x302   :  { %1730 = vmatprep.subr.bf16.mxu1 %v7050_v33  ;;  %v7111_v33 = vld [vmem:[#allocation10 + $0x394] ss:$8 sps:$4 sm:$0xff]  }
 0x305   :  { %1731 = vmatpush1.bf16.msra.mxu1 %v7048_v34  ;;  %v7109_v34 = vld [vmem:[#allocation10 + $0x390] ss:$8 sps:$4 sm:$0xff]  }
 0x306   :  { %1732 = vmatprep.subr.bf16.mxu1 %v7053_v35  ;;  %v7114_v35 = vld [vmem:[#allocation10 + $0x3a4] ss:$8 sps:$4 sm:$0xff]  }
 0x309   :  { %1733 = vmatpush1.bf16.msra.mxu1 %v7051_v36  ;;  %v7112_v36 = vld [vmem:[#allocation10 + $0x3a0] ss:$8 sps:$4 sm:$0xff]  }
 0x30a   :  { %1734 = vmatprep.subr.bf16.mxu1 %v7056_v37  ;;  %v7117_v37 = vld [vmem:[#allocation10 + $0x3b4] ss:$8 sps:$4 sm:$0xff]  }
 0x30d   :  { %1735 = vmatpush1.bf16.msra.mxu1 %v7054_v38  ;;  %v7115_v38 = vld [vmem:[#allocation10 + $0x3b0] ss:$8 sps:$4 sm:$0xff]  }
 0x30e   :  { %1736 = vmatprep.subr.bf16.mxu1 %v7059_v39  ;;  %v7120_v39 = vld [vmem:[#allocation10 + $0x3c4] ss:$8 sps:$4 sm:$0xff]  }
 0x311   :  { %1737 = vmatpush1.bf16.msra.mxu1 %v7057_v40  ;;  %v7118_v40 = vld [vmem:[#allocation10 + $0x3c0] ss:$8 sps:$4 sm:$0xff]  }
 0x312   :  { %1738 = vmatprep.subr.bf16.mxu1 %v7062_v41  ;;  %v7123_v41 = vld [vmem:[#allocation10 + $0x3d4] ss:$8 sps:$4 sm:$0xff]  }
 0x315   :  { %1739 = vmatpush1.bf16.msra.mxu1 %v7060_v42  ;;  %v7121_v42 = vld [vmem:[#allocation10 + $0x3d0] ss:$8 sps:$4 sm:$0xff]  }
 0x316   :  { %1740 = vmatprep.subr.bf16.mxu1 %v7065_v43  ;;  %v7126_v43 = vld [vmem:[#allocation10 + $0x3e4] ss:$8 sps:$4 sm:$0xff]  }
 0x319   :  { %1741 = vmatpush1.bf16.msra.mxu1 %v7063_v44  ;;  %v7124_v44 = vld [vmem:[#allocation10 + $0x3e0] ss:$8 sps:$4 sm:$0xff]  }
 0x31a   :  { %1742 = vmatprep.subr.bf16.mxu1 %v7068_v45  ;;  %v7129_v45 = vld [vmem:[#allocation10 + $0x3f4] ss:$8 sps:$4 sm:$0xff]  }
 0x31d   :  { %1743 = vmatpush1.bf16.msra.mxu1 %v7066_v46  ;;  %v7127_v46 = vld [vmem:[#allocation10 + $0x3f0] ss:$8 sps:$4 sm:$0xff]  }
 0x31e   :  { %1744 = vmatprep.subr.bf16.mxu1 %v7071_v47 }
 0x321   :  { %1745 = vmatpush1.bf16.msra.mxu1 %v7069_v48 }
 0x322   :  { %1746 = vmatprep.subr.bf16.mxu1 %v7074_v49 }
 0x325   :  { %1747 = vmatpush1.bf16.msra.mxu1 %v7072_v50 }
 0x326   :  { %1748 = vmatprep.subr.bf16.mxu1 %v7077_v51 }
 0x329   :  { %1749 = vmatpush1.bf16.msra.mxu1 %v7075_v52 }
 0x32a   :  { %1750 = vmatprep.subr.bf16.mxu1 %v7080_v53 }
 0x32d   :  { %1751 = vmatpush1.bf16.msra.mxu1 %v7078_v54 }
 0x32e   :  { %1778 = vmatprep.subr.bf16.mxu1 %v8093_v27 }
 0x3bb   :  { %v1465_v55 = vpop.f32.mrb[24].mxu1 }
 0x3bc   :  { %v1467_v56 = vpop.f32.mrb[25].mxu1 }
 0x3bd   :  { %v1469_v57 = vpop.f32.mrb[26].mxu1 }
 0x3be   :  { %v1471_v58 = vpop.f32.mrb[27].mxu1 }
 0x3c3   :  { %v1508_v59 = vpop.f32.mrb[28].mxu1 }
 0x3c4   :  { %v1517_v60 = vmax.f32 %v1465_v55, %v1508_v59  ;;  %v1510_v61 = vpop.f32.mrb[29].mxu1 }
 0x3c5   :  { %v1518_v62 = vmax.f32 %v1467_v56, %v1510_v61  ;;  %v1512_v63 = vpop.f32.mrb[30].mxu1 }
 0x3c6   :  { %v1519_v1 = vmax.f32 %v1469_v57, %v1512_v63  ;;  %v1514_v2 = vpop.f32.mrb[31].mxu1  ;;  %v1521_v4 = vmax.f32 %v1517_v60, 0.0 }
 0x3c7   :  { %v1520_v3 = vmax.f32 %v1471_v58, %v1514_v2  ;;  %v1522_v6 = vmax.f32 %v1518_v62, 0.0  ;;  %v7130_v2 = vld [vmem:[#allocation2 + $0x20] sm:$0xff]  }
 0x3c8   :  { %v1523_v5 = vmax.f32 %v1519_v1, 0.0 }
 0x3c9   :  { %v1524_v7 = vmax.f32 %v1520_v3, 0.0  ;;  %v7133_v3 = vld [vmem:[#allocation10 + $0x404] ss:$8 sps:$4 sm:$0xff]  }
 0x3ca   :  { %v1525_v8 = vpack.c.bf16 %v1523_v5, %v1521_v4  ;;  %v7131_v4 = vld [vmem:[#allocation10 + $0x400] ss:$8 sps:$4 sm:$0xff]   ;;  %v7136_v5 = vld [vmem:[#allocation10 + $0x414] ss:$8 sps:$4 sm:$0xff]  }
 0x3cb   :  { %v1526_v9 = vpack.c.bf16 %v1524_v7, %v1522_v6  ;;  %v7134_v6 = vld [vmem:[#allocation10 + $0x410] ss:$8 sps:$4 sm:$0xff]   ;;  %v7139_v7 = vld [vmem:[#allocation10 + $0x424] ss:$8 sps:$4 sm:$0xff]  }
 0x3cd   :  { %1752 = vmatprep.mubr.bf16.mxu1 %v1526_v9  ;;  %v7142_v9 = vld [vmem:[#allocation10 + $0x434] ss:$8 sps:$4 sm:$0xff]  }
 0x3ce   :  { %1753 = vmatmul.mubr.bf16.vlgmr.msra.gmra.mrb[12].mxu1 %v1525_v8  ;;  %v7137_v8 = vld [vmem:[#allocation10 + $0x420] ss:$8 sps:$4 sm:$0xff]  }
 0x3cf   :  { %1779 = vmatpush1.bf16.msra.mxu1 %v8097_v29  ;;  %1810 = vmatprep.mubr.bf16.mxu1 %v7909_v0 }
 0x3d0   :  { %1821 = vmatprep.subr.bf16.mxu1 %v8095_v28 }
 0x3d6   :  { %6320 = vmatmul.mubr.msk.bf16.vlgmr.msra.gmra.mrb[32].mxu1 %vm519_vm4, %v7081_v10 }
 0x3d7   :  { %1822 = vmatpush1.bf16.msra.mxu1 %v8099_v30  ;;  %1853 = vmatprep.mubr.bf16.mxu1 %v7909_v0 }
 0x3d8   :  { %2067 = vmatprep.subr.bf16.mxu1 %v7084_v11  ;;  %v7145_v11 = vld [vmem:[#allocation10 + $0x444] ss:$8 sps:$4 sm:$0xff]  }
 0x3de   :  { %6321 = vmatmul.mubr.msk.bf16.vlgmr.msra.gmra.mrb[36].mxu1 %vm519_vm4, %v7081_v10  ;;  %v7140_v10 = vld [vmem:[#allocation10 + $0x430] ss:$8 sps:$4 sm:$0xff]  }
 0x3df   :  { %2068 = vmatpush1.bf16.msra.mxu1 %v7082_v12  ;;  %v7143_v12 = vld [vmem:[#allocation10 + $0x440] ss:$8 sps:$4 sm:$0xff]  }
 0x3e0   :  { %2069 = vmatprep.subr.bf16.mxu1 %v7087_v13  ;;  %v7148_v13 = vld [vmem:[#allocation10 + $0x454] ss:$8 sps:$4 sm:$0xff]  }
 0x3e3   :  { %2070 = vmatpush1.bf16.msra.mxu1 %v7085_v14  ;;  %v7146_v14 = vld [vmem:[#allocation10 + $0x450] ss:$8 sps:$4 sm:$0xff]  }
 0x3e4   :  { %2071 = vmatprep.subr.bf16.mxu1 %v7090_v15  ;;  %v7151_v15 = vld [vmem:[#allocation10 + $0x464] ss:$8 sps:$4 sm:$0xff]  }
 0x3e7   :  { %2072 = vmatpush1.bf16.msra.mxu1 %v7088_v16  ;;  %v7149_v16 = vld [vmem:[#allocation10 + $0x460] ss:$8 sps:$4 sm:$0xff]  }
 0x3e8   :  { %2073 = vmatprep.subr.bf16.mxu1 %v7093_v17  ;;  %v7154_v17 = vld [vmem:[#allocation10 + $0x474] ss:$8 sps:$4 sm:$0xff]  }
 0x3eb   :  { %2074 = vmatpush1.bf16.msra.mxu1 %v7091_v18  ;;  %v7152_v18 = vld [vmem:[#allocation10 + $0x470] ss:$8 sps:$4 sm:$0xff]  }
 0x3ec   :  { %2075 = vmatprep.subr.bf16.mxu1 %v7096_v19  ;;  %v7157_v19 = vld [vmem:[#allocation10 + $0x484] ss:$8 sps:$4 sm:$0xff]  }
 0x3ef   :  { %2076 = vmatpush1.bf16.msra.mxu1 %v7094_v20  ;;  %v7155_v20 = vld [vmem:[#allocation10 + $0x480] ss:$8 sps:$4 sm:$0xff]  }
 0x3f0   :  { %2077 = vmatprep.subr.bf16.mxu1 %v7099_v21  ;;  %v7160_v21 = vld [vmem:[#allocation10 + $0x494] ss:$8 sps:$4 sm:$0xff]  }
 0x3f3   :  { %2078 = vmatpush1.bf16.msra.mxu1 %v7097_v22  ;;  %v7158_v22 = vld [vmem:[#allocation10 + $0x490] ss:$8 sps:$4 sm:$0xff]  }
 0x3f4   :  { %2079 = vmatprep.subr.bf16.mxu1 %v7102_v23  ;;  %v7163_v23 = vld [vmem:[#allocation10 + $0x4a4] ss:$8 sps:$4 sm:$0xff]  }
 0x3f7   :  { %2080 = vmatpush1.bf16.msra.mxu1 %v7100_v24  ;;  %v7161_v24 = vld [vmem:[#allocation10 + $0x4a0] ss:$8 sps:$4 sm:$0xff]  }
 0x3f8   :  { %2081 = vmatprep.subr.bf16.mxu1 %v7105_v25  ;;  %v7166_v25 = vld [vmem:[#allocation10 + $0x4b4] ss:$8 sps:$4 sm:$0xff]  }
 0x3fb   :  { %2082 = vmatpush1.bf16.msra.mxu1 %v7103_v26  ;;  %v7164_v26 = vld [vmem:[#allocation10 + $0x4b0] ss:$8 sps:$4 sm:$0xff]  }
 0x3fc   :  { %2083 = vmatprep.subr.bf16.mxu1 %v7108_v31  ;;  %v7169_v31 = vld [vmem:[#allocation10 + $0x4c4] ss:$8 sps:$4 sm:$0xff]  }
 0x3ff   :  { %2084 = vmatpush1.bf16.msra.mxu1 %v7106_v32  ;;  %v7167_v32 = vld [vmem:[#allocation10 + $0x4c0] ss:$8 sps:$4 sm:$0xff]  }
 0x400   :  { %2085 = vmatprep.subr.bf16.mxu1 %v7111_v33  ;;  %v7172_v33 = vld [vmem:[#allocation10 + $0x4d4] ss:$8 sps:$4 sm:$0xff]  }
 0x403   :  { %2086 = vmatpush1.bf16.msra.mxu1 %v7109_v34  ;;  %v7170_v34 = vld [vmem:[#allocation10 + $0x4d0] ss:$8 sps:$4 sm:$0xff]  }
 0x404   :  { %2087 = vmatprep.subr.bf16.mxu1 %v7114_v35  ;;  %v7175_v35 = vld [vmem:[#allocation10 + $0x4e4] ss:$8 sps:$4 sm:$0xff]  }
 0x407   :  { %2088 = vmatpush1.bf16.msra.mxu1 %v7112_v36  ;;  %v7173_v36 = vld [vmem:[#allocation10 + $0x4e0] ss:$8 sps:$4 sm:$0xff]  }
 0x408   :  { %2089 = vmatprep.subr.bf16.mxu1 %v7117_v37  ;;  %v7178_v37 = vld [vmem:[#allocation10 + $0x4f4] ss:$8 sps:$4 sm:$0xff]  }
 0x40b   :  { %2090 = vmatpush1.bf16.msra.mxu1 %v7115_v38  ;;  %v7176_v38 = vld [vmem:[#allocation10 + $0x4f0] ss:$8 sps:$4 sm:$0xff]  }
 0x40c   :  { %2091 = vmatprep.subr.bf16.mxu1 %v7120_v39  ;;  %v7182_v39 = vld [vmem:[#allocation10 + $0x500] ss:$8 sps:$4 sm:$0xff]  }
 0x40f   :  { %2092 = vmatpush1.bf16.msra.mxu1 %v7118_v40  ;;  %v7184_v40 = vld [vmem:[#allocation10 + $0x504] ss:$8 sps:$4 sm:$0xff]  }
 0x410   :  { %2093 = vmatprep.subr.bf16.mxu1 %v7123_v41  ;;  %v7187_v41 = vld [vmem:[#allocation10 + $0x514] ss:$8 sps:$4 sm:$0xff]   ;;  %2761 = vmatprep.subr.bf16.mxu0 %v7184_v40 }
 0x411   :  { %2762 = vmatpush1.bf16.msra.mxu0 %v7182_v39 }
 0x412   :  { %2763 = vmatprep.subr.bf16.mxu0 %v7187_v41 }
 0x413   :  { %2094 = vmatpush1.bf16.msra.mxu1 %v7121_v42  ;;  %v7185_v42 = vld [vmem:[#allocation10 + $0x510] ss:$8 sps:$4 sm:$0xff]  }
 0x414   :  { %2095 = vmatprep.subr.bf16.mxu1 %v7126_v43  ;;  %v7190_v43 = vld [vmem:[#allocation10 + $0x524] ss:$8 sps:$4 sm:$0xff]  }
 0x415   :  { %2764 = vmatpush1.bf16.msra.mxu0 %v7185_v42 }
 0x416   :  { %2765 = vmatprep.subr.bf16.mxu0 %v7190_v43 }
 0x417   :  { %2096 = vmatpush1.bf16.msra.mxu1 %v7124_v44  ;;  %v7188_v44 = vld [vmem:[#allocation10 + $0x520] ss:$8 sps:$4 sm:$0xff]  }
 0x418   :  { %2097 = vmatprep.subr.bf16.mxu1 %v7129_v45  ;;  %v7193_v45 = vld [vmem:[#allocation10 + $0x534] ss:$8 sps:$4 sm:$0xff]  }
 0x419   :  { %2766 = vmatpush1.bf16.msra.mxu0 %v7188_v44 }
 0x41a   :  { %2767 = vmatprep.subr.bf16.mxu0 %v7193_v45 }
 0x41b   :  { %2098 = vmatpush1.bf16.msra.mxu1 %v7127_v46  ;;  %v7191_v46 = vld [vmem:[#allocation10 + $0x530] ss:$8 sps:$4 sm:$0xff]  }
 0x41c   :  { %2125 = vmatprep.subr.bf16.mxu1 %v8093_v27 }
 0x41d   :  { %2768 = vmatpush1.bf16.msra.mxu0 %v7191_v46 }
 0x4a9   :  { %v1812_v47 = vpop.f32.mrb[32].mxu1 }
 0x4aa   :  { %v1814_v48 = vpop.f32.mrb[33].mxu1 }
 0x4ab   :  { %v1816_v49 = vpop.f32.mrb[34].mxu1 }
 0x4ac   :  { %v1818_v50 = vpop.f32.mrb[35].mxu1 }
 0x4b1   :  { %v1855_v51 = vpop.f32.mrb[36].mxu1 }
 0x4b2   :  { %v1864_v52 = vmax.f32 %v1812_v47, %v1855_v51  ;;  %v1857_v53 = vpop.f32.mrb[37].mxu1  ;;  %v7196_v47 = vld [vmem:[#allocation10 + $0x544] ss:$8 sps:$4 sm:$0xff]  }
 0x4b3   :  { %v1865_v54 = vmax.f32 %v1814_v48, %v1857_v53  ;;  %v1859_v55 = vpop.f32.mrb[38].mxu1  ;;  %v7194_v48 = vld [vmem:[#allocation10 + $0x540] ss:$8 sps:$4 sm:$0xff]   ;;  %2769 = vmatprep.subr.bf16.mxu0 %v7196_v47  ;;  %v7203_v51 = vld [vmem:[#allocation10 + $0x564] ss:$8 sps:$4 sm:$0xff]  }
 0x4b4   :  { %v1866_v56 = vmax.f32 %v1816_v49, %v1859_v55  ;;  %v1861_v57 = vpop.f32.mrb[39].mxu1  ;;  %v1868_v59 = vmax.f32 %v1864_v52, 0.0  ;;  %v7200_v49 = vld [vmem:[#allocation10 + $0x554] ss:$8 sps:$4 sm:$0xff]   ;;  %2770 = vmatpush1.bf16.msra.mxu0 %v7194_v48  ;;  %v7201_v52 = vld [vmem:[#allocation10 + $0x560] ss:$8 sps:$4 sm:$0xff]  }
 0x4b5   :  { %v1867_v58 = vmax.f32 %v1818_v50, %v1861_v57  ;;  %v1869_v61 = vmax.f32 %v1865_v54, 0.0  ;;  %v7198_v50 = vld [vmem:[#allocation10 + $0x550] ss:$8 sps:$4 sm:$0xff]   ;;  %2771 = vmatprep.subr.bf16.mxu0 %v7200_v49  ;;  %v7206_v53 = vld [vmem:[#allocation10 + $0x574] ss:$8 sps:$4 sm:$0xff]  }
 0x4b6   :  { %v1870_v60 = vmax.f32 %v1866_v56, 0.0  ;;  %v7204_v54 = vld [vmem:[#allocation10 + $0x570] ss:$8 sps:$4 sm:$0xff]   ;;  %v7209_v55 = vld [vmem:[#allocation10 + $0x584] ss:$8 sps:$4 sm:$0xff]  }
 0x4b7   :  { %v1871_v62 = vmax.f32 %v1867_v58, 0.0  ;;  %v7207_v56 = vld [vmem:[#allocation10 + $0x580] ss:$8 sps:$4 sm:$0xff]   ;;  %v7212_v57 = vld [vmem:[#allocation10 + $0x594] ss:$8 sps:$4 sm:$0xff]  }
 0x4b8   :  { %v1872_v63 = vpack.c.bf16 %v1870_v60, %v1868_v59  ;;  %2772 = vmatpush1.bf16.msra.mxu0 %v7198_v50  ;;  %v7210_v58 = vld [vmem:[#allocation10 + $0x590] ss:$8 sps:$4 sm:$0xff]  }
 0x4b9   :  { %v1873_v1 = vpack.c.bf16 %v1871_v62, %v1869_v61  ;;  %2773 = vmatprep.subr.bf16.mxu0 %v7203_v51 }
 0x4bb   :  { %2099 = vmatprep.mubr.bf16.mxu1 %v1873_v1 }
 0x4bc   :  { %2100 = vmatmul.mubr.bf16.vlgmr.msra.gmra.mrb[12].mxu1 %v1872_v63  ;;  %2774 = vmatpush1.bf16.msra.mxu0 %v7201_v52 }
 0x4bd   :  { %2126 = vmatpush1.bf16.msra.mxu1 %v8097_v29  ;;  %2157 = vmatprep.mubr.bf16.mxu1 %v7909_v0 }
 0x4be   :  { %2168 = vmatprep.subr.bf16.mxu1 %v8095_v28  ;;  %2775 = vmatprep.subr.bf16.mxu0 %v7206_v53 }
 0x4c0   :  { %2776 = vmatpush1.bf16.msra.mxu0 %v7204_v54 }
 0x4c1   :  { %2777 = vmatprep.subr.bf16.mxu0 %v7209_v55 }
 0x4c4   :  { %6355 = vmatmul.mubr.msk.bf16.vlgmr.msra.gmra.mrb[40].mxu1 %vm519_vm4, %v7130_v2  ;;  %2778 = vmatpush1.bf16.msra.mxu0 %v7207_v56 }
 0x4c5   :  { %2169 = vmatpush1.bf16.msra.mxu1 %v8099_v30  ;;  %2200 = vmatprep.mubr.bf16.mxu1 %v7909_v0 }
 0x4c6   :  { %2414 = vmatprep.subr.bf16.mxu1 %v7133_v3  ;;  %2779 = vmatprep.subr.bf16.mxu0 %v7212_v57 }
 0x4c8   :  { %2780 = vmatpush1.bf16.msra.mxu0 %v7210_v58 }
 0x4cc   :  { %6356 = vmatmul.mubr.msk.bf16.vlgmr.msra.gmra.mrb[44].mxu1 %vm519_vm4, %v7130_v2 }
 0x4cd   :  { %2415 = vmatpush1.bf16.msra.mxu1 %v7131_v4 }
 0x4ce   :  { %2416 = vmatprep.subr.bf16.mxu1 %v7136_v5 }
 0x4d1   :  { %2417 = vmatpush1.bf16.msra.mxu1 %v7134_v6 }
 0x4d2   :  { %2418 = vmatprep.subr.bf16.mxu1 %v7139_v7 }
 0x4d5   :  { %2419 = vmatpush1.bf16.msra.mxu1 %v7137_v8 }
 0x4d6   :  { %2420 = vmatprep.subr.bf16.mxu1 %v7142_v9 }
 0x4d9   :  { %2421 = vmatpush1.bf16.msra.mxu1 %v7140_v10 }
 0x4da   :  { %2422 = vmatprep.subr.bf16.mxu1 %v7145_v11 }
 0x4dd   :  { %2423 = vmatpush1.bf16.msra.mxu1 %v7143_v12 }
 0x4de   :  { %2424 = vmatprep.subr.bf16.mxu1 %v7148_v13 }
 0x4e1   :  { %2425 = vmatpush1.bf16.msra.mxu1 %v7146_v14  ;;  %v7179_v14 = vld [vmem:[#allocation2 + $0x28] sm:$0xff]  }
 0x4e2   :  { %2426 = vmatprep.subr.bf16.mxu1 %v7151_v15  ;;  %v7180_v15 = vld [vmem:[#allocation2 + $0x30] sm:$0xff]  }
 0x4e5   :  { %2427 = vmatpush1.bf16.msra.mxu1 %v7149_v16  ;;  %v7181_v16 = vld [vmem:[#allocation2 + $0x38] sm:$0xff]  }
 0x4e6   :  { %2428 = vmatprep.subr.bf16.mxu1 %v7154_v17  ;;  %v7197_v17 = vld [vmem:[#allocation2 + $0x40] sm:$0xff]  }
 0x4e9   :  { %2429 = vmatpush1.bf16.msra.mxu1 %v7152_v18  ;;  %v7215_v18 = vld [vmem:[#allocation10 + $0x5a4] ss:$8 sps:$4 sm:$0xff]  }
 0x4ea   :  { %2430 = vmatprep.subr.bf16.mxu1 %v7157_v19  ;;  %v7213_v19 = vld [vmem:[#allocation10 + $0x5a0] ss:$8 sps:$4 sm:$0xff]   ;;  %2781 = vmatprep.subr.bf16.mxu0 %v7215_v18 }
 0x4eb   :  { %2782 = vmatpush1.bf16.msra.mxu0 %v7213_v19 }
 0x4ed   :  { %2431 = vmatpush1.bf16.msra.mxu1 %v7155_v20  ;;  %v7216_v20 = vld [vmem:[#allocation10 + $0x5b0] ss:$8 sps:$4 sm:$0xff]  }
 0x4ee   :  { %2432 = vmatprep.subr.bf16.mxu1 %v7160_v21  ;;  %v7218_v21 = vld [vmem:[#allocation10 + $0x5b4] ss:$8 sps:$4 sm:$0xff]  }
 0x4ef   :  { %2783 = vmatprep.subr.bf16.mxu0 %v7218_v21  ;;  %v7243_v21 = vld [vmem:[#allocation10 + $0x640] ss:$8 sps:$4 sm:$0xff]  }
 0x4f0   :  { %2784 = vmatpush1.bf16.msra.mxu0 %v7216_v20 }
 0x4f1   :  { %2433 = vmatpush1.bf16.msra.mxu1 %v7158_v22  ;;  %v7221_v22 = vld [vmem:[#allocation10 + $0x5c4] ss:$8 sps:$4 sm:$0xff]  }
 0x4f2   :  { %2434 = vmatprep.subr.bf16.mxu1 %v7163_v23  ;;  %v7219_v23 = vld [vmem:[#allocation10 + $0x5c0] ss:$8 sps:$4 sm:$0xff]   ;;  %2785 = vmatprep.subr.bf16.mxu0 %v7221_v22 }
 0x4f4   :  { %2786 = vmatpush1.bf16.msra.mxu0 %v7219_v23 }
 0x4f5   :  { %2435 = vmatpush1.bf16.msra.mxu1 %v7161_v24  ;;  %v7222_v24 = vld [vmem:[#allocation10 + $0x5d0] ss:$8 sps:$4 sm:$0xff]  }
 0x4f6   :  { %2436 = vmatprep.subr.bf16.mxu1 %v7166_v25  ;;  %v7224_v25 = vld [vmem:[#allocation10 + $0x5d4] ss:$8 sps:$4 sm:$0xff]  }
 0x4f7   :  { %2787 = vmatprep.subr.bf16.mxu0 %v7224_v25 }
 0x4f8   :  { %2788 = vmatpush1.bf16.msra.mxu0 %v7222_v24  ;;  %v7249_v24 = vld [vmem:[#allocation10 + $0x654] ss:$8 sps:$4 sm:$0xff]  }
 0x4f9   :  { %2437 = vmatpush1.bf16.msra.mxu1 %v7164_v26  ;;  %v7227_v26 = vld [vmem:[#allocation10 + $0x5e4] ss:$8 sps:$4 sm:$0xff]  }
 0x4fa   :  { %2438 = vmatprep.subr.bf16.mxu1 %v7169_v31  ;;  %v7225_v31 = vld [vmem:[#allocation10 + $0x5e0] ss:$8 sps:$4 sm:$0xff]   ;;  %2789 = vmatprep.subr.bf16.mxu0 %v7227_v26  ;;  %v7344_v26 = vld [vmem:[#allocation2 + $0x58] sm:$0xff]  }
 0x4fc   :  { %2790 = vmatpush1.bf16.msra.mxu0 %v7225_v31 }
 0x4fd   :  { %2439 = vmatpush1.bf16.msra.mxu1 %v7167_v32  ;;  %v7230_v32 = vld [vmem:[#allocation10 + $0x5f4] ss:$8 sps:$4 sm:$0xff]  }
 0x4fe   :  { %2440 = vmatprep.subr.bf16.mxu1 %v7172_v33  ;;  %v7228_v33 = vld [vmem:[#allocation10 + $0x5f0] ss:$8 sps:$4 sm:$0xff]   ;;  %2791 = vmatprep.subr.bf16.mxu0 %v7230_v32 }
 0x500   :  { %2792 = vmatpush1.bf16.msra.mxu0 %v7228_v33  ;;  %v7247_v33 = vld [vmem:[#allocation10 + $0x650] ss:$8 sps:$4 sm:$0xff]  }
 0x501   :  { %2441 = vmatpush1.bf16.msra.mxu1 %v7170_v34  ;;  %v7233_v34 = vld [vmem:[#allocation10 + $0x604] ss:$8 sps:$4 sm:$0xff]  }
 0x502   :  { %2442 = vmatprep.subr.bf16.mxu1 %v7175_v35  ;;  %3108 = vmatprep.subr.bf16.mxu0 %v7233_v34  ;;  %v7246_v35 = vld [vmem:[#allocation2 + $0x48] sm:$0xff]  }
 0x503   :  { %v7252_v34 = vld [vmem:[#allocation10 + $0x664] ss:$8 sps:$4 sm:$0xff]  }
 0x505   :  { %2443 = vmatpush1.bf16.msra.mxu1 %v7173_v36  ;;  %v7295_v36 = vld [vmem:[#allocation2 + $0x50] sm:$0xff]  }
 0x506   :  { %2444 = vmatprep.subr.bf16.mxu1 %v7178_v37 }
 0x509   :  { %2445 = vmatpush1.bf16.msra.mxu1 %v7176_v38 }
 0x50a   :  { %2472 = vmatprep.subr.bf16.mxu1 %v8093_v27 }
 0x597   :  { %v2159_v59 = vpop.f32.mrb[40].mxu1 }
 0x598   :  { %v2161_v60 = vpop.f32.mrb[41].mxu1 }
 0x599   :  { %v2163_v61 = vpop.f32.mrb[42].mxu1 }
 0x59a   :  { %v2165_v62 = vpop.f32.mrb[43].mxu1 }
 0x59f   :  { %v2202_v63 = vpop.f32.mrb[44].mxu1 }
 0x5a0   :  { %v2211_v1 = vmax.f32 %v2159_v59, %v2202_v63  ;;  %v2204_v2 = vpop.f32.mrb[45].mxu1  ;;  %v7231_v59 = vld [vmem:[#allocation10 + $0x600] ss:$8 sps:$4 sm:$0xff]  }
 0x5a1   :  { %v2212_v3 = vmax.f32 %v2161_v60, %v2204_v2  ;;  %v2206_v4 = vpop.f32.mrb[46].mxu1  ;;  %v7234_v2 = vld [vmem:[#allocation10 + $0x610] ss:$8 sps:$4 sm:$0xff]  }
 0x5a2   :  { %v2213_v5 = vmax.f32 %v2163_v61, %v2206_v4  ;;  %v2208_v6 = vpop.f32.mrb[47].mxu1  ;;  %v2215_v8 = vmax.f32 %v2211_v1, 0.0  ;;  %v7236_v61 = vld [vmem:[#allocation10 + $0x614] ss:$8 sps:$4 sm:$0xff]   ;;  %v7237_v4 = vld [vmem:[#allocation10 + $0x620] ss:$8 sps:$4 sm:$0xff]  }
 0x5a3   :  { %v2214_v7 = vmax.f32 %v2165_v62, %v2208_v6  ;;  %v2216_v10 = vmax.f32 %v2212_v3, 0.0  ;;  %v7239_v3 = vld [vmem:[#allocation10 + $0x624] ss:$8 sps:$4 sm:$0xff]   ;;  %v7242_v6 = vld [vmem:[#allocation10 + $0x634] ss:$8 sps:$4 sm:$0xff]  }
 0x5a4   :  { %v2217_v9 = vmax.f32 %v2213_v5, 0.0 }
 0x5a5   :  { %v2218_v11 = vmax.f32 %v2214_v7, 0.0 }
 0x5a6   :  { %v2219_v12 = vpack.c.bf16 %v2217_v9, %v2215_v8 }
 0x5a7   :  { %v2220_v13 = vpack.c.bf16 %v2218_v11, %v2216_v10 }
 0x5a9   :  { %2446 = vmatprep.mubr.bf16.mxu1 %v2220_v13 }
 0x5aa   :  { %2447 = vmatmul.mubr.bf16.vlgmr.msra.gmra.mrb[12].mxu1 %v2219_v12 }
 0x5ab   :  { %2473 = vmatpush1.bf16.msra.mxu1 %v8097_v29  ;;  %2504 = vmatprep.mubr.bf16.mxu1 %v7909_v0 }
 0x5ac   :  { %2515 = vmatprep.subr.bf16.mxu1 %v8095_v28 }
 0x5b2   :  { %6390 = vmatmul.mubr.msk.bf16.vlgmr.msra.gmra.mrb[48].mxu1 %vm519_vm4, %v7179_v14 }
 0x5b3   :  { %2516 = vmatpush1.bf16.msra.mxu1 %v8099_v30  ;;  %2547 = vmatprep.mubr.bf16.mxu1 %v7909_v0 }
 0x5b4   :  { %2819 = vmatprep.subr.bf16.mxu1 %v8093_v27 }
 0x5ba   :  { %6391 = vmatmul.mubr.msk.bf16.vlgmr.msra.gmra.mrb[52].mxu1 %vm519_vm4, %v7179_v14  ;;  %v7240_v14 = vld [vmem:[#allocation10 + $0x630] ss:$8 sps:$4 sm:$0xff]  }
 0x5bb   :  { %2820 = vmatpush1.bf16.msra.mxu1 %v8097_v29  ;;  %2851 = vmatprep.mubr.bf16.mxu1 %v7909_v0 }
 0x5bc   :  { %2862 = vmatprep.subr.bf16.mxu1 %v8095_v28 }
 0x5c2   :  { %6425 = vmatmul.mubr.msk.bf16.vlgmr.msra.gmra.mrb[56].mxu1 %vm519_vm4, %v7180_v15 }
 0x5c3   :  { %2863 = vmatpush1.bf16.msra.mxu1 %v8099_v30  ;;  %2894 = vmatprep.mubr.bf16.mxu1 %v7909_v0 }
 0x5c4   :  { %3166 = vmatprep.subr.bf16.mxu1 %v8093_v27 }
 0x5ca   :  { %6426 = vmatmul.mubr.msk.bf16.vlgmr.msra.gmra.mrb[60].mxu1 %vm519_vm4, %v7180_v15 }
 0x5cb   :  { %3167 = vmatpush1.bf16.msra.mxu1 %v8097_v29  ;;  %3198 = vmatprep.mubr.bf16.mxu1 %v7909_v0 }
 0x5cc   :  { %3209 = vmatprep.subr.bf16.mxu1 %v8095_v28 }
 0x5d2   :  { %6460 = vmatmul.mubr.msk.bf16.vlgmr.msra.gmra.mrb[64].mxu1 %vm519_vm4, %v7181_v16 }
 0x5d3   :  { %3210 = vmatpush1.bf16.msra.mxu1 %v8099_v30  ;;  %3241 = vmatprep.mubr.bf16.mxu1 %v7909_v0 }
 0x5d4   :  { %3513 = vmatprep.subr.bf16.mxu1 %v8093_v27 }
 0x5da   :  { %6461 = vmatmul.mubr.msk.bf16.vlgmr.msra.gmra.mrb[68].mxu1 %vm519_vm4, %v7181_v16 }
 0x5db   :  { %3514 = vmatpush1.bf16.msra.mxu1 %v8097_v29  ;;  %3545 = vmatprep.mubr.bf16.mxu1 %v7909_v0 }
 0x5dc   :  { %3556 = vmatprep.subr.bf16.mxu1 %v8095_v28 }
 0x5e2   :  { %6495 = vmatmul.mubr.msk.bf16.vlgmr.msra.gmra.mrb[72].mxu1 %vm519_vm4, %v7197_v17 }
 0x5e3   :  { %3557 = vmatpush1.bf16.msra.mxu1 %v8099_v30  ;;  %3588 = vmatprep.mubr.bf16.mxu1 %v7909_v0 }
 0x5e4   :  { %3860 = vmatprep.subr.bf16.mxu1 %v8093_v27 }
 0x5ea   :  { %6496 = vmatmul.mubr.msk.bf16.vlgmr.msra.gmra.mrb[76].mxu1 %vm519_vm4, %v7197_v17  ;;  %v7245_v17 = vld [vmem:[#allocation10 + $0x644] ss:$8 sps:$4 sm:$0xff]  }
 0x5eb   :  { %3861 = vmatpush1.bf16.msra.mxu1 %v8097_v29  ;;  %3892 = vmatprep.mubr.bf16.mxu1 %v7909_v0 }
 0x5ec   :  { %3903 = vmatprep.subr.bf16.mxu1 %v8095_v28 }
 0x5f2   :  { %6530 = vmatmul.mubr.msk.bf16.vlgmr.msra.gmra.mrb[80].mxu1 %vm519_vm4, %v7246_v35 }
 0x5f3   :  { %3904 = vmatpush1.bf16.msra.mxu1 %v8099_v30  ;;  %3935 = vmatprep.mubr.bf16.mxu1 %v7909_v0 }
 0x5f4   :  { %4207 = vmatprep.subr.bf16.mxu1 %v8093_v27 }
 0x5fa   :  { %6531 = vmatmul.mubr.msk.bf16.vlgmr.msra.gmra.mrb[84].mxu1 %vm519_vm4, %v7246_v35  ;;  %v7250_v35 = vld [vmem:[#allocation10 + $0x660] ss:$8 sps:$4 sm:$0xff]  }
 0x5fb   :  { %4208 = vmatpush1.bf16.msra.mxu1 %v8097_v29  ;;  %4239 = vmatprep.mubr.bf16.mxu1 %v7909_v0 }
 0x5fc   :  { %4250 = vmatprep.subr.bf16.mxu1 %v8095_v28 }
 0x602   :  { %6565 = vmatmul.mubr.msk.bf16.vlgmr.msra.gmra.mrb[88].mxu1 %vm519_vm4, %v7295_v36 }
 0x603   :  { %4251 = vmatpush1.bf16.msra.mxu1 %v8099_v30  ;;  %4282 = vmatprep.mubr.bf16.mxu1 %v7909_v0 }
 0x604   :  { %4554 = vmatprep.subr.bf16.mxu1 %v8093_v27 }
 0x60a   :  { %6566 = vmatmul.mubr.msk.bf16.vlgmr.msra.gmra.mrb[92].mxu1 %vm519_vm4, %v7295_v36 }
 0x60b   :  { %4555 = vmatpush1.bf16.msra.mxu1 %v8097_v29  ;;  %4586 = vmatprep.mubr.bf16.mxu1 %v7909_v0 }
 0x60c   :  { %4597 = vmatprep.subr.bf16.mxu1 %v8095_v28 }
 0x612   :  { %6600 = vmatmul.mubr.msk.bf16.vlgmr.msra.gmra.mrb[96].mxu1 %vm519_vm4, %v7344_v26 }
 0x613   :  { %4598 = vmatpush1.bf16.msra.mxu1 %v8099_v30  ;;  %4629 = vmatprep.mubr.bf16.mxu1 %v7909_v0 }
 0x614   :  { %4901 = vmatprep.subr.bf16.mxu1 %v8093_v27 }
 0x61a   :  { %6601 = vmatmul.mubr.msk.bf16.vlgmr.msra.gmra.mrb[100].mxu1 %vm519_vm4, %v7344_v26 }
 0x61b   :  { %4902 = vmatpush1.bf16.msra.mxu1 %v8097_v29  ;;  %4933 = vmatprep.mubr.bf16.mxu1 %v7909_v0 }
 0x61c   :  { %4944 = vmatprep.subr.bf16.mxu1 %v8095_v28 }
 0x67d   :  { %v8204_v37 = vpop.f32.mrb[12].mxu1 }
 0x67e   :  { %v8206_v38 = vpop.f32.mrb[13].mxu1 }
 0x67f   :  { %v8208_v39 = vpop.f32.mrb[14].mxu1 }
 0x680   :  { %v8210_v40 = vpop.f32.mrb[15].mxu1 }
 0x685   :  { %v2506_v41 = vpop.f32.mrb[48].mxu1 }
 0x686   :  { %v2508_v42 = vpop.f32.mrb[49].mxu1 }
 0x687   :  { %v2510_v43 = vpop.f32.mrb[50].mxu1 }
 0x688   :  { %v2512_v44 = vpop.f32.mrb[51].mxu1 }
 0x68d   :  { %v2549_v45 = vpop.f32.mrb[52].mxu1 }
 0x68e   :  { %v2558_v46 = vmax.f32 %v2506_v41, %v2549_v45  ;;  %v2551_v47 = vpop.f32.mrb[53].mxu1  ;;  %v7255_v41 = vld [vmem:[#allocation10 + $0x674] ss:$8 sps:$4 sm:$0xff]  }
 0x68f   :  { %v2559_v48 = vmax.f32 %v2508_v42, %v2551_v47  ;;  %v2553_v49 = vpop.f32.mrb[54].mxu1 }
 0x690   :  { %v2560_v50 = vmax.f32 %v2510_v43, %v2553_v49  ;;  %v2555_v51 = vpop.f32.mrb[55].mxu1  ;;  %v2562_v53 = vmax.f32 %v2558_v46, 0.0  ;;  %v7253_v49 = vld [vmem:[#allocation10 + $0x670] ss:$8 sps:$4 sm:$0xff]  }
 0x691   :  { %v2561_v52 = vmax.f32 %v2512_v44, %v2555_v51  ;;  %v2563_v55 = vmax.f32 %v2559_v48, 0.0 }
 0x692   :  { %v2564_v54 = vmax.f32 %v2560_v50, 0.0 }
 0x693   :  { %v2565_v56 = vmax.f32 %v2561_v52, 0.0  ;;  %v7258_v52 = vld [vmem:[#allocation10 + $0x684] ss:$8 sps:$4 sm:$0xff]  }
 0x694   :  { %v2566_v57 = vpack.c.bf16 %v2564_v54, %v2562_v53 }
 0x695   :  { %v2567_v58 = vpack.c.bf16 %v2565_v56, %v2563_v55  ;;  %v2853_v60 = vpop.f32.mrb[56].mxu1  ;;  %v7256_v56 = vld [vmem:[#allocation10 + $0x680] ss:$8 sps:$4 sm:$0xff]  }
 0x696   :  { %v2855_v62 = vpop.f32.mrb[57].mxu1 }
 0x697   :  { %2793 = vmatprep.mubr.bf16.mxu0 %v2567_v58  ;;  %v2857_v63 = vpop.f32.mrb[58].mxu1  ;;  %v7261_v58 = vld [vmem:[#allocation10 + $0x694] ss:$8 sps:$4 sm:$0xff]  }
 0x698   :  { %2794 = vmatmul.mubr.bf16.vlgmr.msra.gmra.mrb[12].mxu0 %v2566_v57  ;;  %v2859_v1 = vpop.f32.mrb[59].mxu1 }
 0x699   :  { %3109 = vmatpush1.bf16.msra.mxu0 %v7231_v59  ;;  %v7259_v59 = vld [vmem:[#allocation10 + $0x690] ss:$8 sps:$4 sm:$0xff]  }
 0x69a   :  { %3110 = vmatprep.subr.bf16.mxu0 %v7236_v61  ;;  %v7262_v61 = vld [vmem:[#allocation10 + $0x6a0] ss:$8 sps:$4 sm:$0xff]  }
 0x69d   :  { %3111 = vmatpush1.bf16.msra.mxu0 %v7234_v2  ;;  %v2896_v5 = vpop.f32.mrb[60].mxu1  ;;  %v7265_v2 = vld [vmem:[#allocation10 + $0x6b0] ss:$8 sps:$4 sm:$0xff]  }
 0x69e   :  { %3112 = vmatprep.subr.bf16.mxu0 %v7239_v3  ;;  %v2905_v7 = vmax.f32 %v2853_v60, %v2896_v5  ;;  %v2898_v8 = vpop.f32.mrb[61].mxu1  ;;  %v7264_v60 = vld [vmem:[#allocation10 + $0x6a4] ss:$8 sps:$4 sm:$0xff]  }
 0x69f   :  { %v2906_v9 = vmax.f32 %v2855_v62, %v2898_v8  ;;  %v2900_v10 = vpop.f32.mrb[62].mxu1 }
 0x6a0   :  { %v8212_v11 = vmax.f32 %v2905_v7, 0.0  ;;  %v2907_v12 = vmax.f32 %v2857_v63, %v2900_v10  ;;  %v2902_v13 = vpop.f32.mrb[63].mxu1  ;;  %v7267_v63 = vld [vmem:[#allocation10 + $0x6b4] ss:$8 sps:$4 sm:$0xff]  }
 0x6a1   :  { %3113 = vmatpush1.bf16.msra.mxu0 %v7237_v4  ;;  %v2910_v15 = vmax.f32 %v2906_v9, 0.0  ;;  %v2908_v16 = vmax.f32 %v2859_v1, %v2902_v13  ;;  %v7270_v4 = vld [vmem:[#allocation10 + $0x6c4] ss:$8 sps:$4 sm:$0xff]   ;;  %v7268_v9 = vld [vmem:[#allocation10 + $0x6c0] ss:$8 sps:$4 sm:$0xff]  }
 0x6a2   :  { %3114 = vmatprep.subr.bf16.mxu0 %v7242_v6  ;;  %v8214_v18 = vmax.f32 %v2907_v12, 0.0  ;;  %v7273_v13 = vld [vmem:[#allocation10 + $0x6d4] ss:$8 sps:$4 sm:$0xff]  }
 0x6a3   :  { %v2912_v19 = vmax.f32 %v2908_v16, 0.0 }
 0x6a4   :  { %v2913_v20 = vpack.c.bf16 %v8214_v18, %v8212_v11  ;;  %v7296_v11 = vld [vmem:[#allocation10 + $0x750] ss:$8 sps:$4 sm:$0xff]   ;;  %v7301_v18 = vld [vmem:[#allocation10 + $0x764] ss:$8 sps:$4 sm:$0xff]  }
 0x6a5   :  { %3115 = vmatpush1.bf16.msra.mxu0 %v7240_v14  ;;  %v2914_v22 = vpack.c.bf16 %v2912_v19, %v2910_v15  ;;  %v3200_v23 = vpop.f32.mrb[64].mxu1 }
 0x6a6   :  { %3116 = vmatprep.subr.bf16.mxu0 %v7245_v17  ;;  %v3202_v25 = vpop.f32.mrb[65].mxu1 }
 0x6a7   :  { %3140 = vmatprep.mubr.bf16.mxu0 %v2914_v22  ;;  %v3204_v31 = vpop.f32.mrb[66].mxu1  ;;  %v7271_v22 = vld [vmem:[#allocation10 + $0x6d0] ss:$8 sps:$4 sm:$0xff]  }
 0x6a8   :  { %v3206_v32 = vpop.f32.mrb[67].mxu1 }
 0x6a9   :  { %3117 = vmatpush1.bf16.msra.mxu0 %v7243_v21 }
 0x6aa   :  { %3118 = vmatprep.subr.bf16.mxu0 %v7249_v24  ;;  %v7276_v24 = vld [vmem:[#allocation10 + $0x6e4] ss:$8 sps:$4 sm:$0xff]  }
 0x6ad   :  { %3119 = vmatpush1.bf16.msra.mxu0 %v7247_v33  ;;  %v3243_v36 = vpop.f32.mrb[68].mxu1  ;;  %v7277_v33 = vld [vmem:[#allocation10 + $0x6f0] ss:$8 sps:$4 sm:$0xff]  }
 0x6ae   :  { %3120 = vmatprep.subr.bf16.mxu0 %v7252_v34  ;;  %v3252_v42 = vmax.f32 %v3200_v23, %v3243_v36  ;;  %v3245_v43 = vpop.f32.mrb[69].mxu1  ;;  %v7282_v34 = vld [vmem:[#allocation10 + $0x704] ss:$8 sps:$4 sm:$0xff]   ;;  %v7285_v36 = vld [vmem:[#allocation10 + $0x714] ss:$8 sps:$4 sm:$0xff]  }
 0x6af   :  { %v3253_v44 = vmax.f32 %v3202_v25, %v3245_v43  ;;  %v3247_v45 = vpop.f32.mrb[70].mxu1  ;;  %v7286_v43 = vld [vmem:[#allocation10 + $0x720] ss:$8 sps:$4 sm:$0xff]  }
 0x6b0   :  { %v8222_v46 = vmax.f32 %v3252_v42, 0.0  ;;  %v3254_v47 = vmax.f32 %v3204_v31, %v3247_v45  ;;  %v3249_v48 = vpop.f32.mrb[71].mxu1  ;;  %v7274_v31 = vld [vmem:[#allocation10 + $0x6e0] ss:$8 sps:$4 sm:$0xff]   ;;  %v7288_v42 = vld [vmem:[#allocation10 + $0x724] ss:$8 sps:$4 sm:$0xff]  }
 0x6b1   :  { %3121 = vmatpush1.bf16.msra.mxu0 %v7250_v35  ;;  %v8225_v50 = vmax.f32 %v3253_v44, 0.0  ;;  %v3255_v51 = vmax.f32 %v3206_v32, %v3249_v48  ;;  %v7279_v32 = vld [vmem:[#allocation10 + $0x6f4] ss:$8 sps:$4 sm:$0xff]   ;;  %v7280_v35 = vld [vmem:[#allocation10 + $0x700] ss:$8 sps:$4 sm:$0xff]  }
 0x6b2   :  { %3122 = vmatprep.subr.bf16.mxu0 %v7255_v41  ;;  %v8228_v53 = vmax.f32 %v3254_v47, 0.0  ;;  %v7283_v41 = vld [vmem:[#allocation10 + $0x710] ss:$8 sps:$4 sm:$0xff]   ;;  %v7291_v44 = vld [vmem:[#allocation10 + $0x734] ss:$8 sps:$4 sm:$0xff]  }
 0x6b3   :  { %v3259_v54 = vmax.f32 %v3255_v51, 0.0  ;;  %v7289_v45 = vld [vmem:[#allocation10 + $0x730] ss:$8 sps:$4 sm:$0xff]   ;;  %v7294_v47 = vld [vmem:[#allocation10 + $0x744] ss:$8 sps:$4 sm:$0xff]  }
 0x6b4   :  { %v3260_v55 = vpack.c.bf16 %v8228_v53, %v8222_v46  ;;  %v7292_v48 = vld [vmem:[#allocation10 + $0x740] ss:$8 sps:$4 sm:$0xff]   ;;  %v7304_v51 = vld [vmem:[#allocation10 + $0x774] ss:$8 sps:$4 sm:$0xff]  }
 0x6b5   :  { %3123 = vmatpush1.bf16.msra.mxu0 %v7253_v49  ;;  %v3261_v57 = vpack.c.bf16 %v3259_v54, %v8225_v50  ;;  %v3547_v62 = vpop.f32.mrb[72].mxu1  ;;  %v7298_v49 = vld [vmem:[#allocation10 + $0x754] ss:$8 sps:$4 sm:$0xff]   ;;  %v7307_v54 = vld [vmem:[#allocation10 + $0x784] ss:$8 sps:$4 sm:$0xff]  }
 0x6b6   :  { %3124 = vmatprep.subr.bf16.mxu0 %v7258_v52  ;;  %v3549_v1 = vpop.f32.mrb[73].mxu1  ;;  %v7393_v50 = vld [vmem:[#allocation2 + $0x60] sm:$0xff]   ;;  %v7442_v53 = vld [vmem:[#allocation2 + $0x68] sm:$0xff]  }
 0x6b7   :  { %v3551_v3 = vpop.f32.mrb[74].mxu1  ;;  %6635 = vmatmul.mubr.msk.bf16.vlgmr.msra.gmra.mrb[104].mxu1 %vm519_vm4, %v7393_v50  ;;  %v7302_v52 = vld [vmem:[#allocation10 + $0x770] ss:$8 sps:$4 sm:$0xff]   ;;  %v7347_v46 = vld [vmem:[#allocation10 + $0x854] ss:$8 sps:$4 sm:$0xff]  }
 0x6b8   :  { %v3553_v5 = vpop.f32.mrb[75].mxu1  ;;  %4945 = vmatpush1.bf16.msra.mxu1 %v8099_v30  ;;  %4976 = vmatprep.mubr.bf16.mxu1 %v7909_v0 }
 0x6b9   :  { %3125 = vmatpush1.bf16.msra.mxu0 %v7256_v56  ;;  %5248 = vmatprep.subr.bf16.mxu1 %v8093_v27  ;;  %v7305_v56 = vld [vmem:[#allocation10 + $0x780] ss:$8 sps:$4 sm:$0xff]  }
 0x6ba   :  { %3126 = vmatprep.subr.bf16.mxu0 %v7261_v58  ;;  %v7308_v58 = vld [vmem:[#allocation10 + $0x790] ss:$8 sps:$4 sm:$0xff]  }
 0x6bd   :  { %3127 = vmatpush1.bf16.msra.mxu0 %v7259_v59  ;;  %v3590_v6 = vpop.f32.mrb[76].mxu1  ;;  %v7313_v59 = vld [vmem:[#allocation10 + $0x7a4] ss:$8 sps:$4 sm:$0xff]  }
 0x6be   :  { %3128 = vmatprep.subr.bf16.mxu0 %v7264_v60  ;;  %v3599_v7 = vmax.f32 %v3547_v62, %v3590_v6  ;;  %v3592_v8 = vpop.f32.mrb[77].mxu1  ;;  %v7311_v60 = vld [vmem:[#allocation10 + $0x7a0] ss:$8 sps:$4 sm:$0xff]   ;;  %v7316_v62 = vld [vmem:[#allocation10 + $0x7b4] ss:$8 sps:$4 sm:$0xff]  }
 0x6bf   :  { %v3600_v10 = vmax.f32 %v3549_v1, %v3592_v8  ;;  %v3594_v12 = vpop.f32.mrb[78].mxu1  ;;  %6636 = vmatmul.mubr.msk.bf16.vlgmr.msra.gmra.mrb[108].mxu1 %vm519_vm4, %v7393_v50  ;;  %v7314_v1 = vld [vmem:[#allocation10 + $0x7b0] ss:$8 sps:$4 sm:$0xff]   ;;  %v7317_v8 = vld [vmem:[#allocation10 + $0x7c0] ss:$8 sps:$4 sm:$0xff]  }
 0x6c0   :  { %v8235_v14 = vmax.f32 %v3599_v7, 0.0  ;;  %v3601_v15 = vmax.f32 %v3551_v3, %v3594_v12  ;;  %v3596_v16 = vpop.f32.mrb[79].mxu1  ;;  %5249 = vmatpush1.bf16.msra.mxu1 %v8097_v29  ;;  %5280 = vmatprep.mubr.bf16.mxu1 %v7909_v0  ;;  %v7319_v3 = vld [vmem:[#allocation10 + $0x7c4] ss:$8 sps:$4 sm:$0xff]   ;;  %v7322_v12 = vld [vmem:[#allocation10 + $0x7d4] ss:$8 sps:$4 sm:$0xff]  }
 0x6c1   :  { %3129 = vmatpush1.bf16.msra.mxu0 %v7262_v61  ;;  %v8237_v17 = vmax.f32 %v3600_v10, 0.0  ;;  %v3602_v19 = vmax.f32 %v3553_v5, %v3596_v16  ;;  %5291 = vmatprep.subr.bf16.mxu1 %v8095_v28  ;;  %v7340_v50 = vld [vmem:[#allocation10 + $0x834] ss:$8 sps:$4 sm:$0xff]  }
 0x6c2   :  { %3130 = vmatprep.subr.bf16.mxu0 %v7267_v63  ;;  %v8239_v21 = vmax.f32 %v3601_v15, 0.0 }
 0x6c3   :  { %v8241_v23 = vmax.f32 %v3602_v19, 0.0 }
 0x6c4   :  { %v3607_v25 = vpack.c.bf16 %v8239_v21, %v8235_v14  ;;  %v7491_v14 = vld [vmem:[#allocation2 + $0x70] sm:$0xff]   ;;  %v7396_v21 = vld [vmem:[#allocation10 + $0x954] ss:$8 sps:$4 sm:$0xff]  }
 0x6c5   :  { %3131 = vmatpush1.bf16.msra.mxu0 %v7265_v2  ;;  %v3608_v26 = vpack.c.bf16 %v8241_v23, %v8237_v17  ;;  %v3894_v61 = vpop.f32.mrb[80].mxu1  ;;  %v7350_v17 = vld [vmem:[#allocation10 + $0x864] ss:$8 sps:$4 sm:$0xff]   ;;  %v7348_v23 = vld [vmem:[#allocation10 + $0x860] ss:$8 sps:$4 sm:$0xff]  }
 0x6c6   :  { %3132 = vmatprep.subr.bf16.mxu0 %v7270_v4  ;;  %v3896_v63 = vpop.f32.mrb[81].mxu1 }
 0x6c7   :  { %v3898_v2 = vpop.f32.mrb[82].mxu1  ;;  %6670 = vmatmul.mubr.msk.bf16.vlgmr.msra.gmra.mrb[112].mxu1 %vm519_vm4, %v7442_v53 }
 0x6c8   :  { %v3900_v4 = vpop.f32.mrb[83].mxu1  ;;  %5292 = vmatpush1.bf16.msra.mxu1 %v8099_v30  ;;  %5323 = vmatprep.mubr.bf16.mxu1 %v7909_v0 }
 0x6c9   :  { %3133 = vmatpush1.bf16.msra.mxu0 %v7268_v9  ;;  %5595 = vmatprep.subr.bf16.mxu1 %v8093_v27  ;;  %v7359_v27 = vld [vmem:[#allocation10 + $0x894] ss:$8 sps:$4 sm:$0xff]  }
 0x6ca   :  { %3134 = vmatprep.subr.bf16.mxu0 %v7273_v13 }
 0x6cd   :  { %3135 = vmatpush1.bf16.msra.mxu0 %v7271_v22  ;;  %v3937_v5 = vpop.f32.mrb[84].mxu1 }
 0x6ce   :  { %3136 = vmatprep.subr.bf16.mxu0 %v7276_v24  ;;  %v3946_v6 = vmax.f32 %v3894_v61, %v3937_v5  ;;  %v3939_v7 = vpop.f32.mrb[85].mxu1  ;;  %v7363_v61 = vld [vmem:[#allocation10 + $0x8b0] ss:$8 sps:$4 sm:$0xff]  }
 0x6cf   :  { %v3947_v9 = vmax.f32 %v3896_v63, %v3939_v7  ;;  %v3941_v10 = vpop.f32.mrb[86].mxu1  ;;  %6671 = vmatmul.mubr.msk.bf16.vlgmr.msra.gmra.mrb[116].mxu1 %vm519_vm4, %v7442_v53  ;;  %v7368_v63 = vld [vmem:[#allocation10 + $0x8c4] ss:$8 sps:$4 sm:$0xff]   ;;  %v7371_v7 = vld [vmem:[#allocation10 + $0x8d4] ss:$8 sps:$4 sm:$0xff]  }
 0x6d0   :  { %v8258_v13 = vmax.f32 %v3946_v6, 0.0  ;;  %v3948_v15 = vmax.f32 %v3898_v2, %v3941_v10  ;;  %v3943_v16 = vpop.f32.mrb[87].mxu1  ;;  %5596 = vmatpush1.bf16.msra.mxu1 %v8097_v29  ;;  %5627 = vmatprep.mubr.bf16.mxu1 %v7909_v0  ;;  %v7390_v53 = vld [vmem:[#allocation10 + $0x940] ss:$8 sps:$4 sm:$0xff]  }
 0x6d1   :  { %3137 = vmatpush1.bf16.msra.mxu0 %v7274_v31  ;;  %v8260_v19 = vmax.f32 %v3947_v9, 0.0  ;;  %v3949_v22 = vmax.f32 %v3900_v4, %v3943_v16  ;;  %v7320_v31 = vld [vmem:[#allocation10 + $0x7d0] ss:$8 sps:$4 sm:$0xff]   ;;  %5638 = vmatprep.subr.bf16.mxu1 %v8095_v28  ;;  %v7366_v4 = vld [vmem:[#allocation10 + $0x8c0] ss:$8 sps:$4 sm:$0xff]  }
 0x6d2   :  { %3138 = vmatprep.subr.bf16.mxu0 %v7279_v32  ;;  %v8262_v24 = vmax.f32 %v3948_v15, 0.0 }
 0x6d3   :  { %v8264_v32 = vmax.f32 %v3949_v22, 0.0  ;;  %v7369_v22 = vld [vmem:[#allocation10 + $0x8d0] ss:$8 sps:$4 sm:$0xff]  }
 0x6d5   :  { %3139 = vmatpush1.bf16.msra.mxu0 %v7277_v33  ;;  %v7325_v33 = vld [vmem:[#allocation10 + $0x7e4] ss:$8 sps:$4 sm:$0xff]  }
 0x6d6   :  { %3455 = vmatprep.subr.bf16.mxu0 %v7282_v34  ;;  %v3954_v34 = vpack.c.bf16 %v8262_v24, %v8258_v13  ;;  %v7445_v13 = vld [vmem:[#allocation10 + $0xa54] ss:$8 sps:$4 sm:$0xff]   ;;  %v7443_v24 = vld [vmem:[#allocation10 + $0xa50] ss:$8 sps:$4 sm:$0xff]  }
 0x6d7   :  { %6705 = vmatmul.mubr.msk.bf16.vlgmr.msra.gmra.mrb[120].mxu1 %vm519_vm4, %v7491_v14 }
 0x6d8   :  { %3141 = vmatmul.mubr.bf16.vlgmr.msra.gmra.mrb[12].mxu0 %v2913_v20  ;;  %v7299_v20 = vld [vmem:[#allocation10 + $0x760] ss:$8 sps:$4 sm:$0xff]   ;;  %5639 = vmatpush1.bf16.msra.mxu1 %v8099_v30  ;;  %v7408_v30 = vld [vmem:[#allocation10 + $0x994] ss:$8 sps:$4 sm:$0xff]  }
 0x6d9   :  { %3456 = vmatpush1.bf16.msra.mxu0 %v7280_v35  ;;  %3487 = vmatprep.mubr.bf16.mxu0 %v3261_v57  ;;  %v7310_v57 = vld [vmem:[#allocation10 + $0x794] ss:$8 sps:$4 sm:$0xff]   ;;  %v3955_v35 = vpack.c.bf16 %v8264_v32, %v8260_v19  ;;  %v7399_v19 = vld [vmem:[#allocation10 + $0x964] ss:$8 sps:$4 sm:$0xff]   ;;  %v7397_v32 = vld [vmem:[#allocation10 + $0x960] ss:$8 sps:$4 sm:$0xff]  }
 0x6da   :  { %3457 = vmatprep.subr.bf16.mxu0 %v7285_v36  ;;  %v7323_v36 = vld [vmem:[#allocation10 + $0x7e0] ss:$8 sps:$4 sm:$0xff]   ;;  %5670 = vmatprep.mubr.bf16.mxu1 %v7909_v0  ;;  %v7406_v0 = vld [vmem:[#allocation10 + $0x990] ss:$8 sps:$4 sm:$0xff]  }
 0x6dd   :  { %3458 = vmatpush1.bf16.msra.mxu0 %v7283_v41  ;;  %v7328_v41 = vld [vmem:[#allocation10 + $0x7f4] ss:$8 sps:$4 sm:$0xff]  }
 0x6de   :  { %3459 = vmatprep.subr.bf16.mxu0 %v7288_v42  ;;  %v7326_v42 = vld [vmem:[#allocation10 + $0x7f0] ss:$8 sps:$4 sm:$0xff]  }
 0x6df   :  { %6706 = vmatmul.mubr.msk.bf16.vlgmr.msra.gmra.mrb[124].mxu1 %vm519_vm4, %v7491_v14  ;;  %v7454_v14 = vld [vmem:[#allocation10 + $0xa84] ss:$8 sps:$4 sm:$0xff]  }
 0x6e1   :  { %3460 = vmatpush1.bf16.msra.mxu0 %v7286_v43  ;;  %v7331_v43 = vld [vmem:[#allocation10 + $0x804] ss:$8 sps:$4 sm:$0xff]  }
 0x6e2   :  { %3461 = vmatprep.subr.bf16.mxu0 %v7291_v44  ;;  %v7329_v44 = vld [vmem:[#allocation10 + $0x800] ss:$8 sps:$4 sm:$0xff]  }
 0x6e5   :  { %3462 = vmatpush1.bf16.msra.mxu0 %v7289_v45  ;;  %v7334_v45 = vld [vmem:[#allocation10 + $0x814] ss:$8 sps:$4 sm:$0xff]  }
 0x6e6   :  { %3463 = vmatprep.subr.bf16.mxu0 %v7294_v47  ;;  %v7332_v47 = vld [vmem:[#allocation10 + $0x810] ss:$8 sps:$4 sm:$0xff]  }
 0x6e9   :  { %3464 = vmatpush1.bf16.msra.mxu0 %v7292_v48  ;;  %v7337_v48 = vld [vmem:[#allocation10 + $0x824] ss:$8 sps:$4 sm:$0xff]  }
 0x6ea   :  { %3465 = vmatprep.subr.bf16.mxu0 %v7298_v49  ;;  %v7335_v49 = vld [vmem:[#allocation10 + $0x820] ss:$8 sps:$4 sm:$0xff]  }
 0x6ed   :  { %3466 = vmatpush1.bf16.msra.mxu0 %v7296_v11  ;;  %v7338_v11 = vld [vmem:[#allocation10 + $0x830] ss:$8 sps:$4 sm:$0xff]  }
 0x6ee   :  { %3467 = vmatprep.subr.bf16.mxu0 %v7301_v18  ;;  %v7343_v18 = vld [vmem:[#allocation10 + $0x844] ss:$8 sps:$4 sm:$0xff]  }
 0x6f1   :  { %3468 = vmatpush1.bf16.msra.mxu0 %v7299_v20  ;;  %v7341_v20 = vld [vmem:[#allocation10 + $0x840] ss:$8 sps:$4 sm:$0xff]  }
 0x6f2   :  { %3469 = vmatprep.subr.bf16.mxu0 %v7304_v51  ;;  %v7351_v51 = vld [vmem:[#allocation10 + $0x870] ss:$8 sps:$4 sm:$0xff]  }
 0x6f5   :  { %3470 = vmatpush1.bf16.msra.mxu0 %v7302_v52  ;;  %v7356_v52 = vld [vmem:[#allocation10 + $0x884] ss:$8 sps:$4 sm:$0xff]  }
 0x6f6   :  { %3471 = vmatprep.subr.bf16.mxu0 %v7307_v54  ;;  %v7354_v54 = vld [vmem:[#allocation10 + $0x880] ss:$8 sps:$4 sm:$0xff]  }
 0x6f9   :  { %3472 = vmatpush1.bf16.msra.mxu0 %v7305_v56  ;;  %v7357_v56 = vld [vmem:[#allocation10 + $0x890] ss:$8 sps:$4 sm:$0xff]  }
 0x6fa   :  { %3473 = vmatprep.subr.bf16.mxu0 %v7310_v57  ;;  %v7362_v57 = vld [vmem:[#allocation10 + $0x8a4] ss:$8 sps:$4 sm:$0xff]  }
 0x6fd   :  { %3474 = vmatpush1.bf16.msra.mxu0 %v7308_v58  ;;  %v7360_v58 = vld [vmem:[#allocation10 + $0x8a0] ss:$8 sps:$4 sm:$0xff]  }
 0x6fe   :  { %3475 = vmatprep.subr.bf16.mxu0 %v7313_v59  ;;  %v4241_v59 = vpop.f32.mrb[88].mxu1 }
 0x6ff   :  { %v4243_v29 = vpop.f32.mrb[89].mxu1 }
 0x701   :  { %3476 = vmatpush1.bf16.msra.mxu0 %v7311_v60  ;;  %v7365_v60 = vld [vmem:[#allocation10 + $0x8b4] ss:$8 sps:$4 sm:$0xff]  }
 0x702   :  { %3477 = vmatprep.subr.bf16.mxu0 %v7316_v62  ;;  %v4245_v62 = vpop.f32.mrb[90].mxu1 }
 0x703   :  { %v4247_v28 = vpop.f32.mrb[91].mxu1 }
 0x705   :  { %3478 = vmatpush1.bf16.msra.mxu0 %v7314_v1  ;;  %v4284_v1 = vpop.f32.mrb[92].mxu1 }
 0x706   :  { %3479 = vmatprep.subr.bf16.mxu0 %v7319_v3  ;;  %v4293_v2 = vmax.f32 %v4241_v59, %v4284_v1  ;;  %v4286_v3 = vpop.f32.mrb[93].mxu1  ;;  %v7420_v1 = vld [vmem:[#allocation10 + $0x9d4] ss:$8 sps:$4 sm:$0xff]  }
 0x707   :  { %v4294_v5 = vmax.f32 %v4243_v29, %v4286_v3  ;;  %v4288_v6 = vpop.f32.mrb[94].mxu1 }
 0x708   :  { %v4295_v9 = vmax.f32 %v4245_v62, %v4288_v6  ;;  %v4290_v10 = vpop.f32.mrb[95].mxu1  ;;  %v7415_v62 = vld [vmem:[#allocation10 + $0x9c0] ss:$8 sps:$4 sm:$0xff]  }
 0x709   :  { %3480 = vmatpush1.bf16.msra.mxu0 %v7317_v8  ;;  %v8284_v8 = vmax.f32 %v4293_v2, 0.0  ;;  %v4296_v15 = vmax.f32 %v4247_v28, %v4290_v10 }
 0x70a   :  { %3481 = vmatprep.subr.bf16.mxu0 %v7322_v12  ;;  %v8286_v12 = vmax.f32 %v4294_v5, 0.0  ;;  %v8288_v16 = vmax.f32 %v4295_v9, 0.0  ;;  %v7418_v9 = vld [vmem:[#allocation10 + $0x9d0] ss:$8 sps:$4 sm:$0xff]  }
 0x70d   :  { %3482 = vmatpush1.bf16.msra.mxu0 %v7320_v31  ;;  %v8290_v31 = vmax.f32 %v4296_v15, 0.0  ;;  %v7423_v15 = vld [vmem:[#allocation10 + $0x9e4] ss:$8 sps:$4 sm:$0xff]  }
 0x70e   :  { %3483 = vmatprep.subr.bf16.mxu0 %v7325_v33  ;;  %v7374_v33 = vld [vmem:[#allocation10 + $0x8e4] ss:$8 sps:$4 sm:$0xff]  }
 0x711   :  { %3484 = vmatpush1.bf16.msra.mxu0 %v7323_v36  ;;  %v4301_v36 = vpack.c.bf16 %v8288_v16, %v8284_v8  ;;  %v7494_v8 = vld [vmem:[#allocation10 + $0xb54] ss:$8 sps:$4 sm:$0xff]   ;;  %v7492_v16 = vld [vmem:[#allocation10 + $0xb50] ss:$8 sps:$4 sm:$0xff]  }
 0x712   :  { %3485 = vmatprep.subr.bf16.mxu0 %v7328_v41  ;;  %v4302_v41 = vpack.c.bf16 %v8290_v31, %v8286_v12  ;;  %v7446_v12 = vld [vmem:[#allocation10 + $0xa60] ss:$8 sps:$4 sm:$0xff]   ;;  %v7451_v31 = vld [vmem:[#allocation10 + $0xa74] ss:$8 sps:$4 sm:$0xff]  }
 0x715   :  { %3486 = vmatpush1.bf16.msra.mxu0 %v7326_v42  ;;  %v7372_v42 = vld [vmem:[#allocation10 + $0x8e0] ss:$8 sps:$4 sm:$0xff]  }
 0x716   :  { %3802 = vmatprep.subr.bf16.mxu0 %v7331_v43  ;;  %v7377_v43 = vld [vmem:[#allocation10 + $0x8f4] ss:$8 sps:$4 sm:$0xff]  }
 0x718   :  { %3488 = vmatmul.mubr.bf16.vlgmr.msra.gmra.mrb[12].mxu0 %v3260_v55  ;;  %v7345_v55 = vld [vmem:[#allocation10 + $0x850] ss:$8 sps:$4 sm:$0xff]  }
 0x719   :  { %3803 = vmatpush1.bf16.msra.mxu0 %v7329_v44  ;;  %3834 = vmatprep.mubr.bf16.mxu0 %v3608_v26  ;;  %v7353_v26 = vld [vmem:[#allocation10 + $0x874] ss:$8 sps:$4 sm:$0xff]   ;;  %v7375_v44 = vld [vmem:[#allocation10 + $0x8f0] ss:$8 sps:$4 sm:$0xff]  }
 0x71a   :  { %3804 = vmatprep.subr.bf16.mxu0 %v7334_v45  ;;  %v7380_v45 = vld [vmem:[#allocation10 + $0x904] ss:$8 sps:$4 sm:$0xff]  }
 0x71d   :  { %3805 = vmatpush1.bf16.msra.mxu0 %v7332_v47  ;;  %v7378_v47 = vld [vmem:[#allocation10 + $0x900] ss:$8 sps:$4 sm:$0xff]  }
 0x71e   :  { %3806 = vmatprep.subr.bf16.mxu0 %v7337_v48  ;;  %v7383_v48 = vld [vmem:[#allocation10 + $0x914] ss:$8 sps:$4 sm:$0xff]  }
 0x721   :  { %3807 = vmatpush1.bf16.msra.mxu0 %v7335_v49  ;;  %v7381_v49 = vld [vmem:[#allocation10 + $0x910] ss:$8 sps:$4 sm:$0xff]  }
 0x722   :  { %3808 = vmatprep.subr.bf16.mxu0 %v7340_v50  ;;  %v7386_v50 = vld [vmem:[#allocation10 + $0x924] ss:$8 sps:$4 sm:$0xff]  }
 0x725   :  { %3809 = vmatpush1.bf16.msra.mxu0 %v7338_v11  ;;  %v7384_v11 = vld [vmem:[#allocation10 + $0x920] ss:$8 sps:$4 sm:$0xff]  }
 0x726   :  { %3810 = vmatprep.subr.bf16.mxu0 %v7343_v18  ;;  %v7389_v18 = vld [vmem:[#allocation10 + $0x934] ss:$8 sps:$4 sm:$0xff]  }
 0x729   :  { %3811 = vmatpush1.bf16.msra.mxu0 %v7341_v20  ;;  %v7387_v20 = vld [vmem:[#allocation10 + $0x930] ss:$8 sps:$4 sm:$0xff]  }
 0x72a   :  { %3812 = vmatprep.subr.bf16.mxu0 %v7347_v46  ;;  %v7392_v46 = vld [vmem:[#allocation10 + $0x944] ss:$8 sps:$4 sm:$0xff]  }
 0x72d   :  { %3813 = vmatpush1.bf16.msra.mxu0 %v7345_v55  ;;  %v7400_v55 = vld [vmem:[#allocation10 + $0x970] ss:$8 sps:$4 sm:$0xff]  }
 0x72e   :  { %3814 = vmatprep.subr.bf16.mxu0 %v7350_v17  ;;  %v7405_v17 = vld [vmem:[#allocation10 + $0x984] ss:$8 sps:$4 sm:$0xff]  }
 0x731   :  { %3815 = vmatpush1.bf16.msra.mxu0 %v7348_v23  ;;  %v7403_v23 = vld [vmem:[#allocation10 + $0x980] ss:$8 sps:$4 sm:$0xff]  }
 0x732   :  { %3816 = vmatprep.subr.bf16.mxu0 %v7353_v26  ;;  %v7411_v26 = vld [vmem:[#allocation10 + $0x9a4] ss:$8 sps:$4 sm:$0xff]  }
 0x735   :  { %3817 = vmatpush1.bf16.msra.mxu0 %v7351_v51  ;;  %v7409_v51 = vld [vmem:[#allocation10 + $0x9a0] ss:$8 sps:$4 sm:$0xff]  }
 0x736   :  { %3818 = vmatprep.subr.bf16.mxu0 %v7356_v52  ;;  %v4588_v52 = vpop.f32.mrb[96].mxu1 }
 0x739   :  { %3819 = vmatpush1.bf16.msra.mxu0 %v7354_v54  ;;  %v7414_v54 = vld [vmem:[#allocation10 + $0x9b4] ss:$8 sps:$4 sm:$0xff]  }
 0x73a   :  { %3820 = vmatprep.subr.bf16.mxu0 %v7359_v27  ;;  %v4590_v27 = vpop.f32.mrb[97].mxu1 }
 0x73d   :  { %3821 = vmatpush1.bf16.msra.mxu0 %v7357_v56  ;;  %v7412_v56 = vld [vmem:[#allocation10 + $0x9b0] ss:$8 sps:$4 sm:$0xff]  }
 0x73e   :  { %3822 = vmatprep.subr.bf16.mxu0 %v7362_v57  ;;  %v4592_v57 = vpop.f32.mrb[98].mxu1 }
 0x73f   :  { %v4594_v59 = vpop.f32.mrb[99].mxu1 }
 0x741   :  { %3823 = vmatpush1.bf16.msra.mxu0 %v7360_v58  ;;  %v7417_v58 = vld [vmem:[#allocation10 + $0x9c4] ss:$8 sps:$4 sm:$0xff]  }
 0x742   :  { %3824 = vmatprep.subr.bf16.mxu0 %v7365_v60  ;;  %v4631_v60 = vpop.f32.mrb[100].mxu1 }
 0x743   :  { %v4640_v29 = vmax.f32 %v4588_v52, %v4631_v60 }
 0x745   :  { %3825 = vmatpush1.bf16.msra.mxu0 %v7363_v61  ;;  %v4633_v61 = vpop.f32.mrb[101].mxu1  ;;  %v8306_v2 = vmax.f32 %v4640_v29, 0.0 }
 0x746   :  { %3826 = vmatprep.subr.bf16.mxu0 %v7368_v63  ;;  %v4641_v63 = vmax.f32 %v4590_v27, %v4633_v61  ;;  %v4635_v28 = vpop.f32.mrb[102].mxu1 }
 0x747   :  { %v4642_v3 = vmax.f32 %v4592_v57, %v4635_v28 }
 0x748   :  { %v8308_v5 = vmax.f32 %v4641_v63, 0.0 }
 0x749   :  { %3827 = vmatpush1.bf16.msra.mxu0 %v7366_v4  ;;  %v4637_v4 = vpop.f32.mrb[103].mxu1 }
 0x74a   :  { %3828 = vmatprep.subr.bf16.mxu0 %v7371_v7  ;;  %v4643_v6 = vmax.f32 %v4594_v59, %v4637_v4  ;;  %v8310_v7 = vmax.f32 %v4642_v3, 0.0  ;;  %v7469_v59 = vld [vmem:[#allocation10 + $0xad4] ss:$8 sps:$4 sm:$0xff]   ;;  %v7472_v4 = vld [vmem:[#allocation10 + $0xae4] ss:$8 sps:$4 sm:$0xff]  }
 0x74c   :  { %v8312_v10 = vmax.f32 %v4643_v6, 0.0 }
 0x74d   :  { %3829 = vmatpush1.bf16.msra.mxu0 %v7369_v22  ;;  %v4648_v22 = vpack.c.bf16 %v8310_v7, %v8306_v2  ;;  %v7542_v2 = vld [vmem:[#allocation10 + $0xc54] ss:$8 sps:$4 sm:$0xff]   ;;  %v7540_v7 = vld [vmem:[#allocation10 + $0xc50] ss:$8 sps:$4 sm:$0xff]  }
 0x74e   :  { %3830 = vmatprep.subr.bf16.mxu0 %v7374_v33  ;;  %v4649_v33 = vpack.c.bf16 %v8312_v10, %v8308_v5  ;;  %v7495_v5 = vld [vmem:[#allocation10 + $0xb60] ss:$8 sps:$4 sm:$0xff]   ;;  %v7500_v10 = vld [vmem:[#allocation10 + $0xb74] ss:$8 sps:$4 sm:$0xff]  }
 0x751   :  { %3831 = vmatpush1.bf16.msra.mxu0 %v7372_v42  ;;  %v7421_v42 = vld [vmem:[#allocation10 + $0x9e0] ss:$8 sps:$4 sm:$0xff]  }
 0x752   :  { %3832 = vmatprep.subr.bf16.mxu0 %v7377_v43  ;;  %v7426_v43 = vld [vmem:[#allocation10 + $0x9f4] ss:$8 sps:$4 sm:$0xff]  }
 0x755   :  { %3833 = vmatpush1.bf16.msra.mxu0 %v7375_v44  ;;  %v7424_v44 = vld [vmem:[#allocation10 + $0x9f0] ss:$8 sps:$4 sm:$0xff]  }
 0x756   :  { %4149 = vmatprep.subr.bf16.mxu0 %v7380_v45  ;;  %v7429_v45 = vld [vmem:[#allocation10 + $0xa04] ss:$8 sps:$4 sm:$0xff]  }
 0x758   :  { %3835 = vmatmul.mubr.bf16.vlgmr.msra.gmra.mrb[12].mxu0 %v3607_v25  ;;  %v7394_v25 = vld [vmem:[#allocation10 + $0x950] ss:$8 sps:$4 sm:$0xff]  }
 0x759   :  { %4150 = vmatpush1.bf16.msra.mxu0 %v7378_v47  ;;  %4181 = vmatprep.mubr.bf16.mxu0 %v3955_v35  ;;  %v7402_v35 = vld [vmem:[#allocation10 + $0x974] ss:$8 sps:$4 sm:$0xff]   ;;  %v7427_v47 = vld [vmem:[#allocation10 + $0xa00] ss:$8 sps:$4 sm:$0xff]  }
 0x75a   :  { %4151 = vmatprep.subr.bf16.mxu0 %v7383_v48  ;;  %v7432_v48 = vld [vmem:[#allocation10 + $0xa14] ss:$8 sps:$4 sm:$0xff]  }
 0x75d   :  { %4152 = vmatpush1.bf16.msra.mxu0 %v7381_v49  ;;  %v7430_v49 = vld [vmem:[#allocation10 + $0xa10] ss:$8 sps:$4 sm:$0xff]  }
 0x75e   :  { %4153 = vmatprep.subr.bf16.mxu0 %v7386_v50  ;;  %v7435_v50 = vld [vmem:[#allocation10 + $0xa24] ss:$8 sps:$4 sm:$0xff]  }
 0x761   :  { %4154 = vmatpush1.bf16.msra.mxu0 %v7384_v11  ;;  %v7433_v11 = vld [vmem:[#allocation10 + $0xa20] ss:$8 sps:$4 sm:$0xff]  }
 0x762   :  { %4155 = vmatprep.subr.bf16.mxu0 %v7389_v18  ;;  %v7438_v18 = vld [vmem:[#allocation10 + $0xa34] ss:$8 sps:$4 sm:$0xff]  }
 0x765   :  { %4156 = vmatpush1.bf16.msra.mxu0 %v7387_v20  ;;  %v7436_v20 = vld [vmem:[#allocation10 + $0xa30] ss:$8 sps:$4 sm:$0xff]  }
 0x766   :  { %4157 = vmatprep.subr.bf16.mxu0 %v7392_v46  ;;  %v7441_v46 = vld [vmem:[#allocation10 + $0xa44] ss:$8 sps:$4 sm:$0xff]  }
 0x769   :  { %4158 = vmatpush1.bf16.msra.mxu0 %v7390_v53  ;;  %v7439_v53 = vld [vmem:[#allocation10 + $0xa40] ss:$8 sps:$4 sm:$0xff]  }
 0x76a   :  { %4159 = vmatprep.subr.bf16.mxu0 %v7396_v21  ;;  %v7452_v21 = vld [vmem:[#allocation10 + $0xa80] ss:$8 sps:$4 sm:$0xff]  }
 0x76d   :  { %4160 = vmatpush1.bf16.msra.mxu0 %v7394_v25  ;;  %v7457_v25 = vld [vmem:[#allocation10 + $0xa94] ss:$8 sps:$4 sm:$0xff]  }
 0x76e   :  { %4161 = vmatprep.subr.bf16.mxu0 %v7399_v19  ;;  %v7455_v19 = vld [vmem:[#allocation10 + $0xa90] ss:$8 sps:$4 sm:$0xff]  }
 0x771   :  { %4162 = vmatpush1.bf16.msra.mxu0 %v7397_v32  ;;  %v7460_v32 = vld [vmem:[#allocation10 + $0xaa4] ss:$8 sps:$4 sm:$0xff]  }
 0x772   :  { %4163 = vmatprep.subr.bf16.mxu0 %v7402_v35  ;;  %v7458_v35 = vld [vmem:[#allocation10 + $0xaa0] ss:$8 sps:$4 sm:$0xff]  }
 0x775   :  { %4164 = vmatpush1.bf16.msra.mxu0 %v7400_v55 }
 0x776   :  { %4165 = vmatprep.subr.bf16.mxu0 %v7405_v17  ;;  %v7463_v17 = vld [vmem:[#allocation10 + $0xab4] ss:$8 sps:$4 sm:$0xff]  }
 0x779   :  { %4166 = vmatpush1.bf16.msra.mxu0 %v7403_v23 }
 0x77a   :  { %4167 = vmatprep.subr.bf16.mxu0 %v7408_v30  ;;  %v7461_v30 = vld [vmem:[#allocation10 + $0xab0] ss:$8 sps:$4 sm:$0xff]  }
 0x77d   :  { %4168 = vmatpush1.bf16.msra.mxu0 %v7406_v0 }
 0x77e   :  { %4169 = vmatprep.subr.bf16.mxu0 %v7411_v26  ;;  %v7466_v26 = vld [vmem:[#allocation10 + $0xac4] ss:$8 sps:$4 sm:$0xff]  }
 0x781   :  { %4170 = vmatpush1.bf16.msra.mxu0 %v7409_v51 }
 0x782   :  { %4171 = vmatprep.subr.bf16.mxu0 %v7414_v54 }
 0x785   :  { %4172 = vmatpush1.bf16.msra.mxu0 %v7412_v56  ;;  %v7464_v56 = vld [vmem:[#allocation10 + $0xac0] ss:$8 sps:$4 sm:$0xff]  }
 0x786   :  { %4173 = vmatprep.subr.bf16.mxu0 %v7417_v58 }
 0x789   :  { %4174 = vmatpush1.bf16.msra.mxu0 %v7415_v62 }
 0x78a   :  { %4175 = vmatprep.subr.bf16.mxu0 %v7420_v1  ;;  %v4935_v55 = vpop.f32.mrb[104].mxu1  ;;  %v7467_v1 = vld [vmem:[#allocation10 + $0xad0] ss:$8 sps:$4 sm:$0xff]  }
 0x78b   :  { %v4937_v23 = vpop.f32.mrb[105].mxu1 }
 0x78c   :  { %v4939_v0 = vpop.f32.mrb[106].mxu1 }
 0x78d   :  { %4176 = vmatpush1.bf16.msra.mxu0 %v7418_v9  ;;  %v4941_v51 = vpop.f32.mrb[107].mxu1 }
 0x78e   :  { %4177 = vmatprep.subr.bf16.mxu0 %v7423_v15  ;;  %v7470_v15 = vld [vmem:[#allocation10 + $0xae0] ss:$8 sps:$4 sm:$0xff]  }
 0x791   :  { %4178 = vmatpush1.bf16.msra.mxu0 %v7421_v42  ;;  %v7475_v42 = vld [vmem:[#allocation10 + $0xaf4] ss:$8 sps:$4 sm:$0xff]  }
 0x792   :  { %4179 = vmatprep.subr.bf16.mxu0 %v7426_v43  ;;  %v4978_v52 = vpop.f32.mrb[108].mxu1  ;;  %v7473_v43 = vld [vmem:[#allocation10 + $0xaf0] ss:$8 sps:$4 sm:$0xff]  }
 0x793   :  { %v4987_v54 = vmax.f32 %v4935_v55, %v4978_v52  ;;  %v4980_v27 = vpop.f32.mrb[109].mxu1 }
 0x794   :  { %v4988_v57 = vmax.f32 %v4937_v23, %v4980_v27  ;;  %v4982_v58 = vpop.f32.mrb[110].mxu1 }
 0x795   :  { %4180 = vmatpush1.bf16.msra.mxu0 %v7424_v44  ;;  %v8324_v60 = vmax.f32 %v4987_v54, 0.0  ;;  %v4989_v29 = vmax.f32 %v4939_v0, %v4982_v58  ;;  %v4984_v61 = vpop.f32.mrb[111].mxu1  ;;  %v7478_v44 = vld [vmem:[#allocation10 + $0xb04] ss:$8 sps:$4 sm:$0xff]  }
 0x796   :  { %4496 = vmatprep.subr.bf16.mxu0 %v7429_v45  ;;  %v8326_v62 = vmax.f32 %v4988_v57, 0.0  ;;  %v4990_v63 = vmax.f32 %v4941_v51, %v4984_v61  ;;  %v7476_v45 = vld [vmem:[#allocation10 + $0xb00] ss:$8 sps:$4 sm:$0xff]   ;;  %v7518_v51 = vld [vmem:[#allocation10 + $0xbd4] ss:$8 sps:$4 sm:$0xff]  }
 0x797   :  { %v8328_v28 = vmax.f32 %v4989_v29, 0.0  ;;  %v7521_v61 = vld [vmem:[#allocation10 + $0xbe4] ss:$8 sps:$4 sm:$0xff]  }
 0x798   :  { %4182 = vmatmul.mubr.bf16.vlgmr.msra.gmra.mrb[12].mxu0 %v3954_v34  ;;  %v7448_v34 = vld [vmem:[#allocation10 + $0xa64] ss:$8 sps:$4 sm:$0xff]   ;;  %v8330_v3 = vmax.f32 %v4990_v63, 0.0 }
 0x799   :  { %4497 = vmatpush1.bf16.msra.mxu0 %v7427_v47  ;;  %4528 = vmatprep.mubr.bf16.mxu0 %v4302_v41  ;;  %v7449_v41 = vld [vmem:[#allocation10 + $0xa70] ss:$8 sps:$4 sm:$0xff]   ;;  %v4995_v6 = vpack.c.bf16 %v8328_v28, %v8324_v60  ;;  %v7481_v47 = vld [vmem:[#allocation10 + $0xb14] ss:$8 sps:$4 sm:$0xff]  }
 0x79a   :  { %4498 = vmatprep.subr.bf16.mxu0 %v7432_v48  ;;  %v4996_v9 = vpack.c.bf16 %v8330_v3, %v8326_v62  ;;  %v7479_v48 = vld [vmem:[#allocation10 + $0xb10] ss:$8 sps:$4 sm:$0xff]   ;;  %v7543_v62 = vld [vmem:[#allocation10 + $0xc60] ss:$8 sps:$4 sm:$0xff]   ;;  %v7548_v3 = vld [vmem:[#allocation10 + $0xc74] ss:$8 sps:$4 sm:$0xff]  }
 0x79b   :  { %v7584_v60 = vld [vmem:[#allocation10 + $0xd34] ss:$8 sps:$4 sm:$0xff]  }
 0x79c   :  { %v7674_v28 = vld [vmem:[#allocation13 + $0x10] sm:$0xff]  }
 0x79d   :  { %4499 = vmatpush1.bf16.msra.mxu0 %v7430_v49  ;;  %v7484_v49 = vld [vmem:[#allocation10 + $0xb24] ss:$8 sps:$4 sm:$0xff]  }
 0x79e   :  { %4500 = vmatprep.subr.bf16.mxu0 %v7435_v50  ;;  %v7482_v50 = vld [vmem:[#allocation10 + $0xb20] ss:$8 sps:$4 sm:$0xff]  }
 0x7a1   :  { %4501 = vmatpush1.bf16.msra.mxu0 %v7433_v11  ;;  %v7487_v11 = vld [vmem:[#allocation10 + $0xb34] ss:$8 sps:$4 sm:$0xff]  }
 0x7a2   :  { %4502 = vmatprep.subr.bf16.mxu0 %v7438_v18  ;;  %v7485_v18 = vld [vmem:[#allocation10 + $0xb30] ss:$8 sps:$4 sm:$0xff]  }
 0x7a5   :  { %4503 = vmatpush1.bf16.msra.mxu0 %v7436_v20  ;;  %v7490_v20 = vld [vmem:[#allocation10 + $0xb44] ss:$8 sps:$4 sm:$0xff]  }
 0x7a6   :  { %4504 = vmatprep.subr.bf16.mxu0 %v7441_v46  ;;  %v7488_v46 = vld [vmem:[#allocation10 + $0xb40] ss:$8 sps:$4 sm:$0xff]  }
 0x7a9   :  { %4505 = vmatpush1.bf16.msra.mxu0 %v7439_v53  ;;  %v7503_v53 = vld [vmem:[#allocation10 + $0xb84] ss:$8 sps:$4 sm:$0xff]  }
 0x7aa   :  { %4506 = vmatprep.subr.bf16.mxu0 %v7445_v13  ;;  %v7501_v13 = vld [vmem:[#allocation10 + $0xb80] ss:$8 sps:$4 sm:$0xff]  }
 0x7ad   :  { %4507 = vmatpush1.bf16.msra.mxu0 %v7443_v24  ;;  %v7506_v24 = vld [vmem:[#allocation10 + $0xb94] ss:$8 sps:$4 sm:$0xff]  }
 0x7ae   :  { %4508 = vmatprep.subr.bf16.mxu0 %v7448_v34  ;;  %v7504_v34 = vld [vmem:[#allocation10 + $0xb90] ss:$8 sps:$4 sm:$0xff]  }
 0x7b1   :  { %4509 = vmatpush1.bf16.msra.mxu0 %v7446_v12  ;;  %v7509_v12 = vld [vmem:[#allocation10 + $0xba4] ss:$8 sps:$4 sm:$0xff]  }
 0x7b2   :  { %4510 = vmatprep.subr.bf16.mxu0 %v7451_v31  ;;  %v7507_v31 = vld [vmem:[#allocation10 + $0xba0] ss:$8 sps:$4 sm:$0xff]  }
 0x7b5   :  { %4511 = vmatpush1.bf16.msra.mxu0 %v7449_v41  ;;  %v5282_v41 = vpop.f32.mrb[112].mxu1 }
 0x7b6   :  { %4512 = vmatprep.subr.bf16.mxu0 %v7454_v14  ;;  %v7512_v14 = vld [vmem:[#allocation10 + $0xbb4] ss:$8 sps:$4 sm:$0xff]  }
 0x7b9   :  { %4513 = vmatpush1.bf16.msra.mxu0 %v7452_v21  ;;  %v5284_v21 = vpop.f32.mrb[113].mxu1 }
 0x7ba   :  { %4514 = vmatprep.subr.bf16.mxu0 %v7457_v25  ;;  %v7510_v25 = vld [vmem:[#allocation10 + $0xbb0] ss:$8 sps:$4 sm:$0xff]  }
 0x7bd   :  { %4515 = vmatpush1.bf16.msra.mxu0 %v7455_v19  ;;  %v5286_v19 = vpop.f32.mrb[114].mxu1 }
 0x7be   :  { %4516 = vmatprep.subr.bf16.mxu0 %v7460_v32  ;;  %v7515_v32 = vld [vmem:[#allocation10 + $0xbc4] ss:$8 sps:$4 sm:$0xff]  }
 0x7c1   :  { %4517 = vmatpush1.bf16.msra.mxu0 %v7458_v35  ;;  %v5288_v35 = vpop.f32.mrb[115].mxu1 }
 0x7c2   :  { %4518 = vmatprep.subr.bf16.mxu0 %v7463_v17  ;;  %v5325_v55 = vpop.f32.mrb[116].mxu1 }
 0x7c3   :  { %v5334_v17 = vmax.f32 %v5282_v41, %v5325_v55  ;;  %v5327_v23 = vpop.f32.mrb[117].mxu1 }
 0x7c4   :  { %v5335_v0 = vmax.f32 %v5284_v21, %v5327_v23  ;;  %v7566_v23 = vld [vmem:[#allocation10 + $0xcd4] ss:$8 sps:$4 sm:$0xff]  }
 0x7c5   :  { %4519 = vmatpush1.bf16.msra.mxu0 %v7461_v30  ;;  %v7513_v30 = vld [vmem:[#allocation10 + $0xbc0] ss:$8 sps:$4 sm:$0xff]   ;;  %v8342_v52 = vmax.f32 %v5334_v17, 0.0 }
 0x7c6   :  { %4520 = vmatprep.subr.bf16.mxu0 %v7466_v26  ;;  %v5329_v26 = vpop.f32.mrb[118].mxu1 }
 0x7c7   :  { %v5336_v54 = vmax.f32 %v5286_v19, %v5329_v26  ;;  %v5331_v27 = vpop.f32.mrb[119].mxu1 }
 0x7c8   :  { %v5337_v57 = vmax.f32 %v5288_v35, %v5331_v27 }
 0x7c9   :  { %4521 = vmatpush1.bf16.msra.mxu0 %v7464_v56  ;;  %v8344_v56 = vmax.f32 %v5335_v0, 0.0  ;;  %v8346_v58 = vmax.f32 %v5336_v54, 0.0  ;;  %v7564_v54 = vld [vmem:[#allocation10 + $0xcd0] ss:$8 sps:$4 sm:$0xff]  }
 0x7ca   :  { %4522 = vmatprep.subr.bf16.mxu0 %v7469_v59  ;;  %v7516_v59 = vld [vmem:[#allocation10 + $0xbd0] ss:$8 sps:$4 sm:$0xff]   ;;  %v8348_v29 = vmax.f32 %v5337_v57, 0.0  ;;  %v7569_v57 = vld [vmem:[#allocation10 + $0xce4] ss:$8 sps:$4 sm:$0xff]  }
 0x7cb   :  { %v5342_v63 = vpack.c.bf16 %v8346_v58, %v8342_v52  ;;  %v7638_v52 = vld [vmem:[#allocation10 + $0xe54] ss:$8 sps:$4 sm:$0xff]   ;;  %v7636_v58 = vld [vmem:[#allocation10 + $0xe50] ss:$8 sps:$4 sm:$0xff]  }
 0x7cd   :  { %4523 = vmatpush1.bf16.msra.mxu0 %v7467_v1  ;;  %v5343_v1 = vpack.c.bf16 %v8348_v29, %v8344_v56  ;;  %v7587_v56 = vld [vmem:[#allocation10 + $0xd44] ss:$8 sps:$4 sm:$0xff]   ;;  %v7676_v29 = vld [vmem:[#allocation13 + $0x18] sm:$0xff]  }
 0x7ce   :  { %4524 = vmatprep.subr.bf16.mxu0 %v7472_v4  ;;  %v7519_v4 = vld [vmem:[#allocation10 + $0xbe0] ss:$8 sps:$4 sm:$0xff]  }
 0x7d1   :  { %4525 = vmatpush1.bf16.msra.mxu0 %v7470_v15  ;;  %v7524_v15 = vld [vmem:[#allocation10 + $0xbf4] ss:$8 sps:$4 sm:$0xff]  }
 0x7d2   :  { %4526 = vmatprep.subr.bf16.mxu0 %v7475_v42  ;;  %v7522_v42 = vld [vmem:[#allocation10 + $0xbf0] ss:$8 sps:$4 sm:$0xff]  }
 0x7d5   :  { %4527 = vmatpush1.bf16.msra.mxu0 %v7473_v43  ;;  %v7527_v43 = vld [vmem:[#allocation10 + $0xc04] ss:$8 sps:$4 sm:$0xff]  }
 0x7d6   :  { %4843 = vmatprep.subr.bf16.mxu0 %v7478_v44  ;;  %v7525_v44 = vld [vmem:[#allocation10 + $0xc00] ss:$8 sps:$4 sm:$0xff]  }
 0x7d8   :  { %4529 = vmatmul.mubr.bf16.vlgmr.msra.gmra.mrb[12].mxu0 %v4301_v36  ;;  %v7497_v36 = vld [vmem:[#allocation10 + $0xb64] ss:$8 sps:$4 sm:$0xff]  }
 0x7d9   :  { %4844 = vmatpush1.bf16.msra.mxu0 %v7476_v45  ;;  %4875 = vmatprep.mubr.bf16.mxu0 %v4649_v33  ;;  %v7498_v33 = vld [vmem:[#allocation10 + $0xb70] ss:$8 sps:$4 sm:$0xff]   ;;  %v7530_v45 = vld [vmem:[#allocation10 + $0xc14] ss:$8 sps:$4 sm:$0xff]  }
 0x7da   :  { %4845 = vmatprep.subr.bf16.mxu0 %v7481_v47  ;;  %v7528_v47 = vld [vmem:[#allocation10 + $0xc10] ss:$8 sps:$4 sm:$0xff]  }
 0x7dd   :  { %4846 = vmatpush1.bf16.msra.mxu0 %v7479_v48  ;;  %v7533_v48 = vld [vmem:[#allocation10 + $0xc24] ss:$8 sps:$4 sm:$0xff]  }
 0x7de   :  { %4847 = vmatprep.subr.bf16.mxu0 %v7484_v49  ;;  %v7531_v49 = vld [vmem:[#allocation10 + $0xc20] ss:$8 sps:$4 sm:$0xff]  }
 0x7e1   :  { %4848 = vmatpush1.bf16.msra.mxu0 %v7482_v50  ;;  %v7536_v50 = vld [vmem:[#allocation10 + $0xc34] ss:$8 sps:$4 sm:$0xff]  }
 0x7e2   :  { %4849 = vmatprep.subr.bf16.mxu0 %v7487_v11  ;;  %v7534_v11 = vld [vmem:[#allocation10 + $0xc30] ss:$8 sps:$4 sm:$0xff]  }
 0x7e5   :  { %4850 = vmatpush1.bf16.msra.mxu0 %v7485_v18  ;;  %v7539_v18 = vld [vmem:[#allocation10 + $0xc44] ss:$8 sps:$4 sm:$0xff]  }
 0x7e6   :  { %4851 = vmatprep.subr.bf16.mxu0 %v7490_v20  ;;  %v7537_v20 = vld [vmem:[#allocation10 + $0xc40] ss:$8 sps:$4 sm:$0xff]  }
 0x7e9   :  { %4852 = vmatpush1.bf16.msra.mxu0 %v7488_v46  ;;  %v7551_v46 = vld [vmem:[#allocation10 + $0xc84] ss:$8 sps:$4 sm:$0xff]  }
 0x7ea   :  { %4853 = vmatprep.subr.bf16.mxu0 %v7494_v8  ;;  %v7549_v8 = vld [vmem:[#allocation10 + $0xc80] ss:$8 sps:$4 sm:$0xff]  }
 0x7ed   :  { %4854 = vmatpush1.bf16.msra.mxu0 %v7492_v16  ;;  %v7554_v16 = vld [vmem:[#allocation10 + $0xc94] ss:$8 sps:$4 sm:$0xff]  }
 0x7ee   :  { %4855 = vmatprep.subr.bf16.mxu0 %v7497_v36  ;;  %v7552_v36 = vld [vmem:[#allocation10 + $0xc90] ss:$8 sps:$4 sm:$0xff]  }
 0x7f1   :  { %4856 = vmatpush1.bf16.msra.mxu0 %v7495_v5  ;;  %v7557_v5 = vld [vmem:[#allocation10 + $0xca4] ss:$8 sps:$4 sm:$0xff]  }
 0x7f2   :  { %4857 = vmatprep.subr.bf16.mxu0 %v7500_v10  ;;  %v7555_v10 = vld [vmem:[#allocation10 + $0xca0] ss:$8 sps:$4 sm:$0xff]  }
 0x7f5   :  { %4858 = vmatpush1.bf16.msra.mxu0 %v7498_v33  ;;  %v5629_v33 = vpop.f32.mrb[120].mxu1 }
 0x7f6   :  { %4859 = vmatprep.subr.bf16.mxu0 %v7503_v53  ;;  %v7560_v53 = vld [vmem:[#allocation10 + $0xcb4] ss:$8 sps:$4 sm:$0xff]  }
 0x7f9   :  { %4860 = vmatpush1.bf16.msra.mxu0 %v7501_v13  ;;  %v5631_v13 = vpop.f32.mrb[121].mxu1 }
 0x7fa   :  { %4861 = vmatprep.subr.bf16.mxu0 %v7506_v24  ;;  %v5633_v24 = vpop.f32.mrb[122].mxu1 }
 0x7fd   :  { %4862 = vmatpush1.bf16.msra.mxu0 %v7504_v34  ;;  %v7558_v34 = vld [vmem:[#allocation10 + $0xcb0] ss:$8 sps:$4 sm:$0xff]  }
 0x7fe   :  { %4863 = vmatprep.subr.bf16.mxu0 %v7509_v12  ;;  %v5635_v12 = vpop.f32.mrb[123].mxu1 }
 0x7ff   :  { %v5672_v41 = vpop.f32.mrb[124].mxu1 }
 0x800   :  { %v5674_v21 = vpop.f32.mrb[125].mxu1 }
 0x801   :  { %4864 = vmatpush1.bf16.msra.mxu0 %v7507_v31  ;;  %v7563_v31 = vld [vmem:[#allocation10 + $0xcc4] ss:$8 sps:$4 sm:$0xff]   ;;  %v5676_v19 = vpop.f32.mrb[126].mxu1 }
 0x802   :  { %4865 = vmatprep.subr.bf16.mxu0 %v7512_v14  ;;  %v5681_v14 = vmax.f32 %v5629_v33, %v5672_v41  ;;  %v5683_v55 = vmax.f32 %v5633_v24, %v5676_v19  ;;  %v5678_v17 = vpop.f32.mrb[127].mxu1  ;;  %v7600_v33 = vld [vmem:[#allocation10 + $0xd90] ss:$8 sps:$4 sm:$0xff]   ;;  %v7608_v24 = vld [vmem:[#allocation10 + $0xdb4] ss:$8 sps:$4 sm:$0xff]  }
 0x803   :  { %v5684_v0 = vmax.f32 %v5635_v12, %v5678_v17  ;;  %v7611_v12 = vld [vmem:[#allocation10 + $0xdc4] ss:$8 sps:$4 sm:$0xff]   ;;  %v7614_v41 = vld [vmem:[#allocation10 + $0xdd4] ss:$8 sps:$4 sm:$0xff]   ;;  %v7621_v17 = vld [vmem:[#allocation10 + $0xe00] ss:$8 sps:$4 sm:$0xff]  }
 0x804   :  { %v8360_v35 = vmax.f32 %v5681_v14, 0.0  ;;  %v8364_v26 = vmax.f32 %v5683_v55, 0.0  ;;  %v7612_v14 = vld [vmem:[#allocation10 + $0xdd0] ss:$8 sps:$4 sm:$0xff]   ;;  %v7620_v19 = vld [vmem:[#allocation10 + $0xdf4] ss:$8 sps:$4 sm:$0xff]  }
 0x805   :  { %4866 = vmatpush1.bf16.msra.mxu0 %v7510_v25  ;;  %v5682_v25 = vmax.f32 %v5631_v13, %v5674_v21  ;;  %v7603_v13 = vld [vmem:[#allocation10 + $0xda0] ss:$8 sps:$4 sm:$0xff]   ;;  %v7617_v21 = vld [vmem:[#allocation10 + $0xde4] ss:$8 sps:$4 sm:$0xff]  }
 0x806   :  { %4867 = vmatprep.subr.bf16.mxu0 %v7515_v32  ;;  %v7561_v32 = vld [vmem:[#allocation10 + $0xcc0] ss:$8 sps:$4 sm:$0xff]   ;;  %v5689_v27 = vpack.c.bf16 %v8364_v26, %v8360_v35  ;;  %v7623_v55 = vld [vmem:[#allocation10 + $0xe04] ss:$8 sps:$4 sm:$0xff]  }
 0x809   :  { %4868 = vmatpush1.bf16.msra.mxu0 %v7513_v30  ;;  %v8362_v30 = vmax.f32 %v5682_v25, 0.0  ;;  %v7615_v25 = vld [vmem:[#allocation10 + $0xde0] ss:$8 sps:$4 sm:$0xff]  }
 0x80a   :  { %4869 = vmatprep.subr.bf16.mxu0 %v7518_v51  ;;  %v8366_v51 = vmax.f32 %v5684_v0, 0.0  ;;  %v7624_v0 = vld [vmem:[#allocation10 + $0xe10] ss:$8 sps:$4 sm:$0xff]  }
 0x80d   :  { %4870 = vmatpush1.bf16.msra.mxu0 %v7516_v59  ;;  %v5690_v59 = vpack.c.bf16 %v8366_v51, %v8362_v30  ;;  %v7639_v30 = vld [vmem:[#allocation10 + $0xe60] ss:$8 sps:$4 sm:$0xff]   ;;  %v7644_v51 = vld [vmem:[#allocation10 + $0xe74] ss:$8 sps:$4 sm:$0xff]  }
 0x80e   :  { %4871 = vmatprep.subr.bf16.mxu0 %v7521_v61  ;;  %v7567_v61 = vld [vmem:[#allocation10 + $0xce0] ss:$8 sps:$4 sm:$0xff]  }
 0x811   :  { %4872 = vmatpush1.bf16.msra.mxu0 %v7519_v4  ;;  %v7572_v4 = vld [vmem:[#allocation10 + $0xcf4] ss:$8 sps:$4 sm:$0xff]  }
 0x812   :  { %4873 = vmatprep.subr.bf16.mxu0 %v7524_v15  ;;  %v7570_v15 = vld [vmem:[#allocation10 + $0xcf0] ss:$8 sps:$4 sm:$0xff]  }
 0x815   :  { %4874 = vmatpush1.bf16.msra.mxu0 %v7522_v42  ;;  %v7575_v42 = vld [vmem:[#allocation10 + $0xd04] ss:$8 sps:$4 sm:$0xff]  }
 0x816   :  { %5190 = vmatprep.subr.bf16.mxu0 %v7527_v43  ;;  %v7573_v43 = vld [vmem:[#allocation10 + $0xd00] ss:$8 sps:$4 sm:$0xff]  }
 0x818   :  { %4876 = vmatmul.mubr.bf16.vlgmr.msra.gmra.mrb[12].mxu0 %v4648_v22  ;;  %v7545_v22 = vld [vmem:[#allocation10 + $0xc64] ss:$8 sps:$4 sm:$0xff]  }
 0x819   :  { %5191 = vmatpush1.bf16.msra.mxu0 %v7525_v44  ;;  %5222 = vmatprep.mubr.bf16.mxu0 %v4996_v9  ;;  %v7546_v9 = vld [vmem:[#allocation10 + $0xc70] ss:$8 sps:$4 sm:$0xff]   ;;  %v7578_v44 = vld [vmem:[#allocation10 + $0xd14] ss:$8 sps:$4 sm:$0xff]  }
 0x81a   :  { %5192 = vmatprep.subr.bf16.mxu0 %v7530_v45  ;;  %v7669_v45 = vld [vmem:[#allocation13 + $0x40] sm:$0xff]  }
 0x81b   :  { %6756 = vmatprep.subr.bf16.mxu1 %v7669_v45  ;;  %v7650_v45 = vld [vmem:[#allocation10 + $0xe94] ss:$8 sps:$4 sm:$0xff]  }
 0x81d   :  { %5193 = vmatpush1.bf16.msra.mxu0 %v7528_v47  ;;  %v7670_v47 = vld [vmem:[#allocation13] sm:$0xff]  }
 0x81e   :  { %5194 = vmatprep.subr.bf16.mxu0 %v7533_v48  ;;  %v7671_v48 = vld [vmem:[#allocation13 + $0x48] sm:$0xff]   ;;  %6757 = vmatpush3.bf16.msra.mxu1 %v7670_v47 }
 0x81f   :  { %6758 = vmatprep.subr.bf16.mxu1 %v7671_v48  ;;  %v7648_v47 = vld [vmem:[#allocation10 + $0xe90] ss:$8 sps:$4 sm:$0xff]   ;;  %v7653_v48 = vld [vmem:[#allocation10 + $0xea4] ss:$8 sps:$4 sm:$0xff]  }
 0x821   :  { %5195 = vmatpush1.bf16.msra.mxu0 %v7531_v49  ;;  %v7576_v49 = vld [vmem:[#allocation10 + $0xd10] ss:$8 sps:$4 sm:$0xff]  }
 0x822   :  { %5196 = vmatprep.subr.bf16.mxu0 %v7536_v50  ;;  %v7581_v50 = vld [vmem:[#allocation10 + $0xd24] ss:$8 sps:$4 sm:$0xff]  }
 0x825   :  { %5197 = vmatpush1.bf16.msra.mxu0 %v7534_v11  ;;  %v7672_v11 = vld [vmem:[#allocation13 + $0x8] sm:$0xff]  }
 0x826   :  { %5198 = vmatprep.subr.bf16.mxu0 %v7539_v18  ;;  %v7673_v18 = vld [vmem:[#allocation13 + $0x50] sm:$0xff]   ;;  %6759 = vmatpush3.bf16.msra.mxu1 %v7672_v11 }
 0x827   :  { %6760 = vmatprep.subr.bf16.mxu1 %v7673_v18  ;;  %v7654_v11 = vld [vmem:[#allocation10 + $0xeb0] ss:$8 sps:$4 sm:$0xff]   ;;  %v7659_v18 = vld [vmem:[#allocation10 + $0xec4] ss:$8 sps:$4 sm:$0xff]  }
 0x829   :  { %5199 = vmatpush1.bf16.msra.mxu0 %v7537_v20  ;;  %v7579_v20 = vld [vmem:[#allocation10 + $0xd20] ss:$8 sps:$4 sm:$0xff]  }
 0x82a   :  { %5200 = vmatprep.subr.bf16.mxu0 %v7542_v2  ;;  %v7582_v2 = vld [vmem:[#allocation10 + $0xd30] ss:$8 sps:$4 sm:$0xff]   ;;  %6761 = vmatpush3.bf16.msra.mxu1 %v7674_v28 }
 0x82b   :  { %v7660_v28 = vld [vmem:[#allocation10 + $0xed0] ss:$8 sps:$4 sm:$0xff]  }
 0x82d   :  { %5201 = vmatpush1.bf16.msra.mxu0 %v7540_v7  ;;  %v7585_v7 = vld [vmem:[#allocation10 + $0xd40] ss:$8 sps:$4 sm:$0xff]  }
 0x82e   :  { %5202 = vmatprep.subr.bf16.mxu0 %v7545_v22  ;;  %v7590_v22 = vld [vmem:[#allocation10 + $0xd54] ss:$8 sps:$4 sm:$0xff]  }
 0x831   :  { %5203 = vmatpush1.bf16.msra.mxu0 %v7543_v62  ;;  %v7678_v62 = vld [vmem:[#allocation13 + $0x20] sm:$0xff]  }
 0x832   :  { %5204 = vmatprep.subr.bf16.mxu0 %v7548_v3  ;;  %v7588_v3 = vld [vmem:[#allocation10 + $0xd50] ss:$8 sps:$4 sm:$0xff]  }
 0x835   :  { %5205 = vmatpush1.bf16.msra.mxu0 %v7546_v9  ;;  %v7593_v9 = vld [vmem:[#allocation10 + $0xd64] ss:$8 sps:$4 sm:$0xff]  }
 0x836   :  { %5206 = vmatprep.subr.bf16.mxu0 %v7551_v46  ;;  %v7591_v46 = vld [vmem:[#allocation10 + $0xd60] ss:$8 sps:$4 sm:$0xff]  }
 0x839   :  { %5207 = vmatpush1.bf16.msra.mxu0 %v7549_v8  ;;  %v7596_v8 = vld [vmem:[#allocation10 + $0xd74] ss:$8 sps:$4 sm:$0xff]  }
 0x83a   :  { %5208 = vmatprep.subr.bf16.mxu0 %v7554_v16  ;;  %v7594_v16 = vld [vmem:[#allocation10 + $0xd70] ss:$8 sps:$4 sm:$0xff]  }
 0x83d   :  { %5209 = vmatpush1.bf16.msra.mxu0 %v7552_v36  ;;  %v7599_v36 = vld [vmem:[#allocation10 + $0xd84] ss:$8 sps:$4 sm:$0xff]  }
 0x83e   :  { %5210 = vmatprep.subr.bf16.mxu0 %v7557_v5  ;;  %v7597_v5 = vld [vmem:[#allocation10 + $0xd80] ss:$8 sps:$4 sm:$0xff]  }
 0x841   :  { %5211 = vmatpush1.bf16.msra.mxu0 %v7555_v10  ;;  %v7602_v10 = vld [vmem:[#allocation10 + $0xd94] ss:$8 sps:$4 sm:$0xff]  }
 0x842   :  { %5212 = vmatprep.subr.bf16.mxu0 %v7560_v53  ;;  %v7605_v53 = vld [vmem:[#allocation10 + $0xda4] ss:$8 sps:$4 sm:$0xff]  }
 0x845   :  { %5213 = vmatpush1.bf16.msra.mxu0 %v7558_v34  ;;  %v7606_v34 = vld [vmem:[#allocation10 + $0xdb0] ss:$8 sps:$4 sm:$0xff]  }
 0x846   :  { %5214 = vmatprep.subr.bf16.mxu0 %v7563_v31  ;;  %v7609_v31 = vld [vmem:[#allocation10 + $0xdc0] ss:$8 sps:$4 sm:$0xff]  }
 0x849   :  { %5215 = vmatpush1.bf16.msra.mxu0 %v7561_v32  ;;  %v7618_v32 = vld [vmem:[#allocation10 + $0xdf0] ss:$8 sps:$4 sm:$0xff]  }
 0x84a   :  { %5216 = vmatprep.subr.bf16.mxu0 %v7566_v23  ;;  %v7626_v23 = vld [vmem:[#allocation10 + $0xe14] ss:$8 sps:$4 sm:$0xff]  }
 0x84d   :  { %5217 = vmatpush1.bf16.msra.mxu0 %v7564_v54  ;;  %v7629_v54 = vld [vmem:[#allocation10 + $0xe24] ss:$8 sps:$4 sm:$0xff]  }
 0x84e   :  { %5218 = vmatprep.subr.bf16.mxu0 %v7569_v57  ;;  %v7627_v57 = vld [vmem:[#allocation10 + $0xe20] ss:$8 sps:$4 sm:$0xff]  }
 0x851   :  { %5219 = vmatpush1.bf16.msra.mxu0 %v7567_v61  ;;  %v7632_v61 = vld [vmem:[#allocation10 + $0xe34] ss:$8 sps:$4 sm:$0xff]  }
 0x852   :  { %5220 = vmatprep.subr.bf16.mxu0 %v7572_v4  ;;  %v7630_v4 = vld [vmem:[#allocation10 + $0xe30] ss:$8 sps:$4 sm:$0xff]  }
 0x855   :  { %5221 = vmatpush1.bf16.msra.mxu0 %v7570_v15  ;;  %v7635_v15 = vld [vmem:[#allocation10 + $0xe44] ss:$8 sps:$4 sm:$0xff]  }
 0x856   :  { %5537 = vmatprep.subr.bf16.mxu0 %v7575_v42  ;;  %v7633_v42 = vld [vmem:[#allocation10 + $0xe40] ss:$8 sps:$4 sm:$0xff]  }
 0x858   :  { %5223 = vmatmul.mubr.bf16.vlgmr.msra.gmra.mrb[12].mxu0 %v4995_v6  ;;  %v7675_v6 = vld [vmem:[#allocation13 + $0x58] sm:$0xff]  }
 0x859   :  { %5538 = vmatpush1.bf16.msra.mxu0 %v7573_v43  ;;  %5569 = vmatprep.mubr.bf16.mxu0 %v5343_v1  ;;  %v7677_v1 = vld [vmem:[#allocation13 + $0x60] sm:$0xff]  }
 0x85a   :  { %5539 = vmatprep.subr.bf16.mxu0 %v7578_v44  ;;  %6762 = vmatprep.subr.bf16.mxu1 %v7675_v6  ;;  %v7647_v43 = vld [vmem:[#allocation10 + $0xe84] ss:$8 sps:$4 sm:$0xff]   ;;  %v7645_v44 = vld [vmem:[#allocation10 + $0xe80] ss:$8 sps:$4 sm:$0xff]  }
 0x85b   :  { %6763 = vmatpush3.bf16.msra.mxu1 %v7676_v29  ;;  %v7665_v6 = vld [vmem:[#allocation10 + $0xee4] ss:$8 sps:$4 sm:$0xff]   ;;  %v7666_v29 = vld [vmem:[#allocation10 + $0xef0] ss:$8 sps:$4 sm:$0xff]  }
 0x85c   :  { %6764 = vmatprep.subr.bf16.mxu1 %v7677_v1  ;;  %v7679_v1 = vld [vmem:[#allocation13 + $0x68] sm:$0xff]  }
 0x85d   :  { %5540 = vmatpush1.bf16.msra.mxu0 %v7576_v49  ;;  %v7651_v49 = vld [vmem:[#allocation10 + $0xea0] ss:$8 sps:$4 sm:$0xff]  }
 0x85e   :  { %5541 = vmatprep.subr.bf16.mxu0 %v7581_v50  ;;  %v7656_v50 = vld [vmem:[#allocation10 + $0xeb4] ss:$8 sps:$4 sm:$0xff]  }
 0x85f   :  { %6765 = vmatpush3.bf16.msra.mxu1 %v7678_v62  ;;  %v7682_v62 = vld [vmem:[#allocation13 + $0x30] sm:$0xff]  }
 0x860   :  { %6766 = vmatprep.subr.bf16.mxu1 %v7679_v1 }
 0x861   :  { %5542 = vmatpush1.bf16.msra.mxu0 %v7579_v20  ;;  %v7657_v20 = vld [vmem:[#allocation10 + $0xec0] ss:$8 sps:$4 sm:$0xff]  }
 0x862   :  { %5543 = vmatprep.subr.bf16.mxu0 %v7584_v60  ;;  %v7662_v60 = vld [vmem:[#allocation10 + $0xed4] ss:$8 sps:$4 sm:$0xff]  }
 0x865   :  { %5544 = vmatpush1.bf16.msra.mxu0 %v7582_v2  ;;  %v7663_v2 = vld [vmem:[#allocation10 + $0xee0] ss:$8 sps:$4 sm:$0xff]  }
 0x866   :  { %5545 = vmatprep.subr.bf16.mxu0 %v7587_v56  ;;  %v7668_v56 = vld [vmem:[#allocation10 + $0xef4] ss:$8 sps:$4 sm:$0xff]  }
 0x869   :  { %5546 = vmatpush1.bf16.msra.mxu0 %v7585_v7  ;;  %v7680_v7 = vld [vmem:[#allocation13 + $0x28] sm:$0xff]  }
 0x86a   :  { %5547 = vmatprep.subr.bf16.mxu0 %v7590_v22  ;;  %6767 = vmatpush3.bf16.msra.mxu1 %v7680_v7  ;;  %v7681_v22 = vld [vmem:[#allocation13 + $0x70] sm:$0xff]  }
 0x86b   :  { %6768 = vmatprep.subr.bf16.mxu1 %v7681_v22 }
 0x86d   :  { %5548 = vmatpush1.bf16.msra.mxu0 %v7588_v3  ;;  %v7683_v3 = vld [vmem:[#allocation13 + $0x78] sm:$0xff]  }
 0x86e   :  { %5549 = vmatprep.subr.bf16.mxu0 %v7593_v9  ;;  %6769 = vmatpush3.bf16.msra.mxu1 %v7682_v62  ;;  %v7684_v9 = vld [vmem:[#allocation13 + $0x38] sm:$0xff]  }
 0x86f   :  { %6770 = vmatprep.subr.bf16.mxu1 %v7683_v3 }
 0x871   :  { %5550 = vmatpush1.bf16.msra.mxu0 %v7591_v46  ;;  %v5933_v46 = vlaneseq }
 0x872   :  { %5551 = vmatprep.subr.bf16.mxu0 %v7596_v8  ;;  %6771 = vmatpush3.bf16.msra.mxu1 %v7684_v9 }
 0x873   :  { %v5934_v8 = vshrl.u32 %v5933_v46, 7 }
 0x875   :  { %5552 = vmatpush1.bf16.msra.mxu0 %v7594_v16  ;;  %v5935_v16 = vsub.s32 0, %v5934_v8 }
 0x876   :  { %5553 = vmatprep.subr.bf16.mxu0 %v7599_v36  ;;  %v5931_v36 = vld [vmem:[#allocation11] sm:$0x3] }
 0x879   :  { %5554 = vmatpush1.bf16.msra.mxu0 %v7597_v5  ;;  %v5939_v5 = vsub.s32 1, %v5934_v8 }
 0x87a   :  { %5555 = vmatprep.subr.bf16.mxu0 %v7602_v10  ;;  %v5936_v10 = vrot.slane %v5931_v36, %v5935_v16 }
 0x87b   :  { %v5940_v26 = vrot.slane %v5931_v36, %v5939_v5 }
 0x87d   :  { %5556 = vmatpush1.bf16.msra.mxu0 %v7600_v33 }
 0x87e   :  { %5557 = vmatprep.subr.bf16.mxu0 %v7605_v53 }
 0x881   :  { %5558 = vmatpush1.bf16.msra.mxu0 %v7603_v13 }
 0x882   :  { %5559 = vmatprep.subr.bf16.mxu0 %v7608_v24 }
 0x885   :  { %5560 = vmatpush1.bf16.msra.mxu0 %v7606_v34 }
 0x886   :  { %5561 = vmatprep.subr.bf16.mxu0 %v7611_v12 }
 0x889   :  { %5562 = vmatpush1.bf16.msra.mxu0 %v7609_v31 }
 0x88a   :  { %5563 = vmatprep.subr.bf16.mxu0 %v7614_v41 }
 0x88d   :  { %5564 = vmatpush1.bf16.msra.mxu0 %v7612_v14 }
 0x88e   :  { %5565 = vmatprep.subr.bf16.mxu0 %v7617_v21 }
 0x891   :  { %5566 = vmatpush1.bf16.msra.mxu0 %v7615_v25 }
 0x892   :  { %5567 = vmatprep.subr.bf16.mxu0 %v7620_v19 }
 0x895   :  { %5568 = vmatpush1.bf16.msra.mxu0 %v7618_v32 }
 0x896   :  { %5884 = vmatprep.subr.bf16.mxu0 %v7623_v55 }
 0x898   :  { %5570 = vmatmul.mubr.bf16.vlgmr.msra.gmra.mrb[12].mxu0 %v5342_v63  ;;  %v7641_v63 = vld [vmem:[#allocation10 + $0xe64] ss:$8 sps:$4 sm:$0xff]  }
 0x899   :  { %5885 = vmatpush1.bf16.msra.mxu0 %v7621_v17  ;;  %5916 = vmatprep.mubr.bf16.mxu0 %v5690_v59  ;;  %v7642_v59 = vld [vmem:[#allocation10 + $0xe70] ss:$8 sps:$4 sm:$0xff]  }
 0x89a   :  { %5886 = vmatprep.subr.bf16.mxu0 %v7626_v23 }
 0x89d   :  { %5887 = vmatpush1.bf16.msra.mxu0 %v7624_v0 }
 0x89e   :  { %5888 = vmatprep.subr.bf16.mxu0 %v7629_v54 }
 0x8a1   :  { %5889 = vmatpush1.bf16.msra.mxu0 %v7627_v57 }
 0x8a2   :  { %5890 = vmatprep.subr.bf16.mxu0 %v7632_v61 }
 0x8a5   :  { %5891 = vmatpush1.bf16.msra.mxu0 %v7630_v4 }
 0x8a6   :  { %5892 = vmatprep.subr.bf16.mxu0 %v7635_v15 }
 0x8a9   :  { %5893 = vmatpush1.bf16.msra.mxu0 %v7633_v42 }
 0x8aa   :  { %5894 = vmatprep.subr.bf16.mxu0 %v7638_v52 }
 0x8ad   :  { %5895 = vmatpush1.bf16.msra.mxu0 %v7636_v58 }
 0x8ae   :  { %5896 = vmatprep.subr.bf16.mxu0 %v7641_v63 }
 0x8b1   :  { %5897 = vmatpush1.bf16.msra.mxu0 %v7639_v30 }
 0x8b2   :  { %5898 = vmatprep.subr.bf16.mxu0 %v7644_v51 }
 0x8b5   :  { %5899 = vmatpush1.bf16.msra.mxu0 %v7642_v59 }
 0x8b6   :  { %5900 = vmatprep.subr.bf16.mxu0 %v7647_v43 }
 0x8b9   :  { %5901 = vmatpush1.bf16.msra.mxu0 %v7645_v44 }
 0x8ba   :  { %5902 = vmatprep.subr.bf16.mxu0 %v7650_v45 }
 0x8bd   :  { %5903 = vmatpush1.bf16.msra.mxu0 %v7648_v47 }
 0x8be   :  { %5904 = vmatprep.subr.bf16.mxu0 %v7653_v48 }
 0x8c1   :  { %5905 = vmatpush1.bf16.msra.mxu0 %v7651_v49 }
 0x8c2   :  { %5906 = vmatprep.subr.bf16.mxu0 %v7656_v50 }
 0x8c5   :  { %5907 = vmatpush1.bf16.msra.mxu0 %v7654_v11 }
 0x8c6   :  { %5908 = vmatprep.subr.bf16.mxu0 %v7659_v18 }
 0x8c9   :  { %5909 = vmatpush1.bf16.msra.mxu0 %v7657_v20 }
 0x8ca   :  { %5910 = vmatprep.subr.bf16.mxu0 %v7662_v60 }
 0x8cd   :  { %5911 = vmatpush1.bf16.msra.mxu0 %v7660_v28 }
 0x8ce   :  { %5912 = vmatprep.subr.bf16.mxu0 %v7665_v6 }
 0x8d1   :  { %5913 = vmatpush1.bf16.msra.mxu0 %v7663_v2 }
 0x8d2   :  { %5914 = vmatprep.subr.bf16.mxu0 %v7668_v56 }
 0x8d5   :  { %5915 = vmatpush1.bf16.msra.mxu0 %v7666_v29 }
 0x8d8   :  { %5917 = vmatmul.mubr.bf16.vlgmr.msra.gmra.mrb[12].mxu0 %v5689_v27 }
 0x9ab   :  { %v5918_v35 = vpop.f32.mrb[12].mxu0 }
 0x9ac   :  { %v6778_v27 = vadd.f32 %v5918_v35, %v8204_v37  ;;  %v5920_v33 = vpop.f32.mrb[13].mxu0 }
 0x9ad   :  { %v6779_v53 = vadd.f32 %v5920_v33, %v8206_v38  ;;  %v5922_v13 = vpop.f32.mrb[14].mxu0  ;;  %v6739_v38 = vld [vmem:[#allocation14] ss:$0 sm:$0xff] }
 0x9ae   :  { %v5943_v24 = vadd.f32 %v6778_v27, %v5936_v10  ;;  %v6780_v34 = vadd.f32 %v5922_v13, %v8208_v39  ;;  %v5924_v12 = vpop.f32.mrb[15].mxu0 }
 0x9af   :  { %v5944_v31 = vadd.f32 %v6779_v53, %v5940_v26  ;;  %v6781_v41 = vadd.f32 %v5924_v12, %v8210_v40 }
 0x9b0   :  { %v5945_v14 = vadd.f32 %v6780_v34, %v5936_v10  ;;  %v5947_v25 = vmax.f32 %v5943_v24, 0.0 }
 0x9b1   :  { %v5946_v21 = vadd.f32 %v6781_v41, %v5940_v26  ;;  %v5948_v32 = vmax.f32 %v5944_v31, 0.0 }
 0x9b2   :  { %v5949_v19 = vmax.f32 %v5945_v14, 0.0 }
 0x9b3   :  { %v5950_v55 = vmax.f32 %v5946_v21, 0.0 }
 0x9b4   :  { %v5951_v17 = vpack.c.bf16 %v5949_v19, %v5947_v25 }
 0x9b5   :  { %v5952_v23 = vpack.c.bf16 %v5950_v55, %v5948_v32 }
 0x9b7   :  { %6120 = vmatprep.mubr.bf16.mxu1 %v5952_v23 }
 0x9b8   :  { %6121 = vmatmul.mubr.bf16.vlgmr.msra.gmra.mrb[128].mxu1 %v5951_v17 }
 0xa8b   :  { %v6772_v37 = vpop.f32.mrb[128].mxu1 }
 0xa8c   :  { %v6773_v0 = vpop.f32.mrb[129].mxu1 }
 0xa8d   :  { %v6774_v54 = vadd.f32 %v6773_v0, %v6772_v37  ;;  %v6775_v57 = vpop.f32.mrb[130].mxu1 }
 0xa8e   :  { %v6776_v39 = vpop.f32.mrb[131].mxu1 }
 0xa8f   :  { %v6123_v61 = vadd.f32 %v6774_v54, %v6739_v38  ;;  %v6777_v40 = vadd.f32 %v6776_v39, %v6775_v57 }
 0xa91   :  { %6129 = vst [vmem:[#allocation16] sm:$0xff] %v6123_v61  ;;  %v6126_v4 = vadd.f32 %v6777_v40, %v6739_v38 }
 0xa93   :  { %6130 = vst [vmem:[#allocation16 + $0x8] sm:$0xff] %v6126_v4 }
 0xa94   :  { %7872 = shalt.err (!%p7869_p12)
}
 0xa95   :  { %s7873_s22 = scalar_lea.hbm %s8414_s8, 256 }
 0xa96   :  { %p7874_p13 = scmp.ne.s32.totalorder %s8414_s8, %s7873_s22  ;;  %p7877_p0 = scmp.lt.u32.totalorder %s7873_s22, %s8414_s8 }
 0xa98   :  { %p7879_p1 = pnand %p7877_p0, %p7874_p13 }
 0xa9a   :  { %7882 = shalt.err (!%p7879_p1)
}
 0xa9b   :  { %6142 = dma.vmem_to_hbm [thread:$0]  %s6137_s10, 256, %s8414_s8, [#allocation4], %s7899_s1, %s7899_s1, %s7900_s28  }
 0xa9c   :  { %7893 = dma.done.wait [#allocation4], 256  }
 0xa9d   :  { %7894 = vsyncadd [#allocation4], 4294967040 }
 0xa9e   :  { %6146 = vsyncpa [#allocation3], 1 }
 0xa9f   :  { %6147 = vsyncpa [#allocation6], 1 }
 0xaa0   :  { %6148 = vsyncpa [#allocation9], 1 }
 0xaa1   :  { %6149 = vsyncpa [#allocation12], 1 }
 0xaa2   :  { %6150 = vsyncpa [#allocation15], 1 }
 0xaa3   :  { %6151 = vsyncpa [#allocation4], 1 }

</bundles_post_ra>
